<compile_context>
chip_gen: v7x
topology: tpu7x:2x2x1
jax: 0.10.0
libtpu: 0.0.40
codegen_flags: <defaults>
</compile_context>

<pallas_src>
import jax
import jax.numpy as jnp
from jax import lax
from jax.experimental import pallas as pl
from jax.experimental.pallas import tpu as pltpu


# ----------------------------------------------------------------------------
# Pallas kernel: fused 2x-nearest upsample + 3x3 conv (polyphase 2x2 convs)
#                + BatchNorm partial statistics.
# ----------------------------------------------------------------------------
def upconv_conv_kernel(x_ref, w_ref, o_ref, s_ref):
    # x_ref : (1, 1, TH+2, W+2, Cin)  original-resolution row tile with 1-px halo
    # w_ref : (4, 4, Cin, TN)         [phase 2a+b, tap 2p+q, ci, co] polyphase weights
    # o_ref : (1, 4, TH, W, TN)       conv output, phase-major, channel block c
    # s_ref : (1, 1, 1, 2, TN)        per-(n, c, t) [sum, sum_sq] BN partials (f32)
    _, _, TH, W, TN = o_ref.shape
    Cin = x_ref.shape[-1]
    xt = x_ref[0, 0]                                  # (TH+2, W+2, Cin)

    ssum = jnp.zeros((1, TN), jnp.float32)
    ssq = jnp.zeros((1, TN), jnp.float32)
    # Polyphase identity: a 3x3/pad1 conv applied to the 2x-nearest-upsampled
    # image equals four 2x2 convs on the ORIGINAL image (one per output phase
    # (a, b)).  Each tap is a static slice + one MXU dot accumulated in f32; no
    # im2col patch is materialized and no lane-axis concatenation happens.
    for a in range(2):                                # output row phase
        for b in range(2):                            # output col phase
            acc = jnp.zeros((TH * W, TN), jnp.float32)
            for p in range(2):                        # 2x2 effective-kernel rows
                for q in range(2):                    # 2x2 effective-kernel cols
                    xs = xt[a + p:a + p + TH, b + q:b + q + W, :]
                    acc += jnp.dot(xs.reshape(TH * W, Cin),
                                   w_ref[2 * a + b, 2 * p + q],
                                   preferred_element_type=jnp.float32)
            o_ref[0, 2 * a + b] = acc.reshape(TH, W, TN).astype(o_ref.dtype)
            # Partial BatchNorm statistics (avoid a second HBM pass for mean/var).
            ssum += jnp.sum(acc, axis=0, keepdims=True)
            ssq += jnp.sum(acc * acc, axis=0, keepdims=True)
    s_ref[0, 0, 0] = jnp.concatenate([ssum, ssq], axis=0)


# ----------------------------------------------------------------------------
# Glue helpers
# ----------------------------------------------------------------------------
# M[a, p, dy] = 1 iff original 3x3 tap-row dy contributes to phase-a tap-row p.
_PHASE_TAPS = (((1, 0, 0), (0, 1, 1)),    # a = 0: reads original rows {i-1, i}
               ((1, 1, 0), (0, 0, 1)))    # a = 1: reads original rows {i, i+1}


def _polyphase_weights(weight_hwio, dtype):
    """(3,3,Cin,Cout) HWIO -> (4 phases, 4 taps, Cin, Cout) 2x2 polyphase weights."""
    M = jnp.asarray(_PHASE_TAPS, jnp.float32)                  # (2, 2, 3)
    w = weight_hwio.astype(jnp.float32)
    wp = jnp.einsum('apy,bqx,yxio->abpqio', M, M, w)           # (2,2,2,2,Cin,Cout)
    cin, cout = w.shape[2], w.shape[3]
    return wp.reshape(4, 4, cin, cout).astype(dtype)


def _pad(v, m):
    return -(-v // m) * m


def _vmem_budget():
    """Generation-aware VMEM budget (128 MiB on v5e/v6e, 64 MiB on v7x)."""
    cap = 64 * 1024 * 1024
    try:
        cap = int(getattr(pltpu.get_tpu_info(), "vmem_capacity_bytes", cap))
    except Exception:                     # interpret mode / older runtimes
        pass
    cap = max(cap, 32 * 1024 * 1024)
    budget = int(cap * 0.70)
    limit = min(int(cap * 0.85), cap - (4 << 20))
    return budget, limit


def _tile_vmem_bytes(th, tn, w_in, cin, in_bytes, out_bytes, w_bufs):
    """Lane/sublane-padding-aware per-step VMEM estimate."""
    cin_l = _pad(cin, 128)
    tn_l = _pad(tn, 128)
    x_tile = 2 * (th + 2) * _pad(w_in + 2, 8) * cin_l * in_bytes     # dbl-buffered input
    w_tile = w_bufs * 16 * _pad(cin, 8) * tn_l * in_bytes            # polyphase weights
    o_tile = 2 * 4 * th * _pad(w_in, 8) * tn_l * out_bytes           # dbl-buffered output
    acc = _pad(th * w_in, 8) * tn_l * 4                              # f32 accumulator
    scratch = 2 * _pad(th * w_in, 8) * cin_l * in_bytes              # live tap slices
    return x_tile + w_tile + o_tile + acc + scratch


def _pick_channel_tile(cout, cin, in_bytes, budget, w_bufs):
    """Largest channel block (== Cout, or a multiple of 128 dividing Cout) whose
    weight block stays within ~1/3 of the VMEM budget."""
    cands = [cout] + [d for d in (512, 256, 128) if d < cout and cout % d == 0]
    for tn in cands:
        if w_bufs * 16 * _pad(cin, 8) * _pad(tn, 128) * in_bytes <= budget // 3:
            return tn
    return cands[-1]


def _pick_row_tile(h_in, w_in, cin, tn, n, n_ctiles, in_bytes, out_bytes, budget,
                   w_bufs):
    divisors = [d for d in range(1, h_in + 1) if h_in % d == 0]
    fitting = [d for d in divisors
               if _tile_vmem_bytes(d, tn, w_in, cin, in_bytes, out_bytes,
                                   w_bufs) <= budget] or [1]
    # >= 8 grid steps keeps the double-buffer pipeline full on both v7x cores.
    deep = [d for d in fitting if n * n_ctiles * (h_in // d) >= 8]
    pool = deep or fitting
    # Prefer an MXU-aligned M dimension (multiples of 256 for v6e/v7x).
    aligned = [d for d in pool if (d * w_in) % 256 == 0]
    return max(aligned or pool)


# ----------------------------------------------------------------------------
# Wrapper
# ----------------------------------------------------------------------------
def upconv_forward(x_nchw, weight_hwio, bias, gamma, beta, eps=1e-5,
                   compute_dtype=jnp.bfloat16, row_tile=None, channel_tile=None,
                   output_layout="NCHW"):
    """x_nchw: (N, Cin, H, W) f32 -> (N, Cout, 2H, 2W) f32 (or NHWC if requested).

    weight_hwio is the Conv2d weight in HWIO layout (PyTorch OIHW weights must be
    transposed with (2, 3, 1, 0) by the caller).

    Note: `bias` is accepted for API parity but NOT used: under training-mode
    BatchNorm a constant per-channel bias cancels exactly in (x - mean) and does
    not change var, so the forward output is identical without the add."""
    del bias  # mathematically a no-op under training-mode BatchNorm.

    N, Cin, H_in, W_in = x_nchw.shape
    Cout = weight_hwio.shape[3]
    compute_dtype = jnp.dtype(compute_dtype)
    in_bytes = out_bytes = compute_dtype.itemsize

    budget, vmem_limit = _vmem_budget()
    single_buffer_weights = hasattr(pl, "Buffered")
    w_bufs = 1 if single_buffer_weights else 2

    if channel_tile is None:
        TN = _pick_channel_tile(Cout, Cin, in_bytes, budget, w_bufs)
    else:
        TN = int(channel_tile)
    assert Cout % TN == 0 and (TN == Cout or TN % 128 == 0), (Cout, TN)
    NC = Cout // TN

    if row_tile is None:
        TH = _pick_row_tile(H_in, W_in, Cin, TN, N, NC, in_bytes, out_bytes,
                            budget, w_bufs)
    else:
        TH = int(row_tile)
    assert H_in % TH == 0, (H_in, TH)
    T = H_in // TH

    # NCHW -> NHWC at ORIGINAL resolution (4x less data than post-upsample),
    # 1-pixel zero pad (conv padding=1 maps exactly to a 1-pixel halo on the
    # original image under the polyphase decomposition), overlapping row tiles.
    # TODO(synk): replace this halo re-stacking (one extra XLA pass over the
    # small pre-upsample input) with pl.Element row offsets or a manual DMA.
    x_nhwc = jnp.transpose(x_nchw, (0, 2, 3, 1))
    x_pad = jnp.pad(x_nhwc, ((0, 0), (1, 1), (1, 1), (0, 0)))
    x_tiles = jnp.stack(
        [x_pad[:, t * TH:t * TH + TH + 2] for t in range(T)], axis=1
    ).astype(compute_dtype)                               # (N, T, TH+2, W+2, Cin)

    wp = _polyphase_weights(weight_hwio, compute_dtype)   # (4, 4, Cin, Cout)

    def _conv_call(use_single_buffer):
        w_kwargs = {}
        if use_single_buffer:
            # Weight block only changes once per T inner steps; single-buffering
            # halves its VMEM footprint, which buys a larger TH.
            w_kwargs["pipeline_mode"] = pl.Buffered(1)
        grid_spec = pltpu.PrefetchScalarGridSpec(
            num_scalar_prefetch=0,
            grid=(N, NC, T),                              # T innermost: weights reused
            in_specs=[
                pl.BlockSpec((1, 1, TH + 2, W_in + 2, Cin),
                             lambda n, c, t: (n, t, 0, 0, 0)),
                pl.BlockSpec((4, 4, Cin, TN), lambda n, c, t: (0, 0, 0, c),
                             **w_kwargs),
            ],
            out_specs=(
                pl.BlockSpec((1, 4, TH, W_in, TN), lambda n, c, t: (n, 0, t, 0, c)),
                pl.BlockSpec((1, 1, 1, 2, TN), lambda n, c, t: (n, c, t, 0, 0)),
            ),
        )
        return pl.pallas_call(
            upconv_conv_kernel,
            out_shape=(
                jax.ShapeDtypeStruct((N, 4, H_in, W_in, Cout), compute_dtype),
                jax.ShapeDtypeStruct((N, NC, T, 2, TN), jnp.float32),
            ),
            grid_spec=grid_spec,
            compiler_params=pltpu.CompilerParams(
                dimension_semantics=("parallel", "parallel", "parallel"),
                vmem_limit_bytes=int(vmem_limit)),
        )(x_tiles, wp)

    if single_buffer_weights:
        try:
            conv_out, stats = _conv_call(True)
        except Exception:        # safe fallback if Buffered(1) is rejected
            conv_out, stats = _conv_call(False)
    else:
        conv_out, stats = _conv_call(False)

    # BatchNorm training-mode statistics from the kernel's partial sums
    # (no extra HBM pass over conv_out).
    count = float(N * (2 * H_in) * (2 * W_in))
    ch_sum = stats[..., 0, :].sum(axis=(0, 2)).reshape(Cout)
    ch_sqs = stats[..., 1, :].sum(axis=(0, 2)).reshape(Cout)
    mean = ch_sum / count
    var = jnp.maximum(ch_sqs / count - mean * mean, 0.0)   # biased, like PyTorch
    scale = gamma.astype(jnp.float32) * lax.rsqrt(var + eps)
    shift = beta.astype(jnp.float32) - mean * scale

    # Epilogue: phase de-interleave + BN affine + ReLU.  The conv output is
    # phase-major with a lane-dense channel last dim, so the transpose runs on
    # the narrow bf16 tensor and the elementwise fuses around it.
    # TODO(synk): a fully fused lane-dense Pallas NCHW epilogue needs an
    # in-kernel lane->major channel transpose whose Mosaic lowering is not
    # guaranteed; kept in XLA (one standard transpose pass for NCHW, none for NHWC).
    y = conv_out.reshape(N, 2, 2, H_in, W_in, Cout)        # (n, a, b, i, j, co)
    if output_layout == "NHWC":
        y = jnp.transpose(y, (0, 3, 1, 4, 2, 5))           # (n, i, a, j, b, co)
        y = jnp.maximum(y.astype(jnp.float32) * scale + shift, 0.0)
        return y.reshape(N, 2 * H_in, 2 * W_in, Cout)
    y = jnp.transpose(y, (0, 5, 3, 1, 4, 2))               # (n, co, i, a, j, b)
    y = jnp.maximum(y.astype(jnp.float32)
                    * scale.reshape(1, Cout, 1, 1, 1, 1)
                    + shift.reshape(1, Cout, 1, 1, 1, 1), 0.0)
    return y.reshape(N, Cout, 2 * H_in, 2 * W_in)


def upconv_reference(x_nchw, weight_hwio, bias, gamma, beta, eps=1e-5):
    """Pure-JAX reference (same semantics as the PyTorch module)."""
    x_up = jnp.repeat(jnp.repeat(x_nchw, 2, axis=2), 2, axis=3)
    x_nhwc = jnp.transpose(x_up, (0, 2, 3, 1))
    conv = lax.conv_general_dilated(
        x_nhwc, weight_hwio, window_strides=(1, 1), padding="SAME",
        dimension_numbers=("NHWC", "HWIO", "NHWC")) + bias
    mean = jnp.mean(conv, axis=(0, 1, 2))
    var = jnp.var(conv, axis=(0, 1, 2))
    y = (conv - mean) * lax.rsqrt(var + eps) * gamma + beta
    y = jnp.maximum(y, 0.0)
    return jnp.transpose(y, (0, 3, 1, 2))


if __name__ == "__main__":
    key = jax.random.PRNGKey(0)

    # ---- Test 1: small module-consistent shapes, f32 + bf16 paths ----------
    N, Cin, Cout, H_in, W_in = 2, 4, 8, 16, 16
    kx, kw, kb, kg, kbe = jax.random.split(key, 5)
    x = jax.random.normal(kx, (N, Cin, H_in, W_in), jnp.float32)
    weight = 0.1 * jax.random.normal(kw, (3, 3, Cin, Cout), jnp.float32)   # HWIO
    bias = 0.1 * jax.random.normal(kb, (Cout,), jnp.float32)
    gamma = 1.0 + 0.1 * jax.random.normal(kg, (Cout,), jnp.float32)
    beta = 0.1 * jax.random.normal(kbe, (Cout,), jnp.float32)

    ref = upconv_reference(x, weight, bias, gamma, beta)

    out_f32 = jax.block_until_ready(
        upconv_forward(x, weight, bias, gamma, beta, compute_dtype=jnp.float32))
    assert out_f32.shape == (N, Cout, 2 * H_in, 2 * W_in), out_f32.shape
    assert jnp.allclose(out_f32, ref, atol=1e-4, rtol=1e-4), \
        float(jnp.max(jnp.abs(out_f32 - ref)))

    out_bf16 = jax.block_until_ready(
        upconv_forward(x, weight, bias, gamma, beta))      # bf16 MXU path
    assert out_bf16.shape == (N, Cout, 2 * H_in, 2 * W_in), out_bf16.shape
    assert jnp.allclose(out_bf16, ref, atol=5e-2, rtol=5e-2), \
        float(jnp.max(jnp.abs(out_bf16 - ref)))

    # ---- Test 2: exercise output-channel tiling (NC > 1) and NHWC output ---
    N2, Cin2, Cout2, H2, W2 = 2, 8, 256, 8, 8
    k2 = jax.random.split(jax.random.PRNGKey(1), 5)
    x2 = jax.random.normal(k2[0], (N2, Cin2, H2, W2), jnp.float32)
    w2 = 0.1 * jax.random.normal(k2[1], (3, 3, Cin2, Cout2), jnp.float32)
    b2 = 0.1 * jax.random.normal(k2[2], (Cout2,), jnp.float32)
    g2 = 1.0 + 0.1 * jax.random.normal(k2[3], (Cout2,), jnp.float32)
    be2 = 0.1 * jax.random.normal(k2[4], (Cout2,), jnp.float32)

    ref2 = upconv_reference(x2, w2, b2, g2, be2)
    out2 = jax.block_until_ready(
        upconv_forward(x2, w2, b2, g2, be2, compute_dtype=jnp.float32,
                       channel_tile=128))
    assert out2.shape == (N2, Cout2, 2 * H2, 2 * W2), out2.shape
    assert jnp.allclose(out2, ref2, atol=1e-4, rtol=1e-4), \
        float(jnp.max(jnp.abs(out2 - ref2)))

    out2_nhwc = jax.block_until_ready(
        upconv_forward(x2, w2, b2, g2, be2, compute_dtype=jnp.float32,
                       channel_tile=128, output_layout="NHWC"))
    assert jnp.allclose(out2_nhwc, jnp.transpose(ref2, (0, 2, 3, 1)),
                        atol=1e-4, rtol=1e-4)

    print("KERNEL_OK")
</pallas_src>

<mosaic_0001>
module attributes {stable_mosaic.version = 11 : i64} {
  func.func @upconv_conv_kernel(%arg0: i32, %arg1: i32, %arg2: i32, %arg3: memref<1x1x6x18x4xf32, #tpu.memory_space<vmem>>, %arg4: memref<4x4x4x8xf32, #tpu.memory_space<vmem>>, %arg5: memref<1x4x4x16x8xf32, #tpu.memory_space<vmem>>, %arg6: memref<1x1x1x2x8xf32, #tpu.memory_space<vmem>>) attributes {dimension_semantics = [#tpu.dimension_semantics<parallel>, #tpu.dimension_semantics<parallel>, #tpu.dimension_semantics<parallel>], iteration_bounds = array<i64: 2, 1, 4>, scalar_prefetch = 0 : i64, scratch_operands = 0 : i64, tpu.core_type = #tpu.core_type<tc>, window_params = [{transform_indices = @transform_0, window_bounds = array<i64: 1, 1, 6, 18, 4>}, {pipeline_mode = #tpu.pipeline_mode<synchronous>, transform_indices = @transform_1, window_bounds = array<i64: 4, 4, 4, 8>}, {transform_indices = @transform_2, window_bounds = array<i64: 1, 4, 4, 16, 8>}, {transform_indices = @transform_3, window_bounds = array<i64: 1, 1, 1, 2, 8>}]} {
    %c0 = arith.constant 0 : index
    %c0_0 = arith.constant 0 : index
    %c0_1 = arith.constant 0 : index
    %c0_2 = arith.constant 0 : index
    %c0_3 = arith.constant 0 : index
    %0 = vector.load %arg3[%c0, %c0_0, %c0_1, %c0_2, %c0_3] : memref<1x1x6x18x4xf32, #tpu.memory_space<vmem>>, vector<1x1x6x18x4xf32>
    %1 = vector.shape_cast %0 : vector<1x1x6x18x4xf32> to vector<6x18x4xf32>
    %cst = arith.constant 0.000000e+00 : f32
    %2 = vector.broadcast %cst : f32 to vector<1x8xf32>
    %cst_4 = arith.constant 0.000000e+00 : f32
    %3 = vector.broadcast %cst_4 : f32 to vector<1x8xf32>
    %cst_5 = arith.constant 0.000000e+00 : f32
    %4 = vector.broadcast %cst_5 : f32 to vector<64x8xf32>
    %5 = vector.extract_strided_slice %1 {offsets = [0, 0, 0], sizes = [4, 16, 4], strides = [1, 1, 1]} : vector<6x18x4xf32> to vector<4x16x4xf32>
    %6 = vector.shape_cast %5 : vector<4x16x4xf32> to vector<64x4xf32>
    %c0_6 = arith.constant 0 : index
    %c0_7 = arith.constant 0 : index
    %c0_8 = arith.constant 0 : index
    %c0_9 = arith.constant 0 : index
    %7 = vector.load %arg4[%c0_6, %c0_7, %c0_8, %c0_9] : memref<4x4x4x8xf32, #tpu.memory_space<vmem>>, vector<1x1x4x8xf32>
    %8 = vector.shape_cast %7 : vector<1x1x4x8xf32> to vector<4x8xf32>
    %cst_10 = arith.constant dense<0.000000e+00> : vector<64x8xf32>
    %9 = tpu.matmul %6, %8, %cst_10 {dimension_numbers = #tpu.dot_dimension_numbers<[1], [0], [0], [1], [0, 0, 1, 1], [], []>} : vector<64x4xf32>, vector<4x8xf32>, vector<64x8xf32> -> vector<64x8xf32>
    %10 = arith.addf %4, %9 : vector<64x8xf32>
    %11 = vector.extract_strided_slice %1 {offsets = [0, 1, 0], sizes = [4, 16, 4], strides = [1, 1, 1]} : vector<6x18x4xf32> to vector<4x16x4xf32>
    %12 = vector.shape_cast %11 : vector<4x16x4xf32> to vector<64x4xf32>
    %c0_11 = arith.constant 0 : index
    %c1 = arith.constant 1 : index
    %c0_12 = arith.constant 0 : index
    %c0_13 = arith.constant 0 : index
    %13 = vector.load %arg4[%c0_11, %c1, %c0_12, %c0_13] : memref<4x4x4x8xf32, #tpu.memory_space<vmem>>, vector<1x1x4x8xf32>
    %14 = vector.shape_cast %13 : vector<1x1x4x8xf32> to vector<4x8xf32>
    %cst_14 = arith.constant dense<0.000000e+00> : vector<64x8xf32>
    %15 = tpu.matmul %12, %14, %cst_14 {dimension_numbers = #tpu.dot_dimension_numbers<[1], [0], [0], [1], [0, 0, 1, 1], [], []>} : vector<64x4xf32>, vector<4x8xf32>, vector<64x8xf32> -> vector<64x8xf32>
    %16 = arith.addf %10, %15 : vector<64x8xf32>
    %17 = vector.extract_strided_slice %1 {offsets = [1, 0, 0], sizes = [4, 16, 4], strides = [1, 1, 1]} : vector<6x18x4xf32> to vector<4x16x4xf32>
    %18 = vector.shape_cast %17 : vector<4x16x4xf32> to vector<64x4xf32>
    %c0_15 = arith.constant 0 : index
    %c2 = arith.constant 2 : index
    %c0_16 = arith.constant 0 : index
    %c0_17 = arith.constant 0 : index
    %19 = vector.load %arg4[%c0_15, %c2, %c0_16, %c0_17] : memref<4x4x4x8xf32, #tpu.memory_space<vmem>>, vector<1x1x4x8xf32>
    %20 = vector.shape_cast %19 : vector<1x1x4x8xf32> to vector<4x8xf32>
    %cst_18 = arith.constant dense<0.000000e+00> : vector<64x8xf32>
    %21 = tpu.matmul %18, %20, %cst_18 {dimension_numbers = #tpu.dot_dimension_numbers<[1], [0], [0], [1], [0, 0, 1, 1], [], []>} : vector<64x4xf32>, vector<4x8xf32>, vector<64x8xf32> -> vector<64x8xf32>
    %22 = arith.addf %16, %21 : vector<64x8xf32>
    %23 = vector.extract_strided_slice %1 {offsets = [1, 1, 0], sizes = [4, 16, 4], strides = [1, 1, 1]} : vector<6x18x4xf32> to vector<4x16x4xf32>
    %24 = vector.shape_cast %23 : vector<4x16x4xf32> to vector<64x4xf32>
    %c0_19 = arith.constant 0 : index
    %c3 = arith.constant 3 : index
    %c0_20 = arith.constant 0 : index
    %c0_21 = arith.constant 0 : index
    %25 = vector.load %arg4[%c0_19, %c3, %c0_20, %c0_21] : memref<4x4x4x8xf32, #tpu.memory_space<vmem>>, vector<1x1x4x8xf32>
    %26 = vector.shape_cast %25 : vector<1x1x4x8xf32> to vector<4x8xf32>
    %cst_22 = arith.constant dense<0.000000e+00> : vector<64x8xf32>
    %27 = tpu.matmul %24, %26, %cst_22 {dimension_numbers = #tpu.dot_dimension_numbers<[1], [0], [0], [1], [0, 0, 1, 1], [], []>} : vector<64x4xf32>, vector<4x8xf32>, vector<64x8xf32> -> vector<64x8xf32>
    %28 = arith.addf %22, %27 : vector<64x8xf32>
    %29 = vector.shape_cast %28 : vector<64x8xf32> to vector<4x16x8xf32>
    %c0_23 = arith.constant 0 : index
    %c0_24 = arith.constant 0 : index
    %c0_25 = arith.constant 0 : index
    %c0_26 = arith.constant 0 : index
    %c0_27 = arith.constant 0 : index
    %30 = vector.load %arg5[%c0_23, %c0_24, %c0_25, %c0_26, %c0_27] : memref<1x4x4x16x8xf32, #tpu.memory_space<vmem>>, vector<1x1x4x16x8xf32>
    %31 = vector.shape_cast %30 : vector<1x1x4x16x8xf32> to vector<4x16x8xf32>
    %32 = vector.shape_cast %29 : vector<4x16x8xf32> to vector<1x1x4x16x8xf32>
    tpu.vector_store %arg5[%c0_23, %c0_24, %c0_25, %c0_26, %c0_27], %32 {strides = array<i32>} : memref<1x4x4x16x8xf32, #tpu.memory_space<vmem>>, vector<1x1x4x16x8xf32>,
    %cst_28 = arith.constant dense<0.000000e+00> : vector<8xf32>
    %33 = vector.multi_reduction <add>, %28, %cst_28 [0] : vector<64x8xf32> to vector<8xf32>
    %34 = vector.shape_cast %33 : vector<8xf32> to vector<1x8xf32>
    %35 = arith.addf %2, %34 : vector<1x8xf32>
    %36 = arith.mulf %28, %28 : vector<64x8xf32>
    %cst_29 = arith.constant dense<0.000000e+00> : vector<8xf32>
    %37 = vector.multi_reduction <add>, %36, %cst_29 [0] : vector<64x8xf32> to vector<8xf32>
    %38 = vector.shape_cast %37 : vector<8xf32> to vector<1x8xf32>
    %39 = arith.addf %3, %38 : vector<1x8xf32>
    %cst_30 = arith.constant 0.000000e+00 : f32
    %40 = vector.broadcast %cst_30 : f32 to vector<64x8xf32>
    %41 = vector.extract_strided_slice %1 {offsets = [0, 1, 0], sizes = [4, 16, 4], strides = [1, 1, 1]} : vector<6x18x4xf32> to vector<4x16x4xf32>
    %42 = vector.shape_cast %41 : vector<4x16x4xf32> to vector<64x4xf32>
    %c1_31 = arith.constant 1 : index
    %c0_32 = arith.constant 0 : index
    %c0_33 = arith.constant 0 : index
    %c0_34 = arith.constant 0 : index
    %43 = vector.load %arg4[%c1_31, %c0_32, %c0_33, %c0_34] : memref<4x4x4x8xf32, #tpu.memory_space<vmem>>, vector<1x1x4x8xf32>
    %44 = vector.shape_cast %43 : vector<1x1x4x8xf32> to vector<4x8xf32>
    %cst_35 = arith.constant dense<0.000000e+00> : vector<64x8xf32>
    %45 = tpu.matmul %42, %44, %cst_35 {dimension_numbers = #tpu.dot_dimension_numbers<[1], [0], [0], [1], [0, 0, 1, 1], [], []>} : vector<64x4xf32>, vector<4x8xf32>, vector<64x8xf32> -> vector<64x8xf32>
    %46 = arith.addf %40, %45 : vector<64x8xf32>
    %47 = vector.extract_strided_slice %1 {offsets = [0, 2, 0], sizes = [4, 16, 4], strides = [1, 1, 1]} : vector<6x18x4xf32> to vector<4x16x4xf32>
    %48 = vector.shape_cast %47 : vector<4x16x4xf32> to vector<64x4xf32>
    %c1_36 = arith.constant 1 : index
    %c1_37 = arith.constant 1 : index
    %c0_38 = arith.constant 0 : index
    %c0_39 = arith.constant 0 : index
    %49 = vector.load %arg4[%c1_36, %c1_37, %c0_38, %c0_39] : memref<4x4x4x8xf32, #tpu.memory_space<vmem>>, vector<1x1x4x8xf32>
    %50 = vector.shape_cast %49 : vector<1x1x4x8xf32> to vector<4x8xf32>
    %cst_40 = arith.constant dense<0.000000e+00> : vector<64x8xf32>
    %51 = tpu.matmul %48, %50, %cst_40 {dimension_numbers = #tpu.dot_dimension_numbers<[1], [0], [0], [1], [0, 0, 1, 1], [], []>} : vector<64x4xf32>, vector<4x8xf32>, vector<64x8xf32> -> vector<64x8xf32>
    %52 = arith.addf %46, %51 : vector<64x8xf32>
    %53 = vector.extract_strided_slice %1 {offsets = [1, 1, 0], sizes = [4, 16, 4], strides = [1, 1, 1]} : vector<6x18x4xf32> to vector<4x16x4xf32>
    %54 = vector.shape_cast %53 : vector<4x16x4xf32> to vector<64x4xf32>
    %c1_41 = arith.constant 1 : index
    %c2_42 = arith.constant 2 : index
    %c0_43 = arith.constant 0 : index
    %c0_44 = arith.constant 0 : index
    %55 = vector.load %arg4[%c1_41, %c2_42, %c0_43, %c0_44] : memref<4x4x4x8xf32, #tpu.memory_space<vmem>>, vector<1x1x4x8xf32>
    %56 = vector.shape_cast %55 : vector<1x1x4x8xf32> to vector<4x8xf32>
    %cst_45 = arith.constant dense<0.000000e+00> : vector<64x8xf32>
    %57 = tpu.matmul %54, %56, %cst_45 {dimension_numbers = #tpu.dot_dimension_numbers<[1], [0], [0], [1], [0, 0, 1, 1], [], []>} : vector<64x4xf32>, vector<4x8xf32>, vector<64x8xf32> -> vector<64x8xf32>
    %58 = arith.addf %52, %57 : vector<64x8xf32>
    %59 = vector.extract_strided_slice %1 {offsets = [1, 2, 0], sizes = [4, 16, 4], strides = [1, 1, 1]} : vector<6x18x4xf32> to vector<4x16x4xf32>
    %60 = vector.shape_cast %59 : vector<4x16x4xf32> to vector<64x4xf32>
    %c1_46 = arith.constant 1 : index
    %c3_47 = arith.constant 3 : index
    %c0_48 = arith.constant 0 : index
    %c0_49 = arith.constant 0 : index
    %61 = vector.load %arg4[%c1_46, %c3_47, %c0_48, %c0_49] : memref<4x4x4x8xf32, #tpu.memory_space<vmem>>, vector<1x1x4x8xf32>
    %62 = vector.shape_cast %61 : vector<1x1x4x8xf32> to vector<4x8xf32>
    %cst_50 = arith.constant dense<0.000000e+00> : vector<64x8xf32>
    %63 = tpu.matmul %60, %62, %cst_50 {dimension_numbers = #tpu.dot_dimension_numbers<[1], [0], [0], [1], [0, 0, 1, 1], [], []>} : vector<64x4xf32>, vector<4x8xf32>, vector<64x8xf32> -> vector<64x8xf32>
    %64 = arith.addf %58, %63 : vector<64x8xf32>
    %65 = vector.shape_cast %64 : vector<64x8xf32> to vector<4x16x8xf32>
    %c0_51 = arith.constant 0 : index
    %c1_52 = arith.constant 1 : index
    %c0_53 = arith.constant 0 : index
    %c0_54 = arith.constant 0 : index
    %c0_55 = arith.constant 0 : index
    %66 = vector.load %arg5[%c0_51, %c1_52, %c0_53, %c0_54, %c0_55] : memref<1x4x4x16x8xf32, #tpu.memory_space<vmem>>, vector<1x1x4x16x8xf32>
    %67 = vector.shape_cast %66 : vector<1x1x4x16x8xf32> to vector<4x16x8xf32>
    %68 = vector.shape_cast %65 : vector<4x16x8xf32> to vector<1x1x4x16x8xf32>
    tpu.vector_store %arg5[%c0_51, %c1_52, %c0_53, %c0_54, %c0_55], %68 {strides = array<i32>} : memref<1x4x4x16x8xf32, #tpu.memory_space<vmem>>, vector<1x1x4x16x8xf32>,
    %cst_56 = arith.constant dense<0.000000e+00> : vector<8xf32>
    %69 = vector.multi_reduction <add>, %64, %cst_56 [0] : vector<64x8xf32> to vector<8xf32>
    %70 = vector.shape_cast %69 : vector<8xf32> to vector<1x8xf32>
    %71 = arith.addf %35, %70 : vector<1x8xf32>
    %72 = arith.mulf %64, %64 : vector<64x8xf32>
    %cst_57 = arith.constant dense<0.000000e+00> : vector<8xf32>
    %73 = vector.multi_reduction <add>, %72, %cst_57 [0] : vector<64x8xf32> to vector<8xf32>
    %74 = vector.shape_cast %73 : vector<8xf32> to vector<1x8xf32>
    %75 = arith.addf %39, %74 : vector<1x8xf32>
    %cst_58 = arith.constant 0.000000e+00 : f32
    %76 = vector.broadcast %cst_58 : f32 to vector<64x8xf32>
    %77 = vector.extract_strided_slice %1 {offsets = [1, 0, 0], sizes = [4, 16, 4], strides = [1, 1, 1]} : vector<6x18x4xf32> to vector<4x16x4xf32>
    %78 = vector.shape_cast %77 : vector<4x16x4xf32> to vector<64x4xf32>
    %c2_59 = arith.constant 2 : index
    %c0_60 = arith.constant 0 : index
    %c0_61 = arith.constant 0 : index
    %c0_62 = arith.constant 0 : index
    %79 = vector.load %arg4[%c2_59, %c0_60, %c0_61, %c0_62] : memref<4x4x4x8xf32, #tpu.memory_space<vmem>>, vector<1x1x4x8xf32>
    %80 = vector.shape_cast %79 : vector<1x1x4x8xf32> to vector<4x8xf32>
    %cst_63 = arith.constant dense<0.000000e+00> : vector<64x8xf32>
    %81 = tpu.matmul %78, %80, %cst_63 {dimension_numbers = #tpu.dot_dimension_numbers<[1], [0], [0], [1], [0, 0, 1, 1], [], []>} : vector<64x4xf32>, vector<4x8xf32>, vector<64x8xf32> -> vector<64x8xf32>
    %82 = arith.addf %76, %81 : vector<64x8xf32>
    %83 = vector.extract_strided_slice %1 {offsets = [1, 1, 0], sizes = [4, 16, 4], strides = [1, 1, 1]} : vector<6x18x4xf32> to vector<4x16x4xf32>
    %84 = vector.shape_cast %83 : vector<4x16x4xf32> to vector<64x4xf32>
    %c2_64 = arith.constant 2 : index
    %c1_65 = arith.constant 1 : index
    %c0_66 = arith.constant 0 : index
    %c0_67 = arith.constant 0 : index
    %85 = vector.load %arg4[%c2_64, %c1_65, %c0_66, %c0_67] : memref<4x4x4x8xf32, #tpu.memory_space<vmem>>, vector<1x1x4x8xf32>
    %86 = vector.shape_cast %85 : vector<1x1x4x8xf32> to vector<4x8xf32>
    %cst_68 = arith.constant dense<0.000000e+00> : vector<64x8xf32>
    %87 = tpu.matmul %84, %86, %cst_68 {dimension_numbers = #tpu.dot_dimension_numbers<[1], [0], [0], [1], [0, 0, 1, 1], [], []>} : vector<64x4xf32>, vector<4x8xf32>, vector<64x8xf32> -> vector<64x8xf32>
    %88 = arith.addf %82, %87 : vector<64x8xf32>
    %89 = vector.extract_strided_slice %1 {offsets = [2, 0, 0], sizes = [4, 16, 4], strides = [1, 1, 1]} : vector<6x18x4xf32> to vector<4x16x4xf32>
    %90 = vector.shape_cast %89 : vector<4x16x4xf32> to vector<64x4xf32>
    %c2_69 = arith.constant 2 : index
    %c2_70 = arith.constant 2 : index
    %c0_71 = arith.constant 0 : index
    %c0_72 = arith.constant 0 : index
    %91 = vector.load %arg4[%c2_69, %c2_70, %c0_71, %c0_72] : memref<4x4x4x8xf32, #tpu.memory_space<vmem>>, vector<1x1x4x8xf32>
    %92 = vector.shape_cast %91 : vector<1x1x4x8xf32> to vector<4x8xf32>
    %cst_73 = arith.constant dense<0.000000e+00> : vector<64x8xf32>
    %93 = tpu.matmul %90, %92, %cst_73 {dimension_numbers = #tpu.dot_dimension_numbers<[1], [0], [0], [1], [0, 0, 1, 1], [], []>} : vector<64x4xf32>, vector<4x8xf32>, vector<64x8xf32> -> vector<64x8xf32>
    %94 = arith.addf %88, %93 : vector<64x8xf32>
    %95 = vector.extract_strided_slice %1 {offsets = [2, 1, 0], sizes = [4, 16, 4], strides = [1, 1, 1]} : vector<6x18x4xf32> to vector<4x16x4xf32>
    %96 = vector.shape_cast %95 : vector<4x16x4xf32> to vector<64x4xf32>
    %c2_74 = arith.constant 2 : index
    %c3_75 = arith.constant 3 : index
    %c0_76 = arith.constant 0 : index
    %c0_77 = arith.constant 0 : index
    %97 = vector.load %arg4[%c2_74, %c3_75, %c0_76, %c0_77] : memref<4x4x4x8xf32, #tpu.memory_space<vmem>>, vector<1x1x4x8xf32>
    %98 = vector.shape_cast %97 : vector<1x1x4x8xf32> to vector<4x8xf32>
    %cst_78 = arith.constant dense<0.000000e+00> : vector<64x8xf32>
    %99 = tpu.matmul %96, %98, %cst_78 {dimension_numbers = #tpu.dot_dimension_numbers<[1], [0], [0], [1], [0, 0, 1, 1], [], []>} : vector<64x4xf32>, vector<4x8xf32>, vector<64x8xf32> -> vector<64x8xf32>
    %100 = arith.addf %94, %99 : vector<64x8xf32>
    %101 = vector.shape_cast %100 : vector<64x8xf32> to vector<4x16x8xf32>
    %c0_79 = arith.constant 0 : index
    %c2_80 = arith.constant 2 : index
    %c0_81 = arith.constant 0 : index
    %c0_82 = arith.constant 0 : index
    %c0_83 = arith.constant 0 : index
    %102 = vector.load %arg5[%c0_79, %c2_80, %c0_81, %c0_82, %c0_83] : memref<1x4x4x16x8xf32, #tpu.memory_space<vmem>>, vector<1x1x4x16x8xf32>
    %103 = vector.shape_cast %102 : vector<1x1x4x16x8xf32> to vector<4x16x8xf32>
    %104 = vector.shape_cast %101 : vector<4x16x8xf32> to vector<1x1x4x16x8xf32>
    tpu.vector_store %arg5[%c0_79, %c2_80, %c0_81, %c0_82, %c0_83], %104 {strides = array<i32>} : memref<1x4x4x16x8xf32, #tpu.memory_space<vmem>>, vector<1x1x4x16x8xf32>,
    %cst_84 = arith.constant dense<0.000000e+00> : vector<8xf32>
    %105 = vector.multi_reduction <add>, %100, %cst_84 [0] : vector<64x8xf32> to vector<8xf32>
    %106 = vector.shape_cast %105 : vector<8xf32> to vector<1x8xf32>
    %107 = arith.addf %71, %106 : vector<1x8xf32>
    %108 = arith.mulf %100, %100 : vector<64x8xf32>
    %cst_85 = arith.constant dense<0.000000e+00> : vector<8xf32>
    %109 = vector.multi_reduction <add>, %108, %cst_85 [0] : vector<64x8xf32> to vector<8xf32>
    %110 = vector.shape_cast %109 : vector<8xf32> to vector<1x8xf32>
    %111 = arith.addf %75, %110 : vector<1x8xf32>
    %cst_86 = arith.constant 0.000000e+00 : f32
    %112 = vector.broadcast %cst_86 : f32 to vector<64x8xf32>
    %113 = vector.extract_strided_slice %1 {offsets = [1, 1, 0], sizes = [4, 16, 4], strides = [1, 1, 1]} : vector<6x18x4xf32> to vector<4x16x4xf32>
    %114 = vector.shape_cast %113 : vector<4x16x4xf32> to vector<64x4xf32>
    %c3_87 = arith.constant 3 : index
    %c0_88 = arith.constant 0 : index
    %c0_89 = arith.constant 0 : index
    %c0_90 = arith.constant 0 : index
    %115 = vector.load %arg4[%c3_87, %c0_88, %c0_89, %c0_90] : memref<4x4x4x8xf32, #tpu.memory_space<vmem>>, vector<1x1x4x8xf32>
    %116 = vector.shape_cast %115 : vector<1x1x4x8xf32> to vector<4x8xf32>
    %cst_91 = arith.constant dense<0.000000e+00> : vector<64x8xf32>
    %117 = tpu.matmul %114, %116, %cst_91 {dimension_numbers = #tpu.dot_dimension_numbers<[1], [0], [0], [1], [0, 0, 1, 1], [], []>} : vector<64x4xf32>, vector<4x8xf32>, vector<64x8xf32> -> vector<64x8xf32>
    %118 = arith.addf %112, %117 : vector<64x8xf32>
    %119 = vector.extract_strided_slice %1 {offsets = [1, 2, 0], sizes = [4, 16, 4], strides = [1, 1, 1]} : vector<6x18x4xf32> to vector<4x16x4xf32>
    %120 = vector.shape_cast %119 : vector<4x16x4xf32> to vector<64x4xf32>
    %c3_92 = arith.constant 3 : index
    %c1_93 = arith.constant 1 : index
    %c0_94 = arith.constant 0 : index
    %c0_95 = arith.constant 0 : index
    %121 = vector.load %arg4[%c3_92, %c1_93, %c0_94, %c0_95] : memref<4x4x4x8xf32, #tpu.memory_space<vmem>>, vector<1x1x4x8xf32>
    %122 = vector.shape_cast %121 : vector<1x1x4x8xf32> to vector<4x8xf32>
    %cst_96 = arith.constant dense<0.000000e+00> : vector<64x8xf32>
    %123 = tpu.matmul %120, %122, %cst_96 {dimension_numbers = #tpu.dot_dimension_numbers<[1], [0], [0], [1], [0, 0, 1, 1], [], []>} : vector<64x4xf32>, vector<4x8xf32>, vector<64x8xf32> -> vector<64x8xf32>
    %124 = arith.addf %118, %123 : vector<64x8xf32>
    %125 = vector.extract_strided_slice %1 {offsets = [2, 1, 0], sizes = [4, 16, 4], strides = [1, 1, 1]} : vector<6x18x4xf32> to vector<4x16x4xf32>
    %126 = vector.shape_cast %125 : vector<4x16x4xf32> to vector<64x4xf32>
    %c3_97 = arith.constant 3 : index
    %c2_98 = arith.constant 2 : index
    %c0_99 = arith.constant 0 : index
    %c0_100 = arith.constant 0 : index
    %127 = vector.load %arg4[%c3_97, %c2_98, %c0_99, %c0_100] : memref<4x4x4x8xf32, #tpu.memory_space<vmem>>, vector<1x1x4x8xf32>
    %128 = vector.shape_cast %127 : vector<1x1x4x8xf32> to vector<4x8xf32>
    %cst_101 = arith.constant dense<0.000000e+00> : vector<64x8xf32>
    %129 = tpu.matmul %126, %128, %cst_101 {dimension_numbers = #tpu.dot_dimension_numbers<[1], [0], [0], [1], [0, 0, 1, 1], [], []>} : vector<64x4xf32>, vector<4x8xf32>, vector<64x8xf32> -> vector<64x8xf32>
    %130 = arith.addf %124, %129 : vector<64x8xf32>
    %131 = vector.extract_strided_slice %1 {offsets = [2, 2, 0], sizes = [4, 16, 4], strides = [1, 1, 1]} : vector<6x18x4xf32> to vector<4x16x4xf32>
    %132 = vector.shape_cast %131 : vector<4x16x4xf32> to vector<64x4xf32>
    %c3_102 = arith.constant 3 : index
    %c3_103 = arith.constant 3 : index
    %c0_104 = arith.constant 0 : index
    %c0_105 = arith.constant 0 : index
    %133 = vector.load %arg4[%c3_102, %c3_103, %c0_104, %c0_105] : memref<4x4x4x8xf32, #tpu.memory_space<vmem>>, vector<1x1x4x8xf32>
    %134 = vector.shape_cast %133 : vector<1x1x4x8xf32> to vector<4x8xf32>
    %cst_106 = arith.constant dense<0.000000e+00> : vector<64x8xf32>
    %135 = tpu.matmul %132, %134, %cst_106 {dimension_numbers = #tpu.dot_dimension_numbers<[1], [0], [0], [1], [0, 0, 1, 1], [], []>} : vector<64x4xf32>, vector<4x8xf32>, vector<64x8xf32> -> vector<64x8xf32>
    %136 = arith.addf %130, %135 : vector<64x8xf32>
    %137 = vector.shape_cast %136 : vector<64x8xf32> to vector<4x16x8xf32>
    %c0_107 = arith.constant 0 : index
    %c3_108 = arith.constant 3 : index
    %c0_109 = arith.constant 0 : index
    %c0_110 = arith.constant 0 : index
    %c0_111 = arith.constant 0 : index
    %138 = vector.load %arg5[%c0_107, %c3_108, %c0_109, %c0_110, %c0_111] : memref<1x4x4x16x8xf32, #tpu.memory_space<vmem>>, vector<1x1x4x16x8xf32>
    %139 = vector.shape_cast %138 : vector<1x1x4x16x8xf32> to vector<4x16x8xf32>
    %140 = vector.shape_cast %137 : vector<4x16x8xf32> to vector<1x1x4x16x8xf32>
    tpu.vector_store %arg5[%c0_107, %c3_108, %c0_109, %c0_110, %c0_111], %140 {strides = array<i32>} : memref<1x4x4x16x8xf32, #tpu.memory_space<vmem>>, vector<1x1x4x16x8xf32>,
    %cst_112 = arith.constant dense<0.000000e+00> : vector<8xf32>
    %141 = vector.multi_reduction <add>, %136, %cst_112 [0] : vector<64x8xf32> to vector<8xf32>
    %142 = vector.shape_cast %141 : vector<8xf32> to vector<1x8xf32>
    %143 = arith.addf %107, %142 : vector<1x8xf32>
    %144 = arith.mulf %136, %136 : vector<64x8xf32>
    %cst_113 = arith.constant dense<0.000000e+00> : vector<8xf32>
    %145 = vector.multi_reduction <add>, %144, %cst_113 [0] : vector<64x8xf32> to vector<8xf32>
    %146 = vector.shape_cast %145 : vector<8xf32> to vector<1x8xf32>
    %147 = arith.addf %111, %146 : vector<1x8xf32>
    %148 = tpu.concatenate %143, %147 in 0 : vector<1x8xf32>, vector<1x8xf32> -> vector<2x8xf32>
    %c0_114 = arith.constant 0 : index
    %c0_115 = arith.constant 0 : index
    %c0_116 = arith.constant 0 : index
    %c0_117 = arith.constant 0 : index
    %c0_118 = arith.constant 0 : index
    %149 = vector.load %arg6[%c0_114, %c0_115, %c0_116, %c0_117, %c0_118] : memref<1x1x1x2x8xf32, #tpu.memory_space<vmem>>, vector<1x1x1x2x8xf32>
    %150 = vector.shape_cast %149 : vector<1x1x1x2x8xf32> to vector<2x8xf32>
    %151 = vector.shape_cast %148 : vector<2x8xf32> to vector<1x1x1x2x8xf32>
    tpu.vector_store %arg6[%c0_114, %c0_115, %c0_116, %c0_117, %c0_118], %151 {strides = array<i32>} : memref<1x1x1x2x8xf32, #tpu.memory_space<vmem>>, vector<1x1x1x2x8xf32>,
    return
  }
  func.func @transform_0(%arg0: i32, %arg1: i32, %arg2: i32) -> (i32, i32, i32, i32, i32) {
    %c0_i32 = arith.constant 0 : i32
    %c0_i32_0 = arith.constant 0 : i32
    %c0_i32_1 = arith.constant 0 : i32
    %c0_i32_2 = arith.constant 0 : i32
    return %arg0, %arg2, %c0_i32, %c0_i32_0, %c0_i32_1 : i32, i32, i32, i32, i32
  }
  func.func @transform_1(%arg0: i32, %arg1: i32, %arg2: i32) -> (i32, i32, i32, i32) {
    %c0_i32 = arith.constant 0 : i32
    %c0_i32_0 = arith.constant 0 : i32
    %c0_i32_1 = arith.constant 0 : i32
    %c0_i32_2 = arith.constant 0 : i32
    return %c0_i32, %c0_i32_0, %c0_i32_1, %arg1 : i32, i32, i32, i32
  }
  func.func @transform_2(%arg0: i32, %arg1: i32, %arg2: i32) -> (i32, i32, i32, i32, i32) {
    %c0_i32 = arith.constant 0 : i32
    %c0_i32_0 = arith.constant 0 : i32
    %c0_i32_1 = arith.constant 0 : i32
    return %arg0, %c0_i32, %arg2, %c0_i32_0, %arg1 : i32, i32, i32, i32, i32
  }
  func.func @transform_3(%arg0: i32, %arg1: i32, %arg2: i32) -> (i32, i32, i32, i32, i32) {
    %c0_i32 = arith.constant 0 : i32
    %c0_i32_0 = arith.constant 0 : i32
    %c0_i32_1 = arith.constant 0 : i32
    return %arg0, %arg1, %arg2, %c0_i32, %c0_i32_0 : i32, i32, i32, i32, i32
  }
}

module attributes {stable_mosaic.version = 11 : i64} {
  func.func @upconv_conv_kernel(%arg0: i32, %arg1: i32, %arg2: i32, %arg3: memref<1x1x6x18x4xf32, #tpu.memory_space<vmem>>, %arg4: memref<4x4x4x8xf32, #tpu.memory_space<vmem>>, %arg5: memref<1x4x4x16x8xf32, #tpu.memory_space<vmem>>, %arg6: memref<1x1x1x2x8xf32, #tpu.memory_space<vmem>>) attributes {dimension_semantics = [#tpu.dimension_semantics<parallel>, #tpu.dimension_semantics<parallel>, #tpu.dimension_semantics<parallel>], iteration_bounds = array<i64: 2, 1, 4>, scalar_prefetch = 0 : i64, scratch_operands = 0 : i64, tpu.core_type = #tpu.core_type<tc>, window_params = [{transform_indices = @transform_0, window_bounds = array<i64: 1, 1, 6, 18, 4>}, {transform_indices = @transform_1, window_bounds = array<i64: 4, 4, 4, 8>}, {transform_indices = @transform_2, window_bounds = array<i64: 1, 4, 4, 16, 8>}, {transform_indices = @transform_3, window_bounds = array<i64: 1, 1, 1, 2, 8>}]} {
    %c0 = arith.constant 0 : index
    %c0_0 = arith.constant 0 : index
    %c0_1 = arith.constant 0 : index
    %c0_2 = arith.constant 0 : index
    %c0_3 = arith.constant 0 : index
    %0 = vector.load %arg3[%c0, %c0_0, %c0_1, %c0_2, %c0_3] : memref<1x1x6x18x4xf32, #tpu.memory_space<vmem>>, vector<1x1x6x18x4xf32>
    %1 = vector.shape_cast %0 : vector<1x1x6x18x4xf32> to vector<6x18x4xf32>
    %cst = arith.constant 0.000000e+00 : f32
    %2 = vector.broadcast %cst : f32 to vector<1x8xf32>
    %cst_4 = arith.constant 0.000000e+00 : f32
    %3 = vector.broadcast %cst_4 : f32 to vector<1x8xf32>
    %cst_5 = arith.constant 0.000000e+00 : f32
    %4 = vector.broadcast %cst_5 : f32 to vector<64x8xf32>
    %5 = vector.extract_strided_slice %1 {offsets = [0, 0, 0], sizes = [4, 16, 4], strides = [1, 1, 1]} : vector<6x18x4xf32> to vector<4x16x4xf32>
    %6 = vector.shape_cast %5 : vector<4x16x4xf32> to vector<64x4xf32>
    %c0_6 = arith.constant 0 : index
    %c0_7 = arith.constant 0 : index
    %c0_8 = arith.constant 0 : index
    %c0_9 = arith.constant 0 : index
    %7 = vector.load %arg4[%c0_6, %c0_7, %c0_8, %c0_9] : memref<4x4x4x8xf32, #tpu.memory_space<vmem>>, vector<1x1x4x8xf32>
    %8 = vector.shape_cast %7 : vector<1x1x4x8xf32> to vector<4x8xf32>
    %cst_10 = arith.constant dense<0.000000e+00> : vector<64x8xf32>
    %9 = tpu.matmul %6, %8, %cst_10 {dimension_numbers = #tpu.dot_dimension_numbers<[1], [0], [0], [1], [0, 0, 1, 1], [], []>} : vector<64x4xf32>, vector<4x8xf32>, vector<64x8xf32> -> vector<64x8xf32>
    %10 = arith.addf %4, %9 : vector<64x8xf32>
    %11 = vector.extract_strided_slice %1 {offsets = [0, 1, 0], sizes = [4, 16, 4], strides = [1, 1, 1]} : vector<6x18x4xf32> to vector<4x16x4xf32>
    %12 = vector.shape_cast %11 : vector<4x16x4xf32> to vector<64x4xf32>
    %c0_11 = arith.constant 0 : index
    %c1 = arith.constant 1 : index
    %c0_12 = arith.constant 0 : index
    %c0_13 = arith.constant 0 : index
    %13 = vector.load %arg4[%c0_11, %c1, %c0_12, %c0_13] : memref<4x4x4x8xf32, #tpu.memory_space<vmem>>, vector<1x1x4x8xf32>
    %14 = vector.shape_cast %13 : vector<1x1x4x8xf32> to vector<4x8xf32>
    %cst_14 = arith.constant dense<0.000000e+00> : vector<64x8xf32>
    %15 = tpu.matmul %12, %14, %cst_14 {dimension_numbers = #tpu.dot_dimension_numbers<[1], [0], [0], [1], [0, 0, 1, 1], [], []>} : vector<64x4xf32>, vector<4x8xf32>, vector<64x8xf32> -> vector<64x8xf32>
    %16 = arith.addf %10, %15 : vector<64x8xf32>
    %17 = vector.extract_strided_slice %1 {offsets = [1, 0, 0], sizes = [4, 16, 4], strides = [1, 1, 1]} : vector<6x18x4xf32> to vector<4x16x4xf32>
    %18 = vector.shape_cast %17 : vector<4x16x4xf32> to vector<64x4xf32>
    %c0_15 = arith.constant 0 : index
    %c2 = arith.constant 2 : index
    %c0_16 = arith.constant 0 : index
    %c0_17 = arith.constant 0 : index
    %19 = vector.load %arg4[%c0_15, %c2, %c0_16, %c0_17] : memref<4x4x4x8xf32, #tpu.memory_space<vmem>>, vector<1x1x4x8xf32>
    %20 = vector.shape_cast %19 : vector<1x1x4x8xf32> to vector<4x8xf32>
    %cst_18 = arith.constant dense<0.000000e+00> : vector<64x8xf32>
    %21 = tpu.matmul %18, %20, %cst_18 {dimension_numbers = #tpu.dot_dimension_numbers<[1], [0], [0], [1], [0, 0, 1, 1], [], []>} : vector<64x4xf32>, vector<4x8xf32>, vector<64x8xf32> -> vector<64x8xf32>
    %22 = arith.addf %16, %21 : vector<64x8xf32>
    %23 = vector.extract_strided_slice %1 {offsets = [1, 1, 0], sizes = [4, 16, 4], strides = [1, 1, 1]} : vector<6x18x4xf32> to vector<4x16x4xf32>
    %24 = vector.shape_cast %23 : vector<4x16x4xf32> to vector<64x4xf32>
    %c0_19 = arith.constant 0 : index
    %c3 = arith.constant 3 : index
    %c0_20 = arith.constant 0 : index
    %c0_21 = arith.constant 0 : index
    %25 = vector.load %arg4[%c0_19, %c3, %c0_20, %c0_21] : memref<4x4x4x8xf32, #tpu.memory_space<vmem>>, vector<1x1x4x8xf32>
    %26 = vector.shape_cast %25 : vector<1x1x4x8xf32> to vector<4x8xf32>
    %cst_22 = arith.constant dense<0.000000e+00> : vector<64x8xf32>
    %27 = tpu.matmul %24, %26, %cst_22 {dimension_numbers = #tpu.dot_dimension_numbers<[1], [0], [0], [1], [0, 0, 1, 1], [], []>} : vector<64x4xf32>, vector<4x8xf32>, vector<64x8xf32> -> vector<64x8xf32>
    %28 = arith.addf %22, %27 : vector<64x8xf32>
    %29 = vector.shape_cast %28 : vector<64x8xf32> to vector<4x16x8xf32>
    %c0_23 = arith.constant 0 : index
    %c0_24 = arith.constant 0 : index
    %c0_25 = arith.constant 0 : index
    %c0_26 = arith.constant 0 : index
    %c0_27 = arith.constant 0 : index
    %30 = vector.load %arg5[%c0_23, %c0_24, %c0_25, %c0_26, %c0_27] : memref<1x4x4x16x8xf32, #tpu.memory_space<vmem>>, vector<1x1x4x16x8xf32>
    %31 = vector.shape_cast %30 : vector<1x1x4x16x8xf32> to vector<4x16x8xf32>
    %32 = vector.shape_cast %29 : vector<4x16x8xf32> to vector<1x1x4x16x8xf32>
    tpu.vector_store %arg5[%c0_23, %c0_24, %c0_25, %c0_26, %c0_27], %32 {strides = array<i32>} : memref<1x4x4x16x8xf32, #tpu.memory_space<vmem>>, vector<1x1x4x16x8xf32>,
    %cst_28 = arith.constant dense<0.000000e+00> : vector<8xf32>
    %33 = vector.multi_reduction <add>, %28, %cst_28 [0] : vector<64x8xf32> to vector<8xf32>
    %34 = vector.shape_cast %33 : vector<8xf32> to vector<1x8xf32>
    %35 = arith.addf %2, %34 : vector<1x8xf32>
    %36 = arith.mulf %28, %28 : vector<64x8xf32>
    %cst_29 = arith.constant dense<0.000000e+00> : vector<8xf32>
    %37 = vector.multi_reduction <add>, %36, %cst_29 [0] : vector<64x8xf32> to vector<8xf32>
    %38 = vector.shape_cast %37 : vector<8xf32> to vector<1x8xf32>
    %39 = arith.addf %3, %38 : vector<1x8xf32>
    %cst_30 = arith.constant 0.000000e+00 : f32
    %40 = vector.broadcast %cst_30 : f32 to vector<64x8xf32>
    %41 = vector.extract_strided_slice %1 {offsets = [0, 1, 0], sizes = [4, 16, 4], strides = [1, 1, 1]} : vector<6x18x4xf32> to vector<4x16x4xf32>
    %42 = vector.shape_cast %41 : vector<4x16x4xf32> to vector<64x4xf32>
    %c1_31 = arith.constant 1 : index
    %c0_32 = arith.constant 0 : index
    %c0_33 = arith.constant 0 : index
    %c0_34 = arith.constant 0 : index
    %43 = vector.load %arg4[%c1_31, %c0_32, %c0_33, %c0_34] : memref<4x4x4x8xf32, #tpu.memory_space<vmem>>, vector<1x1x4x8xf32>
    %44 = vector.shape_cast %43 : vector<1x1x4x8xf32> to vector<4x8xf32>
    %cst_35 = arith.constant dense<0.000000e+00> : vector<64x8xf32>
    %45 = tpu.matmul %42, %44, %cst_35 {dimension_numbers = #tpu.dot_dimension_numbers<[1], [0], [0], [1], [0, 0, 1, 1], [], []>} : vector<64x4xf32>, vector<4x8xf32>, vector<64x8xf32> -> vector<64x8xf32>
    %46 = arith.addf %40, %45 : vector<64x8xf32>
    %47 = vector.extract_strided_slice %1 {offsets = [0, 2, 0], sizes = [4, 16, 4], strides = [1, 1, 1]} : vector<6x18x4xf32> to vector<4x16x4xf32>
    %48 = vector.shape_cast %47 : vector<4x16x4xf32> to vector<64x4xf32>
    %c1_36 = arith.constant 1 : index
    %c1_37 = arith.constant 1 : index
    %c0_38 = arith.constant 0 : index
    %c0_39 = arith.constant 0 : index
    %49 = vector.load %arg4[%c1_36, %c1_37, %c0_38, %c0_39] : memref<4x4x4x8xf32, #tpu.memory_space<vmem>>, vector<1x1x4x8xf32>
    %50 = vector.shape_cast %49 : vector<1x1x4x8xf32> to vector<4x8xf32>
    %cst_40 = arith.constant dense<0.000000e+00> : vector<64x8xf32>
    %51 = tpu.matmul %48, %50, %cst_40 {dimension_numbers = #tpu.dot_dimension_numbers<[1], [0], [0], [1], [0, 0, 1, 1], [], []>} : vector<64x4xf32>, vector<4x8xf32>, vector<64x8xf32> -> vector<64x8xf32>
    %52 = arith.addf %46, %51 : vector<64x8xf32>
    %53 = vector.extract_strided_slice %1 {offsets = [1, 1, 0], sizes = [4, 16, 4], strides = [1, 1, 1]} : vector<6x18x4xf32> to vector<4x16x4xf32>
    %54 = vector.shape_cast %53 : vector<4x16x4xf32> to vector<64x4xf32>
    %c1_41 = arith.constant 1 : index
    %c2_42 = arith.constant 2 : index
    %c0_43 = arith.constant 0 : index
    %c0_44 = arith.constant 0 : index
    %55 = vector.load %arg4[%c1_41, %c2_42, %c0_43, %c0_44] : memref<4x4x4x8xf32, #tpu.memory_space<vmem>>, vector<1x1x4x8xf32>
    %56 = vector.shape_cast %55 : vector<1x1x4x8xf32> to vector<4x8xf32>
    %cst_45 = arith.constant dense<0.000000e+00> : vector<64x8xf32>
    %57 = tpu.matmul %54, %56, %cst_45 {dimension_numbers = #tpu.dot_dimension_numbers<[1], [0], [0], [1], [0, 0, 1, 1], [], []>} : vector<64x4xf32>, vector<4x8xf32>, vector<64x8xf32> -> vector<64x8xf32>
    %58 = arith.addf %52, %57 : vector<64x8xf32>
    %59 = vector.extract_strided_slice %1 {offsets = [1, 2, 0], sizes = [4, 16, 4], strides = [1, 1, 1]} : vector<6x18x4xf32> to vector<4x16x4xf32>
    %60 = vector.shape_cast %59 : vector<4x16x4xf32> to vector<64x4xf32>
    %c1_46 = arith.constant 1 : index
    %c3_47 = arith.constant 3 : index
    %c0_48 = arith.constant 0 : index
    %c0_49 = arith.constant 0 : index
    %61 = vector.load %arg4[%c1_46, %c3_47, %c0_48, %c0_49] : memref<4x4x4x8xf32, #tpu.memory_space<vmem>>, vector<1x1x4x8xf32>
    %62 = vector.shape_cast %61 : vector<1x1x4x8xf32> to vector<4x8xf32>
    %cst_50 = arith.constant dense<0.000000e+00> : vector<64x8xf32>
    %63 = tpu.matmul %60, %62, %cst_50 {dimension_numbers = #tpu.dot_dimension_numbers<[1], [0], [0], [1], [0, 0, 1, 1], [], []>} : vector<64x4xf32>, vector<4x8xf32>, vector<64x8xf32> -> vector<64x8xf32>
    %64 = arith.addf %58, %63 : vector<64x8xf32>
    %65 = vector.shape_cast %64 : vector<64x8xf32> to vector<4x16x8xf32>
    %c0_51 = arith.constant 0 : index
    %c1_52 = arith.constant 1 : index
    %c0_53 = arith.constant 0 : index
    %c0_54 = arith.constant 0 : index
    %c0_55 = arith.constant 0 : index
    %66 = vector.load %arg5[%c0_51, %c1_52, %c0_53, %c0_54, %c0_55] : memref<1x4x4x16x8xf32, #tpu.memory_space<vmem>>, vector<1x1x4x16x8xf32>
    %67 = vector.shape_cast %66 : vector<1x1x4x16x8xf32> to vector<4x16x8xf32>
    %68 = vector.shape_cast %65 : vector<4x16x8xf32> to vector<1x1x4x16x8xf32>
    tpu.vector_store %arg5[%c0_51, %c1_52, %c0_53, %c0_54, %c0_55], %68 {strides = array<i32>} : memref<1x4x4x16x8xf32, #tpu.memory_space<vmem>>, vector<1x1x4x16x8xf32>,
    %cst_56 = arith.constant dense<0.000000e+00> : vector<8xf32>
    %69 = vector.multi_reduction <add>, %64, %cst_56 [0] : vector<64x8xf32> to vector<8xf32>
    %70 = vector.shape_cast %69 : vector<8xf32> to vector<1x8xf32>
    %71 = arith.addf %35, %70 : vector<1x8xf32>
    %72 = arith.mulf %64, %64 : vector<64x8xf32>
    %cst_57 = arith.constant dense<0.000000e+00> : vector<8xf32>
    %73 = vector.multi_reduction <add>, %72, %cst_57 [0] : vector<64x8xf32> to vector<8xf32>
    %74 = vector.shape_cast %73 : vector<8xf32> to vector<1x8xf32>
    %75 = arith.addf %39, %74 : vector<1x8xf32>
    %cst_58 = arith.constant 0.000000e+00 : f32
    %76 = vector.broadcast %cst_58 : f32 to vector<64x8xf32>
    %77 = vector.extract_strided_slice %1 {offsets = [1, 0, 0], sizes = [4, 16, 4], strides = [1, 1, 1]} : vector<6x18x4xf32> to vector<4x16x4xf32>
    %78 = vector.shape_cast %77 : vector<4x16x4xf32> to vector<64x4xf32>
    %c2_59 = arith.constant 2 : index
    %c0_60 = arith.constant 0 : index
    %c0_61 = arith.constant 0 : index
    %c0_62 = arith.constant 0 : index
    %79 = vector.load %arg4[%c2_59, %c0_60, %c0_61, %c0_62] : memref<4x4x4x8xf32, #tpu.memory_space<vmem>>, vector<1x1x4x8xf32>
    %80 = vector.shape_cast %79 : vector<1x1x4x8xf32> to vector<4x8xf32>
    %cst_63 = arith.constant dense<0.000000e+00> : vector<64x8xf32>
    %81 = tpu.matmul %78, %80, %cst_63 {dimension_numbers = #tpu.dot_dimension_numbers<[1], [0], [0], [1], [0, 0, 1, 1], [], []>} : vector<64x4xf32>, vector<4x8xf32>, vector<64x8xf32> -> vector<64x8xf32>
    %82 = arith.addf %76, %81 : vector<64x8xf32>
    %83 = vector.extract_strided_slice %1 {offsets = [1, 1, 0], sizes = [4, 16, 4], strides = [1, 1, 1]} : vector<6x18x4xf32> to vector<4x16x4xf32>
    %84 = vector.shape_cast %83 : vector<4x16x4xf32> to vector<64x4xf32>
    %c2_64 = arith.constant 2 : index
    %c1_65 = arith.constant 1 : index
    %c0_66 = arith.constant 0 : index
    %c0_67 = arith.constant 0 : index
    %85 = vector.load %arg4[%c2_64, %c1_65, %c0_66, %c0_67] : memref<4x4x4x8xf32, #tpu.memory_space<vmem>>, vector<1x1x4x8xf32>
    %86 = vector.shape_cast %85 : vector<1x1x4x8xf32> to vector<4x8xf32>
    %cst_68 = arith.constant dense<0.000000e+00> : vector<64x8xf32>
    %87 = tpu.matmul %84, %86, %cst_68 {dimension_numbers = #tpu.dot_dimension_numbers<[1], [0], [0], [1], [0, 0, 1, 1], [], []>} : vector<64x4xf32>, vector<4x8xf32>, vector<64x8xf32> -> vector<64x8xf32>
    %88 = arith.addf %82, %87 : vector<64x8xf32>
    %89 = vector.extract_strided_slice %1 {offsets = [2, 0, 0], sizes = [4, 16, 4], strides = [1, 1, 1]} : vector<6x18x4xf32> to vector<4x16x4xf32>
    %90 = vector.shape_cast %89 : vector<4x16x4xf32> to vector<64x4xf32>
    %c2_69 = arith.constant 2 : index
    %c2_70 = arith.constant 2 : index
    %c0_71 = arith.constant 0 : index
    %c0_72 = arith.constant 0 : index
    %91 = vector.load %arg4[%c2_69, %c2_70, %c0_71, %c0_72] : memref<4x4x4x8xf32, #tpu.memory_space<vmem>>, vector<1x1x4x8xf32>
    %92 = vector.shape_cast %91 : vector<1x1x4x8xf32> to vector<4x8xf32>
    %cst_73 = arith.constant dense<0.000000e+00> : vector<64x8xf32>
    %93 = tpu.matmul %90, %92, %cst_73 {dimension_numbers = #tpu.dot_dimension_numbers<[1], [0], [0], [1], [0, 0, 1, 1], [], []>} : vector<64x4xf32>, vector<4x8xf32>, vector<64x8xf32> -> vector<64x8xf32>
    %94 = arith.addf %88, %93 : vector<64x8xf32>
    %95 = vector.extract_strided_slice %1 {offsets = [2, 1, 0], sizes = [4, 16, 4], strides = [1, 1, 1]} : vector<6x18x4xf32> to vector<4x16x4xf32>
    %96 = vector.shape_cast %95 : vector<4x16x4xf32> to vector<64x4xf32>
    %c2_74 = arith.constant 2 : index
    %c3_75 = arith.constant 3 : index
    %c0_76 = arith.constant 0 : index
    %c0_77 = arith.constant 0 : index
    %97 = vector.load %arg4[%c2_74, %c3_75, %c0_76, %c0_77] : memref<4x4x4x8xf32, #tpu.memory_space<vmem>>, vector<1x1x4x8xf32>
    %98 = vector.shape_cast %97 : vector<1x1x4x8xf32> to vector<4x8xf32>
    %cst_78 = arith.constant dense<0.000000e+00> : vector<64x8xf32>
    %99 = tpu.matmul %96, %98, %cst_78 {dimension_numbers = #tpu.dot_dimension_numbers<[1], [0], [0], [1], [0, 0, 1, 1], [], []>} : vector<64x4xf32>, vector<4x8xf32>, vector<64x8xf32> -> vector<64x8xf32>
    %100 = arith.addf %94, %99 : vector<64x8xf32>
    %101 = vector.shape_cast %100 : vector<64x8xf32> to vector<4x16x8xf32>
    %c0_79 = arith.constant 0 : index
    %c2_80 = arith.constant 2 : index
    %c0_81 = arith.constant 0 : index
    %c0_82 = arith.constant 0 : index
    %c0_83 = arith.constant 0 : index
    %102 = vector.load %arg5[%c0_79, %c2_80, %c0_81, %c0_82, %c0_83] : memref<1x4x4x16x8xf32, #tpu.memory_space<vmem>>, vector<1x1x4x16x8xf32>
    %103 = vector.shape_cast %102 : vector<1x1x4x16x8xf32> to vector<4x16x8xf32>
    %104 = vector.shape_cast %101 : vector<4x16x8xf32> to vector<1x1x4x16x8xf32>
    tpu.vector_store %arg5[%c0_79, %c2_80, %c0_81, %c0_82, %c0_83], %104 {strides = array<i32>} : memref<1x4x4x16x8xf32, #tpu.memory_space<vmem>>, vector<1x1x4x16x8xf32>,
    %cst_84 = arith.constant dense<0.000000e+00> : vector<8xf32>
    %105 = vector.multi_reduction <add>, %100, %cst_84 [0] : vector<64x8xf32> to vector<8xf32>
    %106 = vector.shape_cast %105 : vector<8xf32> to vector<1x8xf32>
    %107 = arith.addf %71, %106 : vector<1x8xf32>
    %108 = arith.mulf %100, %100 : vector<64x8xf32>
    %cst_85 = arith.constant dense<0.000000e+00> : vector<8xf32>
    %109 = vector.multi_reduction <add>, %108, %cst_85 [0] : vector<64x8xf32> to vector<8xf32>
    %110 = vector.shape_cast %109 : vector<8xf32> to vector<1x8xf32>
    %111 = arith.addf %75, %110 : vector<1x8xf32>
    %cst_86 = arith.constant 0.000000e+00 : f32
    %112 = vector.broadcast %cst_86 : f32 to vector<64x8xf32>
    %113 = vector.extract_strided_slice %1 {offsets = [1, 1, 0], sizes = [4, 16, 4], strides = [1, 1, 1]} : vector<6x18x4xf32> to vector<4x16x4xf32>
    %114 = vector.shape_cast %113 : vector<4x16x4xf32> to vector<64x4xf32>
    %c3_87 = arith.constant 3 : index
    %c0_88 = arith.constant 0 : index
    %c0_89 = arith.constant 0 : index
    %c0_90 = arith.constant 0 : index
    %115 = vector.load %arg4[%c3_87, %c0_88, %c0_89, %c0_90] : memref<4x4x4x8xf32, #tpu.memory_space<vmem>>, vector<1x1x4x8xf32>
    %116 = vector.shape_cast %115 : vector<1x1x4x8xf32> to vector<4x8xf32>
    %cst_91 = arith.constant dense<0.000000e+00> : vector<64x8xf32>
    %117 = tpu.matmul %114, %116, %cst_91 {dimension_numbers = #tpu.dot_dimension_numbers<[1], [0], [0], [1], [0, 0, 1, 1], [], []>} : vector<64x4xf32>, vector<4x8xf32>, vector<64x8xf32> -> vector<64x8xf32>
    %118 = arith.addf %112, %117 : vector<64x8xf32>
    %119 = vector.extract_strided_slice %1 {offsets = [1, 2, 0], sizes = [4, 16, 4], strides = [1, 1, 1]} : vector<6x18x4xf32> to vector<4x16x4xf32>
    %120 = vector.shape_cast %119 : vector<4x16x4xf32> to vector<64x4xf32>
    %c3_92 = arith.constant 3 : index
    %c1_93 = arith.constant 1 : index
    %c0_94 = arith.constant 0 : index
    %c0_95 = arith.constant 0 : index
    %121 = vector.load %arg4[%c3_92, %c1_93, %c0_94, %c0_95] : memref<4x4x4x8xf32, #tpu.memory_space<vmem>>, vector<1x1x4x8xf32>
    %122 = vector.shape_cast %121 : vector<1x1x4x8xf32> to vector<4x8xf32>
    %cst_96 = arith.constant dense<0.000000e+00> : vector<64x8xf32>
    %123 = tpu.matmul %120, %122, %cst_96 {dimension_numbers = #tpu.dot_dimension_numbers<[1], [0], [0], [1], [0, 0, 1, 1], [], []>} : vector<64x4xf32>, vector<4x8xf32>, vector<64x8xf32> -> vector<64x8xf32>
    %124 = arith.addf %118, %123 : vector<64x8xf32>
    %125 = vector.extract_strided_slice %1 {offsets = [2, 1, 0], sizes = [4, 16, 4], strides = [1, 1, 1]} : vector<6x18x4xf32> to vector<4x16x4xf32>
    %126 = vector.shape_cast %125 : vector<4x16x4xf32> to vector<64x4xf32>
    %c3_97 = arith.constant 3 : index
    %c2_98 = arith.constant 2 : index
    %c0_99 = arith.constant 0 : index
    %c0_100 = arith.constant 0 : index
    %127 = vector.load %arg4[%c3_97, %c2_98, %c0_99, %c0_100] : memref<4x4x4x8xf32, #tpu.memory_space<vmem>>, vector<1x1x4x8xf32>
    %128 = vector.shape_cast %127 : vector<1x1x4x8xf32> to vector<4x8xf32>
    %cst_101 = arith.constant dense<0.000000e+00> : vector<64x8xf32>
    %129 = tpu.matmul %126, %128, %cst_101 {dimension_numbers = #tpu.dot_dimension_numbers<[1], [0], [0], [1], [0, 0, 1, 1], [], []>} : vector<64x4xf32>, vector<4x8xf32>, vector<64x8xf32> -> vector<64x8xf32>
    %130 = arith.addf %124, %129 : vector<64x8xf32>
    %131 = vector.extract_strided_slice %1 {offsets = [2, 2, 0], sizes = [4, 16, 4], strides = [1, 1, 1]} : vector<6x18x4xf32> to vector<4x16x4xf32>
    %132 = vector.shape_cast %131 : vector<4x16x4xf32> to vector<64x4xf32>
    %c3_102 = arith.constant 3 : index
    %c3_103 = arith.constant 3 : index
    %c0_104 = arith.constant 0 : index
    %c0_105 = arith.constant 0 : index
    %133 = vector.load %arg4[%c3_102, %c3_103, %c0_104, %c0_105] : memref<4x4x4x8xf32, #tpu.memory_space<vmem>>, vector<1x1x4x8xf32>
    %134 = vector.shape_cast %133 : vector<1x1x4x8xf32> to vector<4x8xf32>
    %cst_106 = arith.constant dense<0.000000e+00> : vector<64x8xf32>
    %135 = tpu.matmul %132, %134, %cst_106 {dimension_numbers = #tpu.dot_dimension_numbers<[1], [0], [0], [1], [0, 0, 1, 1], [], []>} : vector<64x4xf32>, vector<4x8xf32>, vector<64x8xf32> -> vector<64x8xf32>
    %136 = arith.addf %130, %135 : vector<64x8xf32>
    %137 = vector.shape_cast %136 : vector<64x8xf32> to vector<4x16x8xf32>
    %c0_107 = arith.constant 0 : index
    %c3_108 = arith.constant 3 : index
    %c0_109 = arith.constant 0 : index
    %c0_110 = arith.constant 0 : index
    %c0_111 = arith.constant 0 : index
    %138 = vector.load %arg5[%c0_107, %c3_108, %c0_109, %c0_110, %c0_111] : memref<1x4x4x16x8xf32, #tpu.memory_space<vmem>>, vector<1x1x4x16x8xf32>
    %139 = vector.shape_cast %138 : vector<1x1x4x16x8xf32> to vector<4x16x8xf32>
    %140 = vector.shape_cast %137 : vector<4x16x8xf32> to vector<1x1x4x16x8xf32>
    tpu.vector_store %arg5[%c0_107, %c3_108, %c0_109, %c0_110, %c0_111], %140 {strides = array<i32>} : memref<1x4x4x16x8xf32, #tpu.memory_space<vmem>>, vector<1x1x4x16x8xf32>,
    %cst_112 = arith.constant dense<0.000000e+00> : vector<8xf32>
    %141 = vector.multi_reduction <add>, %136, %cst_112 [0] : vector<64x8xf32> to vector<8xf32>
    %142 = vector.shape_cast %141 : vector<8xf32> to vector<1x8xf32>
    %143 = arith.addf %107, %142 : vector<1x8xf32>
    %144 = arith.mulf %136, %136 : vector<64x8xf32>
    %cst_113 = arith.constant dense<0.000000e+00> : vector<8xf32>
    %145 = vector.multi_reduction <add>, %144, %cst_113 [0] : vector<64x8xf32> to vector<8xf32>
    %146 = vector.shape_cast %145 : vector<8xf32> to vector<1x8xf32>
    %147 = arith.addf %111, %146 : vector<1x8xf32>
    %148 = tpu.concatenate %143, %147 in 0 : vector<1x8xf32>, vector<1x8xf32> -> vector<2x8xf32>
    %c0_114 = arith.constant 0 : index
    %c0_115 = arith.constant 0 : index
    %c0_116 = arith.constant 0 : index
    %c0_117 = arith.constant 0 : index
    %c0_118 = arith.constant 0 : index
    %149 = vector.load %arg6[%c0_114, %c0_115, %c0_116, %c0_117, %c0_118] : memref<1x1x1x2x8xf32, #tpu.memory_space<vmem>>, vector<1x1x1x2x8xf32>
    %150 = vector.shape_cast %149 : vector<1x1x1x2x8xf32> to vector<2x8xf32>
    %151 = vector.shape_cast %148 : vector<2x8xf32> to vector<1x1x1x2x8xf32>
    tpu.vector_store %arg6[%c0_114, %c0_115, %c0_116, %c0_117, %c0_118], %151 {strides = array<i32>} : memref<1x1x1x2x8xf32, #tpu.memory_space<vmem>>, vector<1x1x1x2x8xf32>,
    return
  }
  func.func @transform_0(%arg0: i32, %arg1: i32, %arg2: i32) -> (i32, i32, i32, i32, i32) {
    %c0_i32 = arith.constant 0 : i32
    %c0_i32_0 = arith.constant 0 : i32
    %c0_i32_1 = arith.constant 0 : i32
    %c0_i32_2 = arith.constant 0 : i32
    return %arg0, %arg2, %c0_i32, %c0_i32_0, %c0_i32_1 : i32, i32, i32, i32, i32
  }
  func.func @transform_1(%arg0: i32, %arg1: i32, %arg2: i32) -> (i32, i32, i32, i32) {
    %c0_i32 = arith.constant 0 : i32
    %c0_i32_0 = arith.constant 0 : i32
    %c0_i32_1 = arith.constant 0 : i32
    %c0_i32_2 = arith.constant 0 : i32
    return %c0_i32, %c0_i32_0, %c0_i32_1, %arg1 : i32, i32, i32, i32
  }
  func.func @transform_2(%arg0: i32, %arg1: i32, %arg2: i32) -> (i32, i32, i32, i32, i32) {
    %c0_i32 = arith.constant 0 : i32
    %c0_i32_0 = arith.constant 0 : i32
    %c0_i32_1 = arith.constant 0 : i32
    return %arg0, %c0_i32, %arg2, %c0_i32_0, %arg1 : i32, i32, i32, i32, i32
  }
  func.func @transform_3(%arg0: i32, %arg1: i32, %arg2: i32) -> (i32, i32, i32, i32, i32) {
    %c0_i32 = arith.constant 0 : i32
    %c0_i32_0 = arith.constant 0 : i32
    %c0_i32_1 = arith.constant 0 : i32
    return %arg0, %arg1, %arg2, %c0_i32, %c0_i32_0 : i32, i32, i32, i32, i32
  }
}

</mosaic_0001>

<bundles_post_ra>
// kernel: tpu_custom_call.1
= control target key start
LH: loop header
LB: loop body
LE: loop exit
PB: predicated region body
PF: predicated region fallthrough
CT: control target
= control target key end

     0   :  { %9 = vsyncpa [#allocation4], 0  ;;  %s4480_s0 = inlined_call_operand.vmem [shape: f32[2,4,6,18,4], index: 0, kind: input, shape index: {}]   ;;  %s4481_s1 = inlined_call_operand.vmem [shape: f32[4,4,4,8], index: 1, kind: input, shape index: {}]   ;;  %s4482_s2 = inlined_call_operand.vmem [shape: f32[2,4,16,16,8], index: 2, kind: output, shape index: {0}]   ;;  %s4483_s3 = inlined_call_operand.hbm [shape: f32[2,1,4,2,8], index: 3, kind: output, shape index: {1}]  }
   0x1   :  { %11 = vsyncpa [#allocation4 + $0x1], 0  ;;  %s3656_s12 = smov 0   ;;  %s3658_s13 = smov 0  }
   0x2   :  { %s3660_s14 = smov 0   ;;  %s3662_s15 = smov 0  }
   0x3   :  { %s3664_s16 = smov 0   ;;  %s3666_s17 = smov 0  }
   0x4   :  { %s3668_s18 = smov 0   ;;  %s3670_s19 = smov 0  }
   0x5 LB: > { %s2799_s20 = sadd.s32 4294967295, %s3633_s19   ;;  %s2800_s21 = sadd.s32 4294967294, %s3633_s19   ;;  %s3633_s19 = sphi %s3670_s19, %s17_s19   ;;  %s3629_s18 = sphi %s3668_s18, %s4492_s18   ;;  %s3625_s17 = sphi %s3666_s17, %s4491_s17   ;;  %s3621_s16 = sphi %s3664_s16, %s4490_s16   ;;  %s3617_s15 = sphi %s3662_s15, %s4489_s15   ;;  %s3613_s14 = sphi %s3660_s14, %s4488_s14   ;;  %s3609_s13 = sphi %s3658_s13, %s4487_s13   ;;  %s3605_s12 = sphi %s3656_s12, %s4486_s12  }
   0x6   : > { %s29_s22 = sadd.s32 1, %s3625_s17  ;;  %s36_s23 = sadd.s32 1, %s3629_s18 }
   0x7   : > { %p30_p0 = scmp.ge.s32.totalorder %s29_s22, 4  ;;  %p111_p1 = scmp.ne.s32.totalorder %s3613_s14, %s3609_s13 }
   0x8   : > { %p112_p2 = scmp.eq.s32.totalorder %s2799_s20, 7  ;;  %p147_p5 = scmp.ne.s32.totalorder %s3609_s13, %s3605_s12 }
   0x9   : > { %s4494_s22 = smov (%p30_p0, %s29_s22), 0  ;;  %s4496_s23 = smov (!%p30_p0, %s36_s23), %s3629_s18 }
   0xa   : > { %s95_s24 = ssub.s32 %s3625_s17, %s4494_s22  ;;  %p3707_p3 = por %p112_p2, %p111_p1 }
   0xb   : > { %p38_p4 = scmp.ge.s32.totalorder %s4496_s23, 2  ;;  %p148_p6 = scmp.eq.s32.totalorder %s2800_s21, 7 }
   0xc   : > { %p2804_p7 = scmp.ge.s32.totalorder %s3633_s19, 1  ;;  %p185_p9 = scmp.lt.s32.totalorder %s3633_s19, 9 }
   0xd   : > { %s4498_s23 = smov (%p38_p4, %s4496_s23), 0  ;;  %p3716_p8 = por %p148_p6, %p147_p5 }
   0xe   : > { %s94_s27 = ssub.s32 %s3629_s18, %s4498_s23  ;;  %s101_s28 = sadd.s32 1, %s3613_s14 }
   0xf   : > { %s96_s29 = sor.u32 %s95_s24, %s94_s27  ;;  %p186_p10 = pnand %p2804_p7, %p185_p9 }
  0x10   : > { %p99_p11 = scmp.eq.s32.totalorder %s96_s29, 0  ;;  %v2808_v0 = vld [vmem:[%s4481_s1 + $0x4] sm:$0xf] (!%p186_p10)  ;;  %vm306_vm0 = vcmask (!%p186_p10), 1043456   ;;  %v2848_v1 = vld [vmem:[%s4481_s1 + $0x14] sm:$0xf] (!%p186_p10) }
  0x11   : > { %189 = sbr.rel (%p186_p10) target bundleno = 425 (0x1a9), region = 28  ;;  %p221_p12 = scmp.lt.s32.totalorder (!%p186_p10), %s3621_s16, 1  ;;  %3146 = vmatprep.subr.msk.mxu0 (!%p186_p10), %vm306_vm0, %v2808_v0  ;;  %3202 = vmatprep.subr.msk.mxu1 (!%p186_p10), %vm306_vm0, %v2848_v1  ;;  %v253_v2 = vld [vmem:[%s4481_s1] sm:$0xf] (!%p186_p10)  ;;  %v2847_v3 = vld [vmem:[%s4481_s1 + $0x10] sm:$0xf] (!%p186_p10) }
  0x12   : > { %s3725_s30 = scalar_select %p99_p11, %s3613_s14, %s101_s28  }
  0x13   : > { %p223_p13 = scmp.lt.s32.totalorder (!%p186_p10), %s3617_s15, 3  ;;  %3147 = vmatpush3.msk.msra.mxu0 (!%p186_p10), %vm306_vm0, %v2808_v0  ;;  %3203 = vmatpush3.msk.msra.mxu1 (!%p186_p10), %vm306_vm0, %v2848_v1  ;;  %vm266_vm1 = vcmask (!%p186_p10), 1046528   ;;  %vm289_vm2 = vcmask (!%p186_p10), 31744   ;;  %vm854_vm3 = vcmask (!%p186_p10), 1045504   ;;  %v3803_v30 = vld [vmem:[%s4481_s1 + $0x8] sm:$0xf] (!%p186_p10) }
  0x14   : > { %3160 = vmatprep.subr.msk.mxu0 (!%p186_p10), %vm306_vm0, %v253_v2  ;;  %3216 = vmatprep.subr.msk.mxu1 (!%p186_p10), %vm306_vm0, %v2847_v3  ;;  %v2867_v36 = vld [vmem:[%s4481_s1 + $0x18] sm:$0xf] (!%p186_p10)  ;;  %vm791_vm4 = vcmask (!%p186_p10), 64512   ;;  %vm2474_vm5 = vcmask (!%p186_p10), 1040384   ;;  %vm2476_vm6 = vcmask (!%p186_p10), 58368  }
  0x18   : > { %s222_s10 = scalar_select %p221_p12, %s3621_s16, 1 }
  0x19   : > { %s224_s21 = scalar_select %p223_p13, %s3617_s15, 3 }
  0x1a   : > { %s3467_s24 = smul.u32 72, %s222_s10  ;;  %s3001_s9 = sshll.u32 (%p3707_p3), %s3617_s15, 3 }
  0x1b   : > { %s3466_s27 = smul.u32 18, %s224_s21  ;;  %s2995_s10 = sshll.u32 (%p3707_p3), %s3621_s16, 7 }
  0x1c   : > { %s2494_s11 = sadd.s32 (%p3707_p3), %s3001_s9, %s2995_s10 }
  0x1d   : > { %s227_s28 = sadd.s32 %s3467_s24, %s3466_s27  ;;  %s2996_s20 = sshll.u32 (%p3707_p3), %s2494_s11, 3 }
  0x1e   : > { %s2807_s29 = sshll.u32 %s227_s28, 3  ;;  %s4369_s27 = scalar_lea.vmem (%p3707_p3), %s4482_s2, %s2996_s20 }
  0x1f   : > { %s3752_s6 = scalar_lea.vmem %s4480_s0, %s2807_s29  ;;  %s4209_s29 = sand.u32 1, %s3609_s13  }
  0x20   : > { %v3755_v4 = vld [vmem:[%s3752_s6] sm:$0xff]  ;;  %v3758_v5 = vld [vmem:[%s3752_s6 + $0x8] sm:$0xff]  ;;  %v237_v6 = vld [vmem:[%s3752_s6 + $0x10] sm:$0x3]  ;;  %s2805_s4 = sshll.u32 %s4209_s29, 8  ;;  %s2483_s8 = scalar_lea.sflag [#allocation4], %s4209_s29 }
  0x21   : > { %v267_v7 = vrot.slane %v3755_v4, 1  ;;  %v268_v8 = vrot.slane %v3758_v5, 1  ;;  %v855_v9 = vrot.slane %v3755_v4, 2  ;;  %v856_v10 = vrot.slane %v3758_v5, 2  ;;  %v3766_v11 = vld [vmem:[%s3752_s6 + $0x18] sm:$0xff]  ;;  %v3769_v12 = vld [vmem:[%s3752_s6 + $0x20] sm:$0xff] }
  0x22   : > { %v270_v13 = vrot.slane %v237_v6, 1  ;;  %v858_v14 = vrot.slane %v237_v6, 2  ;;  %v272_v15 = vrot.slane %v3766_v11, 1  ;;  %v273_v16 = vrot.slane %v3769_v12, 1  ;;  %v240_v17 = vld [vmem:[%s3752_s6 + $0x28] sm:$0x3] }
  0x23   : > { %v3775_v18 = vsel %vm266_vm1, %v267_v7, %v268_v8  ;;  %v857_v19 = vsel %vm854_vm3, %v855_v9, %v856_v10  ;;  %v860_v20 = vrot.slane %v3766_v11, 2  ;;  %v861_v21 = vrot.slane %v3769_v12, 2  ;;  %v3781_v22 = vld [vmem:[%s3752_s6 + $0x30] sm:$0xff]  ;;  %v3784_v23 = vld [vmem:[%s3752_s6 + $0x38] sm:$0xff]  ;;  %v243_v24 = vld [vmem:[%s3752_s6 + $0x40] sm:$0x3] }
  0x24   : > { %3148 = vmatprep.mubr.msk.f32.mxu0 %vm289_vm2, %v3775_v18  ;;  %3204 = vmatprep.mubr.msk.f32.mxu1 %vm289_vm2, %v857_v19  ;;  %v3791_v25 = vsel %vm266_vm1, %v268_v8, %v270_v13  ;;  %v859_v26 = vsel %vm854_vm3, %v856_v10, %v858_v14  ;;  %v3795_v27 = vsel %vm266_vm1, %v272_v15, %v273_v16  ;;  %v275_v28 = vrot.slane %v240_v17, 1  ;;  %v3798_v29 = vld [vmem:[%s3752_s6 + $0x48] sm:$0xff]  ;;  %v3814_v35 = vld [vmem:[%s3752_s6 + $0x50] sm:$0xff]  ;;  %v246_v45 = vld [vmem:[%s3752_s6 + $0x58] sm:$0x3]  ;;  %s4212_s5 = scalar_lea.vmem [#allocation2], %s2805_s4 }
  0x25   : > { %3149 = vmatmul.mubr.msk.f32.vlgmr.msra.gmra.mrb[0].mxu0 %vm289_vm2, %v3791_v25  ;;  %3205 = vmatmul.mubr.msk.f32.vlgmr.msra.gmra.mrb[0].mxu1 %vm289_vm2, %v859_v26  ;;  %v3809_v31 = vsel %vm854_vm3, %v860_v20, %v861_v21  ;;  %v863_v32 = vrot.slane %v240_v17, 2  ;;  %v277_v33 = vrot.slane %v3781_v22, 1  ;;  %v278_v34 = vrot.slane %v3784_v23, 1  ;;  %v3862_v54 = vld [vmem:[%s3752_s6 + $0x78] sm:$0xff]  ;;  %v3865_v55 = vld [vmem:[%s3752_s6 + $0x80] sm:$0xff] }
  0x26   : > { %3161 = vmatpush3.msk.msra.mxu0 %vm306_vm0, %v253_v2  ;;  %3217 = vmatpush3.msk.msra.mxu1 %vm306_vm0, %v2847_v3  ;;  %v3822_v37 = vsel %vm266_vm1, %v273_v16, %v275_v28  ;;  %v865_v38 = vrot.slane %v3781_v22, 2  ;;  %v866_v39 = vrot.slane %v3784_v23, 2  ;;  %v280_v40 = vrot.slane %v243_v24, 1  ;;  %v252_v56 = vld [vmem:[%s3752_s6 + $0x88] sm:$0x3] }
  0x27   : > { %3151 = vmatprep.mubr.msk.f32.mxu0 %vm289_vm2, %v3795_v27  ;;  %3207 = vmatprep.mubr.msk.f32.mxu1 %vm289_vm2, %v3809_v31  ;;  %v3831_v41 = vsel %vm854_vm3, %v861_v21, %v863_v32  ;;  %v3834_v42 = vsel %vm266_vm1, %v277_v33, %v278_v34  ;;  %v868_v43 = vrot.slane %v243_v24, 2  ;;  %v282_v44 = vrot.slane %v3798_v29, 1  ;;  %v2837_v9 = vld [vmem:[%s4481_s1 + $0xc] sm:$0xf]  ;;  %v2877_v10 = vld [vmem:[%s4481_s1 + $0x1c] sm:$0xf] }
  0x28   : > { %v3839_v46 = vsel %vm854_vm3, %v865_v38, %v866_v39  ;;  %v283_v47 = vrot.slane %v3814_v35, 1  ;;  %v870_v48 = vrot.slane %v3798_v29, 2  ;;  %3174 = vmatprep.subr.msk.mxu0 %vm306_vm0, %v3803_v30  ;;  %3230 = vmatprep.subr.msk.mxu1 %vm306_vm0, %v2867_v36  ;;  %v871_v49 = vrot.slane %v3814_v35, 2  ;;  %v2896_v13 = vld [vmem:[%s4481_s1 + $0x24] sm:$0xf] }
  0x29   : > { %3152 = vmatmul.mubr.msk.f32.gmra.mrb[2].mxu0 %vm289_vm2, %v3822_v37  ;;  %3208 = vmatmul.mubr.msk.f32.gmra.mrb[2].mxu1 %vm289_vm2, %v3831_v41  ;;  %v3856_v50 = vsel %vm266_vm1, %v278_v34, %v280_v40  ;;  %v3859_v51 = vsel %vm854_vm3, %v866_v39, %v868_v43  ;;  %v285_v52 = vrot.slane %v246_v45, 1  ;;  %v873_v53 = vrot.slane %v246_v45, 2  ;;  %v2944_v14 = vld [vmem:[%s4481_s1 + $0x34] sm:$0xf]  ;;  %v249_v17 = vld [vmem:[%s3752_s6 + $0x70] sm:$0x3] }
  0x2a   : > { %3154 = vmatprep.mubr.msk.f32.mxu0 %vm289_vm2, %v3834_v42  ;;  %3210 = vmatprep.mubr.msk.f32.mxu1 %vm289_vm2, %v3839_v46  ;;  %v3869_v57 = vsel %vm266_vm1, %v282_v44, %v283_v47  ;;  %v3872_v58 = vsel %vm854_vm3, %v870_v48, %v871_v49  ;;  %v1760_v59 = vrot.slane %v3862_v54, 1  ;;  %v2286_v60 = vrot.slane %v3862_v54, 2  ;;  %v2895_v21 = vld [vmem:[%s4481_s1 + $0x20] sm:$0xf]  ;;  %v2943_v24 = vld [vmem:[%s4481_s1 + $0x30] sm:$0xf] }
  0x2b   : > { %v1761_v61 = vrot.slane %v3865_v55, 1  ;;  %v1763_v62 = vrot.slane %v252_v56, 1  ;;  %v3886_v63 = vsel %vm266_vm1, %v283_v47, %v285_v52  ;;  %v3889_v0 = vsel %vm854_vm3, %v871_v49, %v873_v53  ;;  %v2915_v33 = vld [vmem:[%s4481_s1 + $0x28] sm:$0xf]  ;;  %v2963_v34 = vld [vmem:[%s4481_s1 + $0x38] sm:$0xf] }
  0x2c   : > { %v2287_v1 = vrot.slane %v3865_v55, 2  ;;  %v2289_v2 = vrot.slane %v252_v56, 2  ;;  %v1230_v28 = vrot.slane %v249_v17, 2 }
  0x2d   : > { %3155 = vmatmul.mubr.msk.f32.gmra.mrb[4].mxu0 %vm289_vm2, %v3856_v50  ;;  %3211 = vmatmul.mubr.msk.f32.gmra.mrb[4].mxu1 %vm289_vm2, %v3859_v51  ;;  %v3893_v3 = vsel %vm266_vm1, %v1760_v59, %v1761_v61  ;;  %v3896_v6 = vsel %vm266_vm1, %v1761_v61, %v1763_v62 }
  0x2e   : > { %3157 = vmatprep.mubr.msk.f32.mxu0 %vm289_vm2, %v3869_v57  ;;  %3213 = vmatprep.mubr.msk.f32.mxu1 %vm289_vm2, %v3872_v58  ;;  %v3899_v7 = vsel %vm854_vm3, %v2286_v60, %v2287_v1  ;;  %v3902_v8 = vsel %vm854_vm3, %v2287_v1, %v2289_v2 }
  0x31   : > { %3158 = vmatmul.mubr.msk.f32.gmra.mrb[6].mxu0 %vm289_vm2, %v3886_v63  ;;  %3214 = vmatmul.mubr.msk.f32.gmra.mrb[6].mxu1 %vm289_vm2, %v3889_v0 }
  0x32   : > { %3162 = vmatprep.mubr.msk.f32.mxu0 %vm289_vm2, %v3755_v4  ;;  %3218 = vmatprep.mubr.msk.f32.mxu1 %vm289_vm2, %v3775_v18  ;;  %v3956_v4 = vld [vmem:[%s3752_s6 + $0x60] sm:$0xff]  ;;  %v667_v18 = vrot.slane %v249_v17, 1 }
  0x33   : > { %v664_v15 = vrot.slane %v3956_v4, 1 }
  0x35   : > { %3163 = vmatmul.mubr.msk.f32.vlgmr.msra.gmra.mrb[0].mxu0 %vm289_vm2, %v3758_v5  ;;  %3219 = vmatmul.mubr.msk.f32.vlgmr.msra.gmra.mrb[0].mxu1 %vm289_vm2, %v3791_v25  ;;  %v3959_v5 = vld [vmem:[%s3752_s6 + $0x68] sm:$0xff]  ;;  %v1227_v25 = vrot.slane %v3956_v4, 2  ;;  %s2806_s6 = sshll.u32 %s4209_s29, 1 }
  0x36   : > { %3175 = vmatpush3.msk.msra.mxu0 %vm306_vm0, %v3803_v30  ;;  %3231 = vmatpush3.msk.msra.mxu1 %vm306_vm0, %v2867_v36  ;;  %v665_v16 = vrot.slane %v3959_v5, 1  ;;  %v1228_v26 = vrot.slane %v3959_v5, 2  ;;  %v2973_v36 = vld [vmem:[%s4481_s1 + $0x3c] sm:$0xf]  ;;  %s4349_s7 = scalar_lea.vmem [#allocation3], %s2806_s6 }
  0x37   : > { %3165 = vmatprep.mubr.msk.f32.mxu0 %vm289_vm2, %v3766_v11  ;;  %3221 = vmatprep.mubr.msk.f32.mxu1 %vm289_vm2, %v3795_v27 }
  0x38   : > { %3188 = vmatprep.subr.msk.mxu0 %vm306_vm0, %v2837_v9  ;;  %3244 = vmatprep.subr.msk.mxu1 %vm306_vm0, %v2877_v10  ;;  %v3991_v19 = vsel %vm266_vm1, %v664_v15, %v665_v16  ;;  %v4002_v20 = vsel %vm266_vm1, %v665_v16, %v667_v18  ;;  %v4041_v30 = vsel %vm854_vm3, %v1227_v25, %v1228_v26 }
  0x39   : > { %3166 = vmatmul.mubr.msk.f32.gmra.mrb[2].mxu0 %vm289_vm2, %v3769_v12  ;;  %3222 = vmatmul.mubr.msk.f32.gmra.mrb[2].mxu1 %vm289_vm2, %v3822_v37  ;;  %v4052_v32 = vsel %vm854_vm3, %v1228_v26, %v1230_v28 }
  0x3a   : > { %3168 = vmatprep.mubr.msk.f32.mxu0 %vm289_vm2, %v3781_v22  ;;  %3224 = vmatprep.mubr.msk.f32.mxu1 %vm289_vm2, %v3834_v42 }
  0x3d   : > { %3169 = vmatmul.mubr.msk.f32.gmra.mrb[4].mxu0 %vm289_vm2, %v3784_v23  ;;  %3225 = vmatmul.mubr.msk.f32.gmra.mrb[4].mxu1 %vm289_vm2, %v3856_v50 }
  0x3e   : > { %3171 = vmatprep.mubr.msk.f32.mxu0 %vm289_vm2, %v3798_v29  ;;  %3227 = vmatprep.mubr.msk.f32.mxu1 %vm289_vm2, %v3869_v57 }
  0x41   : > { %3172 = vmatmul.mubr.msk.f32.gmra.mrb[6].mxu0 %vm289_vm2, %v3814_v35  ;;  %3228 = vmatmul.mubr.msk.f32.gmra.mrb[6].mxu1 %vm289_vm2, %v3886_v63 }
  0x42   : > { %3176 = vmatprep.mubr.msk.f32.mxu0 %vm289_vm2, %v3766_v11  ;;  %3232 = vmatprep.mubr.msk.f32.mxu1 %vm289_vm2, %v3795_v27 }
  0x45   : > { %3177 = vmatmul.mubr.msk.f32.vlgmr.msra.gmra.mrb[0].mxu0 %vm289_vm2, %v3769_v12  ;;  %3233 = vmatmul.mubr.msk.f32.vlgmr.msra.gmra.mrb[0].mxu1 %vm289_vm2, %v3822_v37 }
  0x46   : > { %3189 = vmatpush3.msk.msra.mxu0 %vm306_vm0, %v2837_v9  ;;  %3245 = vmatpush3.msk.msra.mxu1 %vm306_vm0, %v2877_v10 }
  0x47   : > { %3179 = vmatprep.mubr.msk.f32.mxu0 %vm289_vm2, %v3781_v22  ;;  %3235 = vmatprep.mubr.msk.f32.mxu1 %vm289_vm2, %v3834_v42 }
  0x48   : > { %3258 = vmatprep.subr.msk.mxu0 %vm306_vm0, %v2896_v13  ;;  %3314 = vmatprep.subr.msk.mxu1 %vm306_vm0, %v2944_v14 }
  0x49   : > { %3180 = vmatmul.mubr.msk.f32.gmra.mrb[2].mxu0 %vm289_vm2, %v3784_v23  ;;  %3236 = vmatmul.mubr.msk.f32.gmra.mrb[2].mxu1 %vm289_vm2, %v3856_v50 }
  0x4a   : > { %3182 = vmatprep.mubr.msk.f32.mxu0 %vm289_vm2, %v3798_v29  ;;  %3238 = vmatprep.mubr.msk.f32.mxu1 %vm289_vm2, %v3869_v57 }
  0x4d   : > { %3183 = vmatmul.mubr.msk.f32.gmra.mrb[4].mxu0 %vm289_vm2, %v3814_v35  ;;  %3239 = vmatmul.mubr.msk.f32.gmra.mrb[4].mxu1 %vm289_vm2, %v3886_v63 }
  0x4e   : > { %3185 = vmatprep.mubr.msk.f32.mxu0 %vm289_vm2, %v3956_v4  ;;  %3241 = vmatprep.mubr.msk.f32.mxu1 %vm289_vm2, %v3991_v19 }
  0x51   : > { %3186 = vmatmul.mubr.msk.f32.gmra.mrb[6].mxu0 %vm289_vm2, %v3959_v5  ;;  %3242 = vmatmul.mubr.msk.f32.gmra.mrb[6].mxu1 %vm289_vm2, %v4002_v20 }
  0x52   : > { %3190 = vmatprep.mubr.msk.f32.mxu0 %vm289_vm2, %v3795_v27  ;;  %3246 = vmatprep.mubr.msk.f32.mxu1 %vm289_vm2, %v3809_v31 }
  0x55   : > { %3191 = vmatmul.mubr.msk.f32.vlgmr.msra.gmra.mrb[0].mxu0 %vm289_vm2, %v3822_v37  ;;  %3247 = vmatmul.mubr.msk.f32.vlgmr.msra.gmra.mrb[0].mxu1 %vm289_vm2, %v3831_v41 }
  0x56   : > { %3259 = vmatpush3.msk.msra.mxu0 %vm306_vm0, %v2896_v13  ;;  %3315 = vmatpush3.msk.msra.mxu1 %vm306_vm0, %v2944_v14 }
  0x57   : > { %3193 = vmatprep.mubr.msk.f32.mxu0 %vm289_vm2, %v3834_v42  ;;  %3249 = vmatprep.mubr.msk.f32.mxu1 %vm289_vm2, %v3839_v46 }
  0x58   : > { %3272 = vmatprep.subr.msk.mxu0 %vm306_vm0, %v2895_v21  ;;  %3328 = vmatprep.subr.msk.mxu1 %vm306_vm0, %v2943_v24 }
  0x59   : > { %3194 = vmatmul.mubr.msk.f32.gmra.mrb[2].mxu0 %vm289_vm2, %v3856_v50  ;;  %3250 = vmatmul.mubr.msk.f32.gmra.mrb[2].mxu1 %vm289_vm2, %v3859_v51 }
  0x5a   : > { %3196 = vmatprep.mubr.msk.f32.mxu0 %vm289_vm2, %v3869_v57  ;;  %3252 = vmatprep.mubr.msk.f32.mxu1 %vm289_vm2, %v3872_v58 }
  0x5d   : > { %3197 = vmatmul.mubr.msk.f32.gmra.mrb[4].mxu0 %vm289_vm2, %v3886_v63  ;;  %3253 = vmatmul.mubr.msk.f32.gmra.mrb[4].mxu1 %vm289_vm2, %v3889_v0 }
  0x5e   : > { %3199 = vmatprep.mubr.msk.f32.mxu0 %vm289_vm2, %v3991_v19  ;;  %3255 = vmatprep.mubr.msk.f32.mxu1 %vm289_vm2, %v4041_v30 }
  0x61   : > { %3200 = vmatmul.mubr.msk.f32.gmra.mrb[6].mxu0 %vm289_vm2, %v4002_v20  ;;  %3256 = vmatmul.mubr.msk.f32.gmra.mrb[6].mxu1 %vm289_vm2, %v4052_v32 }
  0x62   : > { %3260 = vmatprep.mubr.msk.f32.mxu0 %vm289_vm2, %v3795_v27  ;;  %3316 = vmatprep.mubr.msk.f32.mxu1 %vm289_vm2, %v3809_v31  ;;  %v2925_v31 = vld [vmem:[%s4481_s1 + $0x2c] sm:$0xf] }
  0x65   : > { %3261 = vmatmul.mubr.msk.f32.vlgmr.msra.gmra.mrb[8].mxu0 %vm289_vm2, %v3822_v37  ;;  %3317 = vmatmul.mubr.msk.f32.vlgmr.msra.gmra.mrb[8].mxu1 %vm289_vm2, %v3831_v41 }
  0x66   : > { %3273 = vmatpush3.msk.msra.mxu0 %vm306_vm0, %v2895_v21  ;;  %3329 = vmatpush3.msk.msra.mxu1 %vm306_vm0, %v2943_v24 }
  0x67   : > { %3263 = vmatprep.mubr.msk.f32.mxu0 %vm289_vm2, %v3834_v42  ;;  %3319 = vmatprep.mubr.msk.f32.mxu1 %vm289_vm2, %v3839_v46 }
  0x68   : > { %3286 = vmatprep.subr.msk.mxu0 %vm306_vm0, %v2915_v33  ;;  %3342 = vmatprep.subr.msk.mxu1 %vm306_vm0, %v2963_v34 }
  0x69   : > { %3264 = vmatmul.mubr.msk.f32.gmra.mrb[10].mxu0 %vm289_vm2, %v3856_v50  ;;  %3320 = vmatmul.mubr.msk.f32.gmra.mrb[10].mxu1 %vm289_vm2, %v3859_v51 }
  0x6a   : > { %3266 = vmatprep.mubr.msk.f32.mxu0 %vm289_vm2, %v3869_v57  ;;  %3322 = vmatprep.mubr.msk.f32.mxu1 %vm289_vm2, %v3872_v58 }
  0x6d   : > { %3267 = vmatmul.mubr.msk.f32.gmra.mrb[12].mxu0 %vm289_vm2, %v3886_v63  ;;  %3323 = vmatmul.mubr.msk.f32.gmra.mrb[12].mxu1 %vm289_vm2, %v3889_v0 }
  0x6e   : > { %3269 = vmatprep.mubr.msk.f32.mxu0 %vm289_vm2, %v3991_v19  ;;  %3325 = vmatprep.mubr.msk.f32.mxu1 %vm289_vm2, %v4041_v30 }
  0x71   : > { %3270 = vmatmul.mubr.msk.f32.gmra.mrb[14].mxu0 %vm289_vm2, %v4002_v20  ;;  %3326 = vmatmul.mubr.msk.f32.gmra.mrb[14].mxu1 %vm289_vm2, %v4052_v32 }
  0x72   : > { %3274 = vmatprep.mubr.msk.f32.mxu0 %vm289_vm2, %v3766_v11  ;;  %3330 = vmatprep.mubr.msk.f32.mxu1 %vm289_vm2, %v3795_v27 }
  0x75   : > { %3275 = vmatmul.mubr.msk.f32.vlgmr.msra.gmra.mrb[8].mxu0 %vm289_vm2, %v3769_v12  ;;  %3331 = vmatmul.mubr.msk.f32.vlgmr.msra.gmra.mrb[8].mxu1 %vm289_vm2, %v3822_v37 }
  0x76   : > { %3287 = vmatpush3.msk.msra.mxu0 %vm306_vm0, %v2915_v33  ;;  %3343 = vmatpush3.msk.msra.mxu1 %vm306_vm0, %v2963_v34 }
  0x77   : > { %3277 = vmatprep.mubr.msk.f32.mxu0 %vm289_vm2, %v3781_v22  ;;  %3333 = vmatprep.mubr.msk.f32.mxu1 %vm289_vm2, %v3834_v42 }
  0x78   : > { %3300 = vmatprep.subr.msk.mxu0 %vm306_vm0, %v2925_v31  ;;  %3356 = vmatprep.subr.msk.mxu1 %vm306_vm0, %v2973_v36 }
  0x79   : > { %3278 = vmatmul.mubr.msk.f32.gmra.mrb[10].mxu0 %vm289_vm2, %v3784_v23  ;;  %3334 = vmatmul.mubr.msk.f32.gmra.mrb[10].mxu1 %vm289_vm2, %v3856_v50 }
  0x7a   : > { %3280 = vmatprep.mubr.msk.f32.mxu0 %vm289_vm2, %v3798_v29  ;;  %3336 = vmatprep.mubr.msk.f32.mxu1 %vm289_vm2, %v3869_v57 }
  0x7d   : > { %3281 = vmatmul.mubr.msk.f32.gmra.mrb[12].mxu0 %vm289_vm2, %v3814_v35  ;;  %3337 = vmatmul.mubr.msk.f32.gmra.mrb[12].mxu1 %vm289_vm2, %v3886_v63 }
  0x7e   : > { %3283 = vmatprep.mubr.msk.f32.mxu0 %vm289_vm2, %v3956_v4  ;;  %3339 = vmatprep.mubr.msk.f32.mxu1 %vm289_vm2, %v3991_v19 }
  0x81   : > { %3284 = vmatmul.mubr.msk.f32.gmra.mrb[14].mxu0 %vm289_vm2, %v3959_v5  ;;  %3340 = vmatmul.mubr.msk.f32.gmra.mrb[14].mxu1 %vm289_vm2, %v4002_v20 }
  0x82   : > { %3288 = vmatprep.mubr.msk.f32.mxu0 %vm289_vm2, %v3781_v22  ;;  %3344 = vmatprep.mubr.msk.f32.mxu1 %vm289_vm2, %v3834_v42 }
  0x85   : > { %3289 = vmatmul.mubr.msk.f32.vlgmr.msra.gmra.mrb[8].mxu0 %vm289_vm2, %v3784_v23  ;;  %3345 = vmatmul.mubr.msk.f32.vlgmr.msra.gmra.mrb[8].mxu1 %vm289_vm2, %v3856_v50 }
  0x86   : > { %3301 = vmatpush3.msk.msra.mxu0 %vm306_vm0, %v2925_v31  ;;  %3357 = vmatpush3.msk.msra.mxu1 %vm306_vm0, %v2973_v36 }
  0x87   : > { %3291 = vmatprep.mubr.msk.f32.mxu0 %vm289_vm2, %v3798_v29  ;;  %3347 = vmatprep.mubr.msk.f32.mxu1 %vm289_vm2, %v3869_v57 }
  0x89   : > { %3292 = vmatmul.mubr.msk.f32.gmra.mrb[10].mxu0 %vm289_vm2, %v3814_v35  ;;  %3348 = vmatmul.mubr.msk.f32.gmra.mrb[10].mxu1 %vm289_vm2, %v3886_v63 }
  0x8a   : > { %3294 = vmatprep.mubr.msk.f32.mxu0 %vm289_vm2, %v3956_v4  ;;  %3350 = vmatprep.mubr.msk.f32.mxu1 %vm289_vm2, %v3991_v19 }
  0x8d   : > { %3295 = vmatmul.mubr.msk.f32.gmra.mrb[12].mxu0 %vm289_vm2, %v3959_v5  ;;  %3351 = vmatmul.mubr.msk.f32.gmra.mrb[12].mxu1 %vm289_vm2, %v4002_v20 }
  0x8e   : > { %3297 = vmatprep.mubr.msk.f32.mxu0 %vm289_vm2, %v3862_v54  ;;  %3353 = vmatprep.mubr.msk.f32.mxu1 %vm289_vm2, %v3893_v3 }
  0x91   : > { %3298 = vmatmul.mubr.msk.f32.gmra.mrb[14].mxu0 %vm289_vm2, %v3865_v55  ;;  %3354 = vmatmul.mubr.msk.f32.gmra.mrb[14].mxu1 %vm289_vm2, %v3896_v6 }
  0x92   : > { %3302 = vmatprep.mubr.msk.f32.mxu0 %vm289_vm2, %v3834_v42  ;;  %3358 = vmatprep.mubr.msk.f32.mxu1 %vm289_vm2, %v3839_v46 }
  0x95   : > { %3303 = vmatmul.mubr.msk.f32.vlgmr.msra.gmra.mrb[8].mxu0 %vm289_vm2, %v3856_v50  ;;  %3359 = vmatmul.mubr.msk.f32.vlgmr.msra.gmra.mrb[8].mxu1 %vm289_vm2, %v3859_v51 }
  0x96   : > { %3305 = vmatprep.mubr.msk.f32.mxu0 %vm289_vm2, %v3869_v57  ;;  %3361 = vmatprep.mubr.msk.f32.mxu1 %vm289_vm2, %v3872_v58 }
  0x99   : > { %3306 = vmatmul.mubr.msk.f32.gmra.mrb[10].mxu0 %vm289_vm2, %v3886_v63  ;;  %3362 = vmatmul.mubr.msk.f32.gmra.mrb[10].mxu1 %vm289_vm2, %v3889_v0 }
  0x9a   : > { %3308 = vmatprep.mubr.msk.f32.mxu0 %vm289_vm2, %v3991_v19  ;;  %3364 = vmatprep.mubr.msk.f32.mxu1 %vm289_vm2, %v4041_v30 }
  0x9d   : > { %3309 = vmatmul.mubr.msk.f32.gmra.mrb[12].mxu0 %vm289_vm2, %v4002_v20  ;;  %3365 = vmatmul.mubr.msk.f32.gmra.mrb[12].mxu1 %vm289_vm2, %v4052_v32 }
  0x9e   : > { %3311 = vmatprep.mubr.msk.f32.mxu0 %vm289_vm2, %v3893_v3  ;;  %3367 = vmatprep.mubr.msk.f32.mxu1 %vm289_vm2, %v3899_v7 }
  0xa1   : > { %3312 = vmatmul.mubr.msk.f32.gmra.mrb[14].mxu0 %vm289_vm2, %v3896_v6  ;;  %3368 = vmatmul.mubr.msk.f32.gmra.mrb[14].mxu1 %vm289_vm2, %v3902_v8 }
 0x128   : > { %v3192_v11 = vpop.f32.mrb[0].mxu0  ;;  %v3248_v12 = vpop.f32.mrb[0].mxu1 }
 0x129   : > { %793 = vst.msk [vmem:[%s4212_s5 + $0x8] sm:$0xff] %vm791_vm4, %v3192_v11  ;;  %v801_v22 = vsel %vm791_vm4, %v3192_v11, 0.0  ;;  %v823_v23 = vmul.f32 %v3192_v11, %v3192_v11  ;;  %2888 = vst.msk [vmem:[%s4212_s5 + $0x48] sm:$0xff] %vm791_vm4, %v3248_v12  ;;  %v1364_v27 = vsel %vm791_vm4, %v3248_v12, 0.0  ;;  %v1386_v29 = vmul.f32 %v3248_v12, %v3248_v12  ;;  %v744_v35 = vpop.f32.mrb[1].mxu0  ;;  %v1307_v37 = vpop.f32.mrb[1].mxu1 }
 0x12a   : > { %792 = vst.msk [vmem:[%s4212_s5] sm:$0xff] %vm791_vm4, %v744_v35  ;;  %v800_v38 = vsel %vm791_vm4, %v744_v35, 0.0  ;;  %v822_v39 = vmul.f32 %v744_v35, %v744_v35  ;;  %2887 = vst.msk [vmem:[%s4212_s5 + $0x40] sm:$0xff] %vm791_vm4, %v1307_v37  ;;  %v1363_v40 = vsel %vm791_vm4, %v1307_v37, 0.0  ;;  %v1385_v41 = vmul.f32 %v1307_v37, %v1307_v37 }
 0x12b   : > { %v831_v42 = vsel %vm791_vm4, %v823_v23, 0.0  ;;  %v1394_v43 = vsel %vm791_vm4, %v1386_v29, 0.0  ;;  %v802_v44 = vadd.f32 %v801_v22, %v800_v38  ;;  %v1365_v45 = vadd.f32 %v1364_v27, %v1363_v40 }
 0x12c   : > { %v830_v46 = vsel %vm791_vm4, %v822_v39, 0.0  ;;  %v1393_v47 = vsel %vm791_vm4, %v1385_v41, 0.0  ;;  %v3195_v48 = vpop.f32.mrb[2].mxu0  ;;  %v3251_v49 = vpop.f32.mrb[2].mxu1 }
 0x12d   : > { %v832_v50 = vadd.f32 %v831_v42, %v830_v46  ;;  %v1395_v51 = vadd.f32 %v1394_v43, %v1393_v47  ;;  %795 = vst.msk [vmem:[%s4212_s5 + $0x18] sm:$0xff] %vm791_vm4, %v3195_v48  ;;  %2890 = vst.msk [vmem:[%s4212_s5 + $0x58] sm:$0xff] %vm791_vm4, %v3251_v49  ;;  %v754_v52 = vpop.f32.mrb[3].mxu0  ;;  %v1317_v53 = vpop.f32.mrb[3].mxu1  ;;  %v825_v54 = vmul.f32 %v3195_v48, %v3195_v48  ;;  %v805_v1 = vsel %vm791_vm4, %v3195_v48, 0.0 }
 0x12e   : > { %794 = vst.msk [vmem:[%s4212_s5 + $0x10] sm:$0xff] %vm791_vm4, %v754_v52  ;;  %v803_v55 = vsel %vm791_vm4, %v754_v52, 0.0  ;;  %v824_v56 = vmul.f32 %v754_v52, %v754_v52  ;;  %2889 = vst.msk [vmem:[%s4212_s5 + $0x50] sm:$0xff] %vm791_vm4, %v1317_v53  ;;  %v1366_v58 = vsel %vm791_vm4, %v1317_v53, 0.0  ;;  %v1387_v59 = vmul.f32 %v1317_v53, %v1317_v53 }
 0x12f   : > { %v804_v57 = vadd.f32 %v803_v55, %v802_v44  ;;  %v1388_v60 = vmul.f32 %v3251_v49, %v3251_v49  ;;  %v1367_v62 = vadd.f32 %v1366_v58, %v1365_v45  ;;  %v1368_v2 = vsel %vm791_vm4, %v3251_v49, 0.0 }
 0x130   : > { %v833_v61 = vsel %vm791_vm4, %v824_v56, 0.0  ;;  %v3198_v63 = vpop.f32.mrb[4].mxu0  ;;  %v3254_v0 = vpop.f32.mrb[4].mxu1  ;;  %v1396_v6 = vsel %vm791_vm4, %v1387_v59, 0.0  ;;  %v835_v9 = vsel %vm791_vm4, %v825_v54, 0.0 }
 0x131   : > { %v834_v3 = vadd.f32 %v833_v61, %v832_v50  ;;  %797 = vst.msk [vmem:[%s4212_s5 + $0x28] sm:$0xff] %vm791_vm4, %v3198_v63  ;;  %2892 = vst.msk [vmem:[%s4212_s5 + $0x68] sm:$0xff] %vm791_vm4, %v3254_v0  ;;  %v764_v7 = vpop.f32.mrb[5].mxu0  ;;  %v1327_v8 = vpop.f32.mrb[5].mxu1  ;;  %v1397_v10 = vadd.f32 %v1396_v6, %v1395_v51  ;;  %v827_v4 = vmul.f32 %v3198_v63, %v3198_v63  ;;  %v1398_v17 = vsel %vm791_vm4, %v1388_v60, 0.0 }
 0x132   : > { %796 = vst.msk [vmem:[%s4212_s5 + $0x20] sm:$0xff] %vm791_vm4, %v764_v7  ;;  %v806_v5 = vadd.f32 %v805_v1, %v804_v57  ;;  %2891 = vst.msk [vmem:[%s4212_s5 + $0x60] sm:$0xff] %vm791_vm4, %v1327_v8  ;;  %v1390_v13 = vmul.f32 %v3254_v0, %v3254_v0  ;;  %v807_v14 = vsel %vm791_vm4, %v764_v7, 0.0  ;;  %v826_v15 = vmul.f32 %v764_v7, %v764_v7 }
 0x133   : > { %v836_v16 = vadd.f32 %v835_v9, %v834_v3  ;;  %v1369_v19 = vadd.f32 %v1368_v2, %v1367_v62  ;;  %v1370_v20 = vsel %vm791_vm4, %v1327_v8, 0.0  ;;  %v809_v25 = vsel %vm791_vm4, %v3198_v63, 0.0 }
 0x134   : > { %v808_v18 = vadd.f32 %v807_v14, %v806_v5  ;;  %v3201_v21 = vpop.f32.mrb[6].mxu0  ;;  %v3257_v24 = vpop.f32.mrb[6].mxu1  ;;  %v837_v26 = vsel %vm791_vm4, %v826_v15, 0.0  ;;  %v1389_v28 = vmul.f32 %v1327_v8, %v1327_v8  ;;  %v1399_v30 = vadd.f32 %v1398_v17, %v1397_v10 }
 0x135   : > { %799 = vst.msk [vmem:[%s4212_s5 + $0x38] sm:$0xff] %vm791_vm4, %v3201_v21  ;;  %2894 = vst.msk [vmem:[%s4212_s5 + $0x78] sm:$0xff] %vm791_vm4, %v3257_v24  ;;  %v774_v32 = vpop.f32.mrb[7].mxu0  ;;  %v1337_v33 = vpop.f32.mrb[7].mxu1  ;;  %v839_v34 = vsel %vm791_vm4, %v827_v4, 0.0  ;;  %v1372_v31 = vsel %vm791_vm4, %v3254_v0, 0.0  ;;  %v838_v36 = vadd.f32 %v837_v26, %v836_v16  ;;  %v1371_v11 = vadd.f32 %v1370_v20, %v1369_v19 }
 0x136   : > { %798 = vst.msk [vmem:[%s4212_s5 + $0x30] sm:$0xff] %vm791_vm4, %v774_v32  ;;  %2893 = vst.msk [vmem:[%s4212_s5 + $0x70] sm:$0xff] %vm791_vm4, %v1337_v33  ;;  %v1402_v12 = vsel %vm791_vm4, %v1390_v13, 0.0  ;;  %v1400_v22 = vsel %vm791_vm4, %v1389_v28, 0.0  ;;  %v810_v23 = vadd.f32 %v809_v25, %v808_v18  ;;  %v811_v27 = vsel %vm791_vm4, %v774_v32, 0.0 }
 0x137   : > { %v1401_v29 = vadd.f32 %v1400_v22, %v1399_v30  ;;  %v829_v35 = vmul.f32 %v3201_v21, %v3201_v21  ;;  %v828_v37 = vmul.f32 %v774_v32, %v774_v32  ;;  %v840_v38 = vadd.f32 %v839_v34, %v838_v36 }
 0x138   : > { %v813_v39 = vsel %vm791_vm4, %v3201_v21, 0.0  ;;  %v812_v40 = vadd.f32 %v811_v27, %v810_v23  ;;  %v1373_v41 = vadd.f32 %v1372_v31, %v1371_v11  ;;  %v1374_v42 = vsel %vm791_vm4, %v1337_v33, 0.0 }
 0x139   : > { %v1392_v43 = vmul.f32 %v3257_v24, %v3257_v24  ;;  %v841_v44 = vsel %vm791_vm4, %v828_v37, 0.0  ;;  %v1391_v45 = vmul.f32 %v1337_v33, %v1337_v33  ;;  %v1403_v46 = vadd.f32 %v1402_v12, %v1401_v29 }
 0x13a   : > { %v814_v47 = vadd.f32 %v813_v39, %v812_v40  ;;  %v842_v48 = vadd.f32 %v841_v44, %v840_v38  ;;  %v1375_v49 = vadd.f32 %v1374_v42, %v1373_v41  ;;  %v843_v50 = vsel %vm791_vm4, %v829_v35, 0.0 }
 0x13b   : > { %v1376_v51 = vsel %vm791_vm4, %v3257_v24, 0.0  ;;  %v1404_v52 = vsel %vm791_vm4, %v1391_v45, 0.0  ;;  %v1406_v57 = vsel %vm791_vm4, %v1392_v43, 0.0 }
 0x13c   : > { %v815_v53 = vrot.slane %v814_v47, 4  ;;  %v844_v54 = vadd.f32 %v843_v50, %v842_v48  ;;  %v1377_v55 = vadd.f32 %v1376_v51, %v1375_v49  ;;  %v1405_v56 = vadd.f32 %v1404_v52, %v1403_v46 }
 0x13e   : > { %v816_v58 = vadd.f32 %v815_v53, %v814_v47  ;;  %v845_v59 = vrot.slane %v844_v54, 4  ;;  %v1378_v60 = vrot.slane %v1377_v55, 4  ;;  %v1407_v61 = vadd.f32 %v1406_v57, %v1405_v56 }
 0x140   : > { %v817_v62 = vrot.slane %v816_v58, 2  ;;  %v846_v63 = vadd.f32 %v845_v59, %v844_v54  ;;  %v1379_v0 = vadd.f32 %v1378_v60, %v1377_v55  ;;  %v1408_v1 = vrot.slane %v1407_v61, 4 }
 0x142   : > { %v818_v2 = vadd.f32 %v817_v62, %v816_v58  ;;  %v847_v3 = vrot.slane %v846_v63, 2  ;;  %v1380_v6 = vrot.slane %v1379_v0, 2  ;;  %v1409_v7 = vadd.f32 %v1408_v1, %v1407_v61 }
 0x144   : > { %v819_v8 = vrot.slane %v818_v2, 1  ;;  %v848_v9 = vadd.f32 %v847_v3, %v846_v63  ;;  %v1381_v10 = vadd.f32 %v1380_v6, %v1379_v0  ;;  %v1410_v4 = vrot.slane %v1409_v7, 2 }
 0x146   : > { %v820_v5 = vadd.f32 %v819_v8, %v818_v2  ;;  %v849_v13 = vrot.slane %v848_v9, 1  ;;  %v1382_v14 = vrot.slane %v1381_v10, 1  ;;  %v1411_v15 = vadd.f32 %v1410_v4, %v1409_v7 }
 0x148   : > { %v850_v16 = vadd.f32 %v849_v13, %v848_v9  ;;  %v1383_v17 = vadd.f32 %v1382_v14, %v1381_v10  ;;  %v1412_v18 = vrot.slane %v1411_v15, 1 }
 0x14a   : > { %v4278_v19 = vadd.f32 %v1383_v17, %v820_v5  ;;  %v1413_v20 = vadd.f32 %v1412_v18, %v1411_v15 }
 0x14c   : > { %v4280_v21 = vadd.f32 %v1413_v20, %v850_v16 }
 0x168   : > { %v3304_v24 = vpop.f32.mrb[8].mxu0  ;;  %v3360_v25 = vpop.f32.mrb[8].mxu1 }
 0x169   : > { %2936 = vst.msk [vmem:[%s4212_s5 + $0x88] sm:$0xff] %vm791_vm4, %v3304_v24  ;;  %v1897_v26 = vsel %vm791_vm4, %v3304_v24, 0.0  ;;  %v1919_v28 = vmul.f32 %v3304_v24, %v3304_v24  ;;  %2984 = vst.msk [vmem:[%s4212_s5 + $0xc8] sm:$0xff] %vm791_vm4, %v3360_v25  ;;  %v2423_v30 = vsel %vm791_vm4, %v3360_v25, 0.0  ;;  %v2445_v32 = vmul.f32 %v3360_v25, %v3360_v25  ;;  %v1840_v33 = vpop.f32.mrb[9].mxu0  ;;  %v2366_v34 = vpop.f32.mrb[9].mxu1 }
 0x16a   : > { %2935 = vst.msk [vmem:[%s4212_s5 + $0x80] sm:$0xff] %vm791_vm4, %v1840_v33  ;;  %v1896_v31 = vsel %vm791_vm4, %v1840_v33, 0.0  ;;  %v1918_v36 = vmul.f32 %v1840_v33, %v1840_v33  ;;  %2983 = vst.msk [vmem:[%s4212_s5 + $0xc0] sm:$0xff] %vm791_vm4, %v2366_v34  ;;  %v2422_v11 = vsel %vm791_vm4, %v2366_v34, 0.0  ;;  %v2444_v12 = vmul.f32 %v2366_v34, %v2366_v34 }
 0x16b   : > { %v1927_v22 = vsel %vm791_vm4, %v1919_v28, 0.0  ;;  %v2453_v23 = vsel %vm791_vm4, %v2445_v32, 0.0  ;;  %v1898_v27 = vadd.f32 %v1897_v26, %v1896_v31  ;;  %v2424_v29 = vadd.f32 %v2423_v30, %v2422_v11 }
 0x16c   : > { %v1926_v35 = vsel %vm791_vm4, %v1918_v36, 0.0  ;;  %v2452_v37 = vsel %vm791_vm4, %v2444_v12, 0.0  ;;  %v3307_v38 = vpop.f32.mrb[10].mxu0  ;;  %v3363_v39 = vpop.f32.mrb[10].mxu1 }
 0x16d   : > { %v1928_v40 = vadd.f32 %v1927_v22, %v1926_v35  ;;  %v2454_v41 = vadd.f32 %v2453_v23, %v2452_v37  ;;  %2938 = vst.msk [vmem:[%s4212_s5 + $0x98] sm:$0xff] %vm791_vm4, %v3307_v38  ;;  %2986 = vst.msk [vmem:[%s4212_s5 + $0xd8] sm:$0xff] %vm791_vm4, %v3363_v39  ;;  %v1850_v42 = vpop.f32.mrb[11].mxu0  ;;  %v2376_v43 = vpop.f32.mrb[11].mxu1  ;;  %v1921_v44 = vmul.f32 %v3307_v38, %v3307_v38  ;;  %v1901_v55 = vsel %vm791_vm4, %v3307_v38, 0.0 }
 0x16e   : > { %2937 = vst.msk [vmem:[%s4212_s5 + $0x90] sm:$0xff] %vm791_vm4, %v1850_v42  ;;  %v1899_v45 = vsel %vm791_vm4, %v1850_v42, 0.0  ;;  %v1920_v46 = vmul.f32 %v1850_v42, %v1850_v42  ;;  %2985 = vst.msk [vmem:[%s4212_s5 + $0xd0] sm:$0xff] %vm791_vm4, %v2376_v43  ;;  %v2425_v48 = vsel %vm791_vm4, %v2376_v43, 0.0  ;;  %v2446_v49 = vmul.f32 %v2376_v43, %v2376_v43 }
 0x16f   : > { %v1900_v47 = vadd.f32 %v1899_v45, %v1898_v27  ;;  %v2447_v50 = vmul.f32 %v3363_v39, %v3363_v39  ;;  %v2426_v52 = vadd.f32 %v2425_v48, %v2424_v29  ;;  %v2427_v56 = vsel %vm791_vm4, %v3363_v39, 0.0 }
 0x170   : > { %v1929_v51 = vsel %vm791_vm4, %v1920_v46, 0.0  ;;  %v3310_v53 = vpop.f32.mrb[12].mxu0  ;;  %v3366_v54 = vpop.f32.mrb[12].mxu1  ;;  %v2455_v58 = vsel %vm791_vm4, %v2446_v49, 0.0  ;;  %v1931_v61 = vsel %vm791_vm4, %v1921_v44, 0.0 }
 0x171   : > { %v1930_v57 = vadd.f32 %v1929_v51, %v1928_v40  ;;  %2940 = vst.msk [vmem:[%s4212_s5 + $0xa8] sm:$0xff] %vm791_vm4, %v3310_v53  ;;  %2988 = vst.msk [vmem:[%s4212_s5 + $0xe8] sm:$0xff] %vm791_vm4, %v3366_v54  ;;  %v1860_v59 = vpop.f32.mrb[13].mxu0  ;;  %v2386_v60 = vpop.f32.mrb[13].mxu1  ;;  %v2456_v62 = vadd.f32 %v2455_v58, %v2454_v41  ;;  %v1923_v63 = vmul.f32 %v3310_v53, %v3310_v53  ;;  %v2457_v7 = vsel %vm791_vm4, %v2447_v50, 0.0 }
 0x172   : > { %2939 = vst.msk [vmem:[%s4212_s5 + $0xa0] sm:$0xff] %vm791_vm4, %v1860_v59  ;;  %v1902_v0 = vadd.f32 %v1901_v55, %v1900_v47  ;;  %2987 = vst.msk [vmem:[%s4212_s5 + $0xe0] sm:$0xff] %vm791_vm4, %v2386_v60  ;;  %v2449_v1 = vmul.f32 %v3366_v54, %v3366_v54  ;;  %v1903_v2 = vsel %vm791_vm4, %v1860_v59, 0.0  ;;  %v1922_v3 = vmul.f32 %v1860_v59, %v1860_v59 }
 0x173   : > { %v1932_v6 = vadd.f32 %v1931_v61, %v1930_v57  ;;  %v2428_v9 = vadd.f32 %v2427_v56, %v2426_v52  ;;  %v2429_v10 = vsel %vm791_vm4, %v2386_v60, 0.0  ;;  %v1905_v13 = vsel %vm791_vm4, %v3310_v53, 0.0 }
 0x174   : > { %v1904_v8 = vadd.f32 %v1903_v2, %v1902_v0  ;;  %v3313_v4 = vpop.f32.mrb[14].mxu0  ;;  %v3369_v5 = vpop.f32.mrb[14].mxu1  ;;  %v1933_v14 = vsel %vm791_vm4, %v1922_v3, 0.0  ;;  %v2448_v15 = vmul.f32 %v2386_v60, %v2386_v60  ;;  %v2458_v16 = vadd.f32 %v2457_v7, %v2456_v62 }
 0x175   : > { %2942 = vst.msk [vmem:[%s4212_s5 + $0xb8] sm:$0xff] %vm791_vm4, %v3313_v4  ;;  %2990 = vst.msk [vmem:[%s4212_s5 + $0xf8] sm:$0xff] %vm791_vm4, %v3369_v5  ;;  %v1870_v17 = vpop.f32.mrb[15].mxu0  ;;  %v2396_v18 = vpop.f32.mrb[15].mxu1  ;;  %v1935_v20 = vsel %vm791_vm4, %v1923_v63, 0.0  ;;  %v2431_v24 = vsel %vm791_vm4, %v3366_v54, 0.0  ;;  %v1934_v25 = vadd.f32 %v1933_v14, %v1932_v6  ;;  %v2430_v26 = vadd.f32 %v2429_v10, %v2428_v9 }
 0x176   : > { %2941 = vst.msk [vmem:[%s4212_s5 + $0xb0] sm:$0xff] %vm791_vm4, %v1870_v17  ;;  %2989 = vst.msk [vmem:[%s4212_s5 + $0xf0] sm:$0xff] %vm791_vm4, %v2396_v18  ;;  %v2461_v28 = vsel %vm791_vm4, %v2449_v1, 0.0  ;;  %v2459_v30 = vsel %vm791_vm4, %v2448_v15, 0.0  ;;  %v1906_v32 = vadd.f32 %v1905_v13, %v1904_v8  ;;  %v1907_v33 = vsel %vm791_vm4, %v1870_v17, 0.0 }
 0x177   : > { %v2460_v34 = vadd.f32 %v2459_v30, %v2458_v16  ;;  %v1925_v31 = vmul.f32 %v3313_v4, %v3313_v4  ;;  %v1924_v36 = vmul.f32 %v1870_v17, %v1870_v17  ;;  %v1936_v11 = vadd.f32 %v1935_v20, %v1934_v25  ;;  %v2590_v17 = vld [vmem:[%s4212_s5 + $0x10] sm:$0xff] (%p3707_p3)  ;;  %v2594_v20 = vld [vmem:[%s4212_s5 + $0x20] sm:$0xff] (%p3707_p3)  ;;  %v2604_v30 = vld [vmem:[%s4212_s5 + $0x48] sm:$0xff] (%p3707_p3) }
 0x178   : > { %v1909_v12 = vsel %vm791_vm4, %v3313_v4, 0.0  ;;  %v1908_v22 = vadd.f32 %v1907_v33, %v1906_v32  ;;  %v2432_v23 = vadd.f32 %v2431_v24, %v2430_v26  ;;  %v2433_v27 = vsel %vm791_vm4, %v2396_v18, 0.0  ;;  %v2596_v24 = vld [vmem:[%s4212_s5 + $0x28] sm:$0xff] (%p3707_p3)  ;;  %v2598_v25 = vld [vmem:[%s4212_s5 + $0x30] sm:$0xff] (%p3707_p3)  ;;  %v2600_v26 = vld [vmem:[%s4212_s5 + $0x38] sm:$0xff] (%p3707_p3)  ;;  %2591 = vst [vmem:[%s4369_s27 + $0x10] sm:$0xff] (%p3707_p3), %v2590_v17 }
 0x179   : > { %v2451_v29 = vmul.f32 %v3369_v5, %v3369_v5  ;;  %v1937_v35 = vsel %vm791_vm4, %v1924_v36, 0.0  ;;  %v2450_v37 = vmul.f32 %v2396_v18, %v2396_v18  ;;  %v2462_v38 = vadd.f32 %v2461_v28, %v2460_v34  ;;  %v2592_v18 = vld [vmem:[%s4212_s5 + $0x18] sm:$0xff] (%p3707_p3)  ;;  %v2602_v28 = vld [vmem:[%s4212_s5 + $0x40] sm:$0xff] (%p3707_p3)  ;;  %v2606_v32 = vld [vmem:[%s4212_s5 + $0x50] sm:$0xff] (%p3707_p3)  ;;  %2595 = vst [vmem:[%s4369_s27 + $0x20] sm:$0xff] (%p3707_p3), %v2594_v20 }
 0x17a   : > { %v1910_v39 = vadd.f32 %v1909_v12, %v1908_v22  ;;  %v1938_v40 = vadd.f32 %v1937_v35, %v1936_v11  ;;  %v2434_v41 = vadd.f32 %v2433_v27, %v2432_v23  ;;  %v1939_v42 = vsel %vm791_vm4, %v1925_v31, 0.0  ;;  %v2608_v33 = vld [vmem:[%s4212_s5 + $0x58] sm:$0xff] (%p3707_p3)  ;;  %2593 = vst [vmem:[%s4369_s27 + $0x18] sm:$0xff] (%p3707_p3), %v2592_v18  ;;  %2597 = vst [vmem:[%s4369_s27 + $0x28] sm:$0xff] (%p3707_p3), %v2596_v24  ;;  %v2610_v34 = vld [vmem:[%s4212_s5 + $0x60] sm:$0xff] (%p3707_p3) }
 0x17b   : > { %v2435_v43 = vsel %vm791_vm4, %v3369_v5, 0.0  ;;  %v2463_v44 = vsel %vm791_vm4, %v2450_v37, 0.0  ;;  %v2465_v49 = vsel %vm791_vm4, %v2451_v29, 0.0  ;;  %2599 = vst [vmem:[%s4369_s27 + $0x30] sm:$0xff] (%p3707_p3), %v2598_v25  ;;  %2601 = vst [vmem:[%s4369_s27 + $0x38] sm:$0xff] (%p3707_p3), %v2600_v26  ;;  %v2612_v31 = vld [vmem:[%s4212_s5 + $0x68] sm:$0xff] (%p3707_p3) }
 0x17c   : > { %v1911_v45 = vrot.slane %v1910_v39, 4  ;;  %v1940_v46 = vadd.f32 %v1939_v42, %v1938_v40  ;;  %v2436_v47 = vadd.f32 %v2435_v43, %v2434_v41  ;;  %v2464_v48 = vadd.f32 %v2463_v44, %v2462_v38  ;;  %2603 = vst [vmem:[%s4369_s27 + $0x100] sm:$0xff] (%p3707_p3), %v2602_v28  ;;  %2605 = vst [vmem:[%s4369_s27 + $0x108] sm:$0xff] (%p3707_p3), %v2604_v30  ;;  %v2614_v36 = vld [vmem:[%s4212_s5 + $0x70] sm:$0xff] (%p3707_p3)  ;;  %v2616_v11 = vld [vmem:[%s4212_s5 + $0x78] sm:$0xff] (%p3707_p3) }
 0x17d   : > { %2607 = vst [vmem:[%s4369_s27 + $0x110] sm:$0xff] (%p3707_p3), %v2606_v32  ;;  %2609 = vst [vmem:[%s4369_s27 + $0x118] sm:$0xff] (%p3707_p3), %v2608_v33  ;;  %v2618_v12 = vld [vmem:[%s4212_s5 + $0x80] sm:$0xff] (%p3707_p3)  ;;  %v2620_v22 = vld [vmem:[%s4212_s5 + $0x88] sm:$0xff] (%p3707_p3) }
 0x17e   : > { %v1912_v50 = vadd.f32 %v1911_v45, %v1910_v39  ;;  %v1941_v51 = vrot.slane %v1940_v46, 4  ;;  %v2437_v52 = vrot.slane %v2436_v47, 4  ;;  %v2466_v53 = vadd.f32 %v2465_v49, %v2464_v48  ;;  %2611 = vst [vmem:[%s4369_s27 + $0x120] sm:$0xff] (%p3707_p3), %v2610_v34  ;;  %2613 = vst [vmem:[%s4369_s27 + $0x128] sm:$0xff] (%p3707_p3), %v2612_v31  ;;  %v2622_v23 = vld [vmem:[%s4212_s5 + $0x90] sm:$0xff] (%p3707_p3)  ;;  %v2624_v27 = vld [vmem:[%s4212_s5 + $0x98] sm:$0xff] (%p3707_p3) }
 0x17f   : > { %2615 = vst [vmem:[%s4369_s27 + $0x130] sm:$0xff] (%p3707_p3), %v2614_v36  ;;  %2617 = vst [vmem:[%s4369_s27 + $0x138] sm:$0xff] (%p3707_p3), %v2616_v11  ;;  %v2626_v29 = vld [vmem:[%s4212_s5 + $0xa0] sm:$0xff] (%p3707_p3)  ;;  %v2628_v35 = vld [vmem:[%s4212_s5 + $0xa8] sm:$0xff] (%p3707_p3) }
 0x180   : > { %v1913_v54 = vrot.slane %v1912_v50, 2  ;;  %v1942_v55 = vadd.f32 %v1941_v51, %v1940_v46  ;;  %v2438_v56 = vadd.f32 %v2437_v52, %v2436_v47  ;;  %v2467_v57 = vrot.slane %v2466_v53, 4  ;;  %2619 = vst [vmem:[%s4369_s27 + $0x200] sm:$0xff] (%p3707_p3), %v2618_v12  ;;  %2621 = vst [vmem:[%s4369_s27 + $0x208] sm:$0xff] (%p3707_p3), %v2620_v22  ;;  %v2630_v37 = vld [vmem:[%s4212_s5 + $0xb0] sm:$0xff] (%p3707_p3)  ;;  %v2632_v38 = vld [vmem:[%s4212_s5 + $0xb8] sm:$0xff] (%p3707_p3) }
 0x181   : > { %2623 = vst [vmem:[%s4369_s27 + $0x210] sm:$0xff] (%p3707_p3), %v2622_v23  ;;  %2625 = vst [vmem:[%s4369_s27 + $0x218] sm:$0xff] (%p3707_p3), %v2624_v27  ;;  %v2634_v39 = vld [vmem:[%s4212_s5 + $0xc0] sm:$0xff] (%p3707_p3)  ;;  %v2636_v40 = vld [vmem:[%s4212_s5 + $0xc8] sm:$0xff] (%p3707_p3) }
 0x182   : > { %v1914_v58 = vadd.f32 %v1913_v54, %v1912_v50  ;;  %v1943_v59 = vrot.slane %v1942_v55, 2  ;;  %v2439_v60 = vrot.slane %v2438_v56, 2  ;;  %v2468_v61 = vadd.f32 %v2467_v57, %v2466_v53  ;;  %2627 = vst [vmem:[%s4369_s27 + $0x220] sm:$0xff] (%p3707_p3), %v2626_v29  ;;  %2629 = vst [vmem:[%s4369_s27 + $0x228] sm:$0xff] (%p3707_p3), %v2628_v35  ;;  %v2638_v41 = vld [vmem:[%s4212_s5 + $0xd0] sm:$0xff] (%p3707_p3)  ;;  %v2640_v42 = vld [vmem:[%s4212_s5 + $0xd8] sm:$0xff] (%p3707_p3) }
 0x183   : > { %2631 = vst [vmem:[%s4369_s27 + $0x230] sm:$0xff] (%p3707_p3), %v2630_v37  ;;  %2633 = vst [vmem:[%s4369_s27 + $0x238] sm:$0xff] (%p3707_p3), %v2632_v38  ;;  %v2642_v43 = vld [vmem:[%s4212_s5 + $0xe0] sm:$0xff] (%p3707_p3)  ;;  %v2644_v44 = vld [vmem:[%s4212_s5 + $0xe8] sm:$0xff] (%p3707_p3) }
 0x184   : > { %v1915_v62 = vrot.slane %v1914_v58, 1  ;;  %v1944_v63 = vadd.f32 %v1943_v59, %v1942_v55  ;;  %v2440_v0 = vadd.f32 %v2439_v60, %v2438_v56  ;;  %v2469_v1 = vrot.slane %v2468_v61, 2  ;;  %2635 = vst [vmem:[%s4369_s27 + $0x300] sm:$0xff] (%p3707_p3), %v2634_v39  ;;  %2637 = vst [vmem:[%s4369_s27 + $0x308] sm:$0xff] (%p3707_p3), %v2636_v40  ;;  %v2646_v45 = vld [vmem:[%s4212_s5 + $0xf0] sm:$0xff] (%p3707_p3)  ;;  %v2648_v46 = vld [vmem:[%s4212_s5 + $0xf8] sm:$0xff] (%p3707_p3) }
 0x185   : > { %2639 = vst [vmem:[%s4369_s27 + $0x310] sm:$0xff] (%p3707_p3), %v2638_v41  ;;  %2641 = vst [vmem:[%s4369_s27 + $0x318] sm:$0xff] (%p3707_p3), %v2640_v42 }
 0x186   : > { %v1916_v2 = vadd.f32 %v1915_v62, %v1914_v58  ;;  %v1945_v3 = vrot.slane %v1944_v63, 1  ;;  %v2441_v6 = vrot.slane %v2440_v0, 1  ;;  %v2470_v7 = vadd.f32 %v2469_v1, %v2468_v61  ;;  %2643 = vst [vmem:[%s4369_s27 + $0x320] sm:$0xff] (%p3707_p3), %v2642_v43  ;;  %2645 = vst [vmem:[%s4369_s27 + $0x328] sm:$0xff] (%p3707_p3), %v2644_v44 }
 0x187   : > { %2647 = vst [vmem:[%s4369_s27 + $0x330] sm:$0xff] (%p3707_p3), %v2646_v45  ;;  %2649 = vst [vmem:[%s4369_s27 + $0x338] sm:$0xff] (%p3707_p3), %v2648_v46 }
 0x188   : > { %v1917_v8 = vadd.f32 %v1916_v2, %v4278_v19  ;;  %v1946_v9 = vadd.f32 %v1945_v3, %v1944_v63  ;;  %v2442_v10 = vadd.f32 %v2441_v6, %v2440_v0  ;;  %v2471_v4 = vrot.slane %v2470_v7, 1  ;;  %v2586_v19 = vld [vmem:[%s4212_s5] sm:$0xff] (%p3707_p3) }
 0x189   : > { %2489 = sbr.rel (!%p3707_p3) target bundleno = 400 (0x190), region = 32  ;;  %2587 = vst [vmem:[%s4369_s27] sm:$0xff] (%p3707_p3), %v2586_v19 }
 0x18a   : > { %v1947_v5 = vadd.f32 %v1946_v9, %v4280_v21  ;;  %v2443_v13 = vadd.f32 %v2442_v10, %v1917_v8  ;;  %v2472_v14 = vadd.f32 %v2471_v4, %v2470_v7  ;;  %v2588_v21 = vld [vmem:[%s4212_s5 + $0x8] sm:$0xff] (%p3707_p3) }
 0x18b   : > { %2589 = vst [vmem:[%s4369_s27 + $0x8] sm:$0xff] (%p3707_p3), %v2588_v21 }
 0x18c   : > { %v2473_v15 = vadd.f32 %v2472_v14, %v1947_v5 }
 0x18e   : > { %v2475_v16 = vsel %vm2474_vm5, %v2443_v13, %v2473_v15 }
 0x18f   : > { %2477 = vst.msk [vmem:[%s4349_s7] sm:$0x3] %vm2476_vm6, %v2475_v16 }
 0x190 PF: > { %s2997_s28 = sshll.u32 %s3621_s16, 2  ;;  %s2666_s4 = sshll.u32 %s4349_s7, 4  ;;  %s4429_s4 = int_to_ptr.vmem [resolvable:$true] %s2666_s4 }
 0x191   : > { %s2662_s6 = sadd.s32 %s3617_s15, %s2997_s28  ;;  %s3539_s20 = scalar_lea.vmem %s4429_s4, 32 }
 0x192   : > { %s2998_s9 = sshll.u32 %s2662_s6, 5  ;;  %p3540_p0 = scmp.ne.s32.totalorder %s4429_s4, %s3539_s20 }
 0x193   : > { %s2664_s5 = scalar_lea.hbm %s4483_s3, %s2998_s9  ;;  %s3635_s21 = smov [#allocation3]  }
 0x194   : > { %p3541_p1 = pnand %p3540_p0, %p3707_p3  ;;  %s3543_s24 = sshll.u32 %s3635_s21, 4  ;;  %s3544_s24 = int_to_ptr.vmem [resolvable:$false] %s3543_s24 }
 0x195   : > { %s3545_s16 = scalar_lea.vmem %s3544_s24, 64  ;;  %p3546_p4 = scmp.lt.s32.totalorder %s4429_s4, %s3544_s24 }
 0x196   : > { %p3542_p2 = pneg %p3541_p1  ;;  %p3547_p5 = scmp.lt.s32.totalorder %s3545_s16, %s3539_s20 }
 0x198   : > { %p3548_p6 = por %p3547_p5, %p3546_p4 }
 0x19a   : > { %p3549_p7 = pnand %p3548_p6, %p3542_p2 }
 0x19c   : > { %3552 = shalt.err (!%p3549_p7)
}
 0x19d   : > { %s3553_s15 = scalar_lea.hbm %s2664_s5, 32  ;;  %s3557_s28 = scalar_lea.hbm %s4483_s3, 256 }
 0x19e   : > { %p3554_p9 = scmp.ne.s32.totalorder %s2664_s5, %s3553_s15  ;;  %p3558_p12 = scmp.lt.u32.totalorder %s2664_s5, %s4483_s3 }
 0x19f   : > { %p3559_p13 = scmp.lt.u32.totalorder %s3557_s28, %s3553_s15  ;;  %p3561_p1 = scmp.lt.u32.totalorder %s3553_s15, %s2664_s5 }
 0x1a0   : > { %p3555_p10 = pnand %p3554_p9, %p3707_p3 }
 0x1a1   : > { %p3560_p0 = por %p3559_p13, %p3558_p12 }
 0x1a2   : > { %p3556_p11 = pneg %p3555_p10 }
 0x1a3   : > { %p3562_p4 = por %p3561_p1, %p3560_p0 }
 0x1a5   : > { %p3563_p2 = pnand %p3562_p4, %p3556_p11 }
 0x1a7   : > { %3566 = shalt.err (!%p3563_p2)
}
 0x1a8   : > { %3468 = dma.vmem_to_hbm [thread:$0]  (%p3707_p3), %s4429_s4, 32, %s2664_s5, %s2483_s8  }
 0x1a9 PF: > { %p3474_p5 = scmp.ge.s32.totalorder %s3633_s19, 2  ;;  %s2685_s10 = sand.u32 1, %s3605_s12  }
 0x1aa   : > { %s2686_s11 = scalar_lea.sflag [#allocation4], %s2685_s10 }
 0x1ab   : > { %p3471_p6 = pnand %p3474_p5, %p3716_p8 }
 0x1ad   : > { %3600 = dma.done.wait (!%p3471_p6), %s2686_s11, 32  }
 0x1ae   : > { %3602 = vsyncadd (!%p3471_p6), %s2686_s11, 4294967264  ;;  %s17_s19 = sadd.s32 1, %s3633_s19   ;;  %s4486_s12 = smov %s3609_s13 }
 0x1af   : > { %p14_p7 = scmp.ge.s32.totalorder %s17_s19, 10   ;;  %s4487_s13 = smov %s3613_s14 }
 0x1b0   : > { %s4488_s14 = smov %s3725_s30  ;;  %s4489_s15 = smov %s3625_s17 }
 0x1b1   : > { %s4490_s16 = smov %s3629_s18  ;;  %s4491_s17 = smov %s4494_s22 }
 0x1b2   : > { %s4492_s18 = smov %s4498_s23  ;;  %16 = sbr.rel (!%p14_p7) target bundleno = 5 (0x5), region = 134 }
 0x1b9   :  { %2691 = vsyncpa [#allocation4], 1 }
 0x1ba   :  { %2693 = vsyncpa [#allocation4 + $0x1], 1 }

// kernel: tpu_custom_call.1
= control target key start
LH: loop header
LB: loop body
LE: loop exit
PB: predicated region body
PF: predicated region fallthrough
CT: control target
= control target key end

     0   :  { %9 = vsyncpa [#allocation4], 0  ;;  %s4480_s0 = inlined_call_operand.vmem [shape: f32[2,4,6,18,4], index: 0, kind: input, shape index: {}]   ;;  %s4481_s1 = inlined_call_operand.vmem [shape: f32[4,4,4,8], index: 1, kind: input, shape index: {}]   ;;  %s4482_s2 = inlined_call_operand.vmem [shape: f32[2,4,16,16,8], index: 2, kind: output, shape index: {0}]   ;;  %s4483_s3 = inlined_call_operand.hbm [shape: f32[2,1,4,2,8], index: 3, kind: output, shape index: {1}]  }
   0x1   :  { %11 = vsyncpa [#allocation4 + $0x1], 0  ;;  %s3656_s12 = smov 0   ;;  %s3658_s13 = smov 0  }
   0x2   :  { %s3660_s14 = smov 0   ;;  %s3662_s15 = smov 0  }
   0x3   :  { %s3664_s16 = smov 0   ;;  %s3666_s17 = smov 0  }
   0x4   :  { %s3668_s18 = smov 0   ;;  %s3670_s19 = smov 0  }
   0x5 LB: > { %s2799_s20 = sadd.s32 4294967295, %s3633_s19   ;;  %s2800_s21 = sadd.s32 4294967294, %s3633_s19   ;;  %s3633_s19 = sphi %s3670_s19, %s17_s19   ;;  %s3629_s18 = sphi %s3668_s18, %s4492_s18   ;;  %s3625_s17 = sphi %s3666_s17, %s4491_s17   ;;  %s3621_s16 = sphi %s3664_s16, %s4490_s16   ;;  %s3617_s15 = sphi %s3662_s15, %s4489_s15   ;;  %s3613_s14 = sphi %s3660_s14, %s4488_s14   ;;  %s3609_s13 = sphi %s3658_s13, %s4487_s13   ;;  %s3605_s12 = sphi %s3656_s12, %s4486_s12  }
   0x6   : > { %s29_s22 = sadd.s32 1, %s3625_s17  ;;  %s36_s23 = sadd.s32 1, %s3629_s18 }
   0x7   : > { %p30_p0 = scmp.ge.s32.totalorder %s29_s22, 4  ;;  %p111_p1 = scmp.ne.s32.totalorder %s3613_s14, %s3609_s13 }
   0x8   : > { %p112_p2 = scmp.eq.s32.totalorder %s2799_s20, 7  ;;  %p147_p5 = scmp.ne.s32.totalorder %s3609_s13, %s3605_s12 }
   0x9   : > { %s4494_s22 = smov (%p30_p0, %s29_s22), 0  ;;  %s4496_s23 = smov (!%p30_p0, %s36_s23), %s3629_s18 }
   0xa   : > { %s95_s24 = ssub.s32 %s3625_s17, %s4494_s22  ;;  %p3707_p3 = por %p112_p2, %p111_p1 }
   0xb   : > { %p38_p4 = scmp.ge.s32.totalorder %s4496_s23, 2  ;;  %p148_p6 = scmp.eq.s32.totalorder %s2800_s21, 7 }
   0xc   : > { %p2804_p7 = scmp.ge.s32.totalorder %s3633_s19, 1  ;;  %p185_p9 = scmp.lt.s32.totalorder %s3633_s19, 9 }
   0xd   : > { %s4498_s23 = smov (%p38_p4, %s4496_s23), 0  ;;  %p3716_p8 = por %p148_p6, %p147_p5 }
   0xe   : > { %s94_s27 = ssub.s32 %s3629_s18, %s4498_s23  ;;  %s101_s28 = sadd.s32 1, %s3613_s14 }
   0xf   : > { %s96_s29 = sor.u32 %s95_s24, %s94_s27  ;;  %p186_p10 = pnand %p2804_p7, %p185_p9 }
  0x10   : > { %p99_p11 = scmp.eq.s32.totalorder %s96_s29, 0  ;;  %v2808_v0 = vld [vmem:[%s4481_s1 + $0x4] sm:$0xf] (!%p186_p10)  ;;  %vm306_vm0 = vcmask (!%p186_p10), 1043456   ;;  %v2848_v1 = vld [vmem:[%s4481_s1 + $0x14] sm:$0xf] (!%p186_p10) }
  0x11   : > { %189 = sbr.rel (%p186_p10) target bundleno = 425 (0x1a9), region = 28  ;;  %p221_p12 = scmp.lt.s32.totalorder (!%p186_p10), %s3621_s16, 1  ;;  %3146 = vmatprep.subr.msk.mxu0 (!%p186_p10), %vm306_vm0, %v2808_v0  ;;  %3202 = vmatprep.subr.msk.mxu1 (!%p186_p10), %vm306_vm0, %v2848_v1  ;;  %v253_v2 = vld [vmem:[%s4481_s1] sm:$0xf] (!%p186_p10)  ;;  %v2847_v3 = vld [vmem:[%s4481_s1 + $0x10] sm:$0xf] (!%p186_p10) }
  0x12   : > { %s3725_s30 = scalar_select %p99_p11, %s3613_s14, %s101_s28  }
  0x13   : > { %p223_p13 = scmp.lt.s32.totalorder (!%p186_p10), %s3617_s15, 3  ;;  %3147 = vmatpush3.msk.msra.mxu0 (!%p186_p10), %vm306_vm0, %v2808_v0  ;;  %3203 = vmatpush3.msk.msra.mxu1 (!%p186_p10), %vm306_vm0, %v2848_v1  ;;  %vm266_vm1 = vcmask (!%p186_p10), 1046528   ;;  %vm289_vm2 = vcmask (!%p186_p10), 31744   ;;  %vm854_vm3 = vcmask (!%p186_p10), 1045504   ;;  %v3803_v30 = vld [vmem:[%s4481_s1 + $0x8] sm:$0xf] (!%p186_p10) }
  0x14   : > { %3160 = vmatprep.subr.msk.mxu0 (!%p186_p10), %vm306_vm0, %v253_v2  ;;  %3216 = vmatprep.subr.msk.mxu1 (!%p186_p10), %vm306_vm0, %v2847_v3  ;;  %v2867_v36 = vld [vmem:[%s4481_s1 + $0x18] sm:$0xf] (!%p186_p10)  ;;  %vm791_vm4 = vcmask (!%p186_p10), 64512   ;;  %vm2474_vm5 = vcmask (!%p186_p10), 1040384   ;;  %vm2476_vm6 = vcmask (!%p186_p10), 58368  }
  0x18   : > { %s222_s10 = scalar_select %p221_p12, %s3621_s16, 1 }
  0x19   : > { %s224_s21 = scalar_select %p223_p13, %s3617_s15, 3 }
  0x1a   : > { %s3467_s24 = smul.u32 72, %s222_s10  ;;  %s3001_s9 = sshll.u32 (%p3707_p3), %s3617_s15, 3 }
  0x1b   : > { %s3466_s27 = smul.u32 18, %s224_s21  ;;  %s2995_s10 = sshll.u32 (%p3707_p3), %s3621_s16, 7 }
  0x1c   : > { %s2494_s11 = sadd.s32 (%p3707_p3), %s3001_s9, %s2995_s10 }
  0x1d   : > { %s227_s28 = sadd.s32 %s3467_s24, %s3466_s27  ;;  %s2996_s20 = sshll.u32 (%p3707_p3), %s2494_s11, 3 }
  0x1e   : > { %s2807_s29 = sshll.u32 %s227_s28, 3  ;;  %s4369_s27 = scalar_lea.vmem (%p3707_p3), %s4482_s2, %s2996_s20 }
  0x1f   : > { %s3752_s6 = scalar_lea.vmem %s4480_s0, %s2807_s29  ;;  %s4209_s29 = sand.u32 1, %s3609_s13  }
  0x20   : > { %v3755_v4 = vld [vmem:[%s3752_s6] sm:$0xff]  ;;  %v3758_v5 = vld [vmem:[%s3752_s6 + $0x8] sm:$0xff]  ;;  %v237_v6 = vld [vmem:[%s3752_s6 + $0x10] sm:$0x3]  ;;  %s2805_s4 = sshll.u32 %s4209_s29, 8  ;;  %s2483_s8 = scalar_lea.sflag [#allocation4], %s4209_s29 }
  0x21   : > { %v267_v7 = vrot.slane %v3755_v4, 1  ;;  %v268_v8 = vrot.slane %v3758_v5, 1  ;;  %v855_v9 = vrot.slane %v3755_v4, 2  ;;  %v856_v10 = vrot.slane %v3758_v5, 2  ;;  %v3766_v11 = vld [vmem:[%s3752_s6 + $0x18] sm:$0xff]  ;;  %v3769_v12 = vld [vmem:[%s3752_s6 + $0x20] sm:$0xff] }
  0x22   : > { %v270_v13 = vrot.slane %v237_v6, 1  ;;  %v858_v14 = vrot.slane %v237_v6, 2  ;;  %v272_v15 = vrot.slane %v3766_v11, 1  ;;  %v273_v16 = vrot.slane %v3769_v12, 1  ;;  %v240_v17 = vld [vmem:[%s3752_s6 + $0x28] sm:$0x3] }
  0x23   : > { %v3775_v18 = vsel %vm266_vm1, %v267_v7, %v268_v8  ;;  %v857_v19 = vsel %vm854_vm3, %v855_v9, %v856_v10  ;;  %v860_v20 = vrot.slane %v3766_v11, 2  ;;  %v861_v21 = vrot.slane %v3769_v12, 2  ;;  %v3781_v22 = vld [vmem:[%s3752_s6 + $0x30] sm:$0xff]  ;;  %v3784_v23 = vld [vmem:[%s3752_s6 + $0x38] sm:$0xff]  ;;  %v243_v24 = vld [vmem:[%s3752_s6 + $0x40] sm:$0x3] }
  0x24   : > { %3148 = vmatprep.mubr.msk.f32.mxu0 %vm289_vm2, %v3775_v18  ;;  %3204 = vmatprep.mubr.msk.f32.mxu1 %vm289_vm2, %v857_v19  ;;  %v3791_v25 = vsel %vm266_vm1, %v268_v8, %v270_v13  ;;  %v859_v26 = vsel %vm854_vm3, %v856_v10, %v858_v14  ;;  %v3795_v27 = vsel %vm266_vm1, %v272_v15, %v273_v16  ;;  %v275_v28 = vrot.slane %v240_v17, 1  ;;  %v3798_v29 = vld [vmem:[%s3752_s6 + $0x48] sm:$0xff]  ;;  %v3814_v35 = vld [vmem:[%s3752_s6 + $0x50] sm:$0xff]  ;;  %v246_v45 = vld [vmem:[%s3752_s6 + $0x58] sm:$0x3]  ;;  %s4212_s5 = scalar_lea.vmem [#allocation2], %s2805_s4 }
  0x25   : > { %3149 = vmatmul.mubr.msk.f32.vlgmr.msra.gmra.mrb[0].mxu0 %vm289_vm2, %v3791_v25  ;;  %3205 = vmatmul.mubr.msk.f32.vlgmr.msra.gmra.mrb[0].mxu1 %vm289_vm2, %v859_v26  ;;  %v3809_v31 = vsel %vm854_vm3, %v860_v20, %v861_v21  ;;  %v863_v32 = vrot.slane %v240_v17, 2  ;;  %v277_v33 = vrot.slane %v3781_v22, 1  ;;  %v278_v34 = vrot.slane %v3784_v23, 1  ;;  %v3862_v54 = vld [vmem:[%s3752_s6 + $0x78] sm:$0xff]  ;;  %v3865_v55 = vld [vmem:[%s3752_s6 + $0x80] sm:$0xff] }
  0x26   : > { %3161 = vmatpush3.msk.msra.mxu0 %vm306_vm0, %v253_v2  ;;  %3217 = vmatpush3.msk.msra.mxu1 %vm306_vm0, %v2847_v3  ;;  %v3822_v37 = vsel %vm266_vm1, %v273_v16, %v275_v28  ;;  %v865_v38 = vrot.slane %v3781_v22, 2  ;;  %v866_v39 = vrot.slane %v3784_v23, 2  ;;  %v280_v40 = vrot.slane %v243_v24, 1  ;;  %v252_v56 = vld [vmem:[%s3752_s6 + $0x88] sm:$0x3] }
  0x27   : > { %3151 = vmatprep.mubr.msk.f32.mxu0 %vm289_vm2, %v3795_v27  ;;  %3207 = vmatprep.mubr.msk.f32.mxu1 %vm289_vm2, %v3809_v31  ;;  %v3831_v41 = vsel %vm854_vm3, %v861_v21, %v863_v32  ;;  %v3834_v42 = vsel %vm266_vm1, %v277_v33, %v278_v34  ;;  %v868_v43 = vrot.slane %v243_v24, 2  ;;  %v282_v44 = vrot.slane %v3798_v29, 1  ;;  %v2837_v9 = vld [vmem:[%s4481_s1 + $0xc] sm:$0xf]  ;;  %v2877_v10 = vld [vmem:[%s4481_s1 + $0x1c] sm:$0xf] }
  0x28   : > { %v3839_v46 = vsel %vm854_vm3, %v865_v38, %v866_v39  ;;  %v283_v47 = vrot.slane %v3814_v35, 1  ;;  %v870_v48 = vrot.slane %v3798_v29, 2  ;;  %3174 = vmatprep.subr.msk.mxu0 %vm306_vm0, %v3803_v30  ;;  %3230 = vmatprep.subr.msk.mxu1 %vm306_vm0, %v2867_v36  ;;  %v871_v49 = vrot.slane %v3814_v35, 2  ;;  %v2896_v13 = vld [vmem:[%s4481_s1 + $0x24] sm:$0xf] }
  0x29   : > { %3152 = vmatmul.mubr.msk.f32.gmra.mrb[2].mxu0 %vm289_vm2, %v3822_v37  ;;  %3208 = vmatmul.mubr.msk.f32.gmra.mrb[2].mxu1 %vm289_vm2, %v3831_v41  ;;  %v3856_v50 = vsel %vm266_vm1, %v278_v34, %v280_v40  ;;  %v3859_v51 = vsel %vm854_vm3, %v866_v39, %v868_v43  ;;  %v285_v52 = vrot.slane %v246_v45, 1  ;;  %v873_v53 = vrot.slane %v246_v45, 2  ;;  %v2944_v14 = vld [vmem:[%s4481_s1 + $0x34] sm:$0xf]  ;;  %v249_v17 = vld [vmem:[%s3752_s6 + $0x70] sm:$0x3] }
  0x2a   : > { %3154 = vmatprep.mubr.msk.f32.mxu0 %vm289_vm2, %v3834_v42  ;;  %3210 = vmatprep.mubr.msk.f32.mxu1 %vm289_vm2, %v3839_v46  ;;  %v3869_v57 = vsel %vm266_vm1, %v282_v44, %v283_v47  ;;  %v3872_v58 = vsel %vm854_vm3, %v870_v48, %v871_v49  ;;  %v1760_v59 = vrot.slane %v3862_v54, 1  ;;  %v2286_v60 = vrot.slane %v3862_v54, 2  ;;  %v2895_v21 = vld [vmem:[%s4481_s1 + $0x20] sm:$0xf]  ;;  %v2943_v24 = vld [vmem:[%s4481_s1 + $0x30] sm:$0xf] }
  0x2b   : > { %v1761_v61 = vrot.slane %v3865_v55, 1  ;;  %v1763_v62 = vrot.slane %v252_v56, 1  ;;  %v3886_v63 = vsel %vm266_vm1, %v283_v47, %v285_v52  ;;  %v3889_v0 = vsel %vm854_vm3, %v871_v49, %v873_v53  ;;  %v2915_v33 = vld [vmem:[%s4481_s1 + $0x28] sm:$0xf]  ;;  %v2963_v34 = vld [vmem:[%s4481_s1 + $0x38] sm:$0xf] }
  0x2c   : > { %v2287_v1 = vrot.slane %v3865_v55, 2  ;;  %v2289_v2 = vrot.slane %v252_v56, 2  ;;  %v1230_v28 = vrot.slane %v249_v17, 2 }
  0x2d   : > { %3155 = vmatmul.mubr.msk.f32.gmra.mrb[4].mxu0 %vm289_vm2, %v3856_v50  ;;  %3211 = vmatmul.mubr.msk.f32.gmra.mrb[4].mxu1 %vm289_vm2, %v3859_v51  ;;  %v3893_v3 = vsel %vm266_vm1, %v1760_v59, %v1761_v61  ;;  %v3896_v6 = vsel %vm266_vm1, %v1761_v61, %v1763_v62 }
  0x2e   : > { %3157 = vmatprep.mubr.msk.f32.mxu0 %vm289_vm2, %v3869_v57  ;;  %3213 = vmatprep.mubr.msk.f32.mxu1 %vm289_vm2, %v3872_v58  ;;  %v3899_v7 = vsel %vm854_vm3, %v2286_v60, %v2287_v1  ;;  %v3902_v8 = vsel %vm854_vm3, %v2287_v1, %v2289_v2 }
  0x31   : > { %3158 = vmatmul.mubr.msk.f32.gmra.mrb[6].mxu0 %vm289_vm2, %v3886_v63  ;;  %3214 = vmatmul.mubr.msk.f32.gmra.mrb[6].mxu1 %vm289_vm2, %v3889_v0 }
  0x32   : > { %3162 = vmatprep.mubr.msk.f32.mxu0 %vm289_vm2, %v3755_v4  ;;  %3218 = vmatprep.mubr.msk.f32.mxu1 %vm289_vm2, %v3775_v18  ;;  %v3956_v4 = vld [vmem:[%s3752_s6 + $0x60] sm:$0xff]  ;;  %v667_v18 = vrot.slane %v249_v17, 1 }
  0x33   : > { %v664_v15 = vrot.slane %v3956_v4, 1 }
  0x35   : > { %3163 = vmatmul.mubr.msk.f32.vlgmr.msra.gmra.mrb[0].mxu0 %vm289_vm2, %v3758_v5  ;;  %3219 = vmatmul.mubr.msk.f32.vlgmr.msra.gmra.mrb[0].mxu1 %vm289_vm2, %v3791_v25  ;;  %v3959_v5 = vld [vmem:[%s3752_s6 + $0x68] sm:$0xff]  ;;  %v1227_v25 = vrot.slane %v3956_v4, 2  ;;  %s2806_s6 = sshll.u32 %s4209_s29, 1 }
  0x36   : > { %3175 = vmatpush3.msk.msra.mxu0 %vm306_vm0, %v3803_v30  ;;  %3231 = vmatpush3.msk.msra.mxu1 %vm306_vm0, %v2867_v36  ;;  %v665_v16 = vrot.slane %v3959_v5, 1  ;;  %v1228_v26 = vrot.slane %v3959_v5, 2  ;;  %v2973_v36 = vld [vmem:[%s4481_s1 + $0x3c] sm:$0xf]  ;;  %s4349_s7 = scalar_lea.vmem [#allocation3], %s2806_s6 }
  0x37   : > { %3165 = vmatprep.mubr.msk.f32.mxu0 %vm289_vm2, %v3766_v11  ;;  %3221 = vmatprep.mubr.msk.f32.mxu1 %vm289_vm2, %v3795_v27 }
  0x38   : > { %3188 = vmatprep.subr.msk.mxu0 %vm306_vm0, %v2837_v9  ;;  %3244 = vmatprep.subr.msk.mxu1 %vm306_vm0, %v2877_v10  ;;  %v3991_v19 = vsel %vm266_vm1, %v664_v15, %v665_v16  ;;  %v4002_v20 = vsel %vm266_vm1, %v665_v16, %v667_v18  ;;  %v4041_v30 = vsel %vm854_vm3, %v1227_v25, %v1228_v26 }
  0x39   : > { %3166 = vmatmul.mubr.msk.f32.gmra.mrb[2].mxu0 %vm289_vm2, %v3769_v12  ;;  %3222 = vmatmul.mubr.msk.f32.gmra.mrb[2].mxu1 %vm289_vm2, %v3822_v37  ;;  %v4052_v32 = vsel %vm854_vm3, %v1228_v26, %v1230_v28 }
  0x3a   : > { %3168 = vmatprep.mubr.msk.f32.mxu0 %vm289_vm2, %v3781_v22  ;;  %3224 = vmatprep.mubr.msk.f32.mxu1 %vm289_vm2, %v3834_v42 }
  0x3d   : > { %3169 = vmatmul.mubr.msk.f32.gmra.mrb[4].mxu0 %vm289_vm2, %v3784_v23  ;;  %3225 = vmatmul.mubr.msk.f32.gmra.mrb[4].mxu1 %vm289_vm2, %v3856_v50 }
  0x3e   : > { %3171 = vmatprep.mubr.msk.f32.mxu0 %vm289_vm2, %v3798_v29  ;;  %3227 = vmatprep.mubr.msk.f32.mxu1 %vm289_vm2, %v3869_v57 }
  0x41   : > { %3172 = vmatmul.mubr.msk.f32.gmra.mrb[6].mxu0 %vm289_vm2, %v3814_v35  ;;  %3228 = vmatmul.mubr.msk.f32.gmra.mrb[6].mxu1 %vm289_vm2, %v3886_v63 }
  0x42   : > { %3176 = vmatprep.mubr.msk.f32.mxu0 %vm289_vm2, %v3766_v11  ;;  %3232 = vmatprep.mubr.msk.f32.mxu1 %vm289_vm2, %v3795_v27 }
  0x45   : > { %3177 = vmatmul.mubr.msk.f32.vlgmr.msra.gmra.mrb[0].mxu0 %vm289_vm2, %v3769_v12  ;;  %3233 = vmatmul.mubr.msk.f32.vlgmr.msra.gmra.mrb[0].mxu1 %vm289_vm2, %v3822_v37 }
  0x46   : > { %3189 = vmatpush3.msk.msra.mxu0 %vm306_vm0, %v2837_v9  ;;  %3245 = vmatpush3.msk.msra.mxu1 %vm306_vm0, %v2877_v10 }
  0x47   : > { %3179 = vmatprep.mubr.msk.f32.mxu0 %vm289_vm2, %v3781_v22  ;;  %3235 = vmatprep.mubr.msk.f32.mxu1 %vm289_vm2, %v3834_v42 }
  0x48   : > { %3258 = vmatprep.subr.msk.mxu0 %vm306_vm0, %v2896_v13  ;;  %3314 = vmatprep.subr.msk.mxu1 %vm306_vm0, %v2944_v14 }
  0x49   : > { %3180 = vmatmul.mubr.msk.f32.gmra.mrb[2].mxu0 %vm289_vm2, %v3784_v23  ;;  %3236 = vmatmul.mubr.msk.f32.gmra.mrb[2].mxu1 %vm289_vm2, %v3856_v50 }
  0x4a   : > { %3182 = vmatprep.mubr.msk.f32.mxu0 %vm289_vm2, %v3798_v29  ;;  %3238 = vmatprep.mubr.msk.f32.mxu1 %vm289_vm2, %v3869_v57 }
  0x4d   : > { %3183 = vmatmul.mubr.msk.f32.gmra.mrb[4].mxu0 %vm289_vm2, %v3814_v35  ;;  %3239 = vmatmul.mubr.msk.f32.gmra.mrb[4].mxu1 %vm289_vm2, %v3886_v63 }
  0x4e   : > { %3185 = vmatprep.mubr.msk.f32.mxu0 %vm289_vm2, %v3956_v4  ;;  %3241 = vmatprep.mubr.msk.f32.mxu1 %vm289_vm2, %v3991_v19 }
  0x51   : > { %3186 = vmatmul.mubr.msk.f32.gmra.mrb[6].mxu0 %vm289_vm2, %v3959_v5  ;;  %3242 = vmatmul.mubr.msk.f32.gmra.mrb[6].mxu1 %vm289_vm2, %v4002_v20 }
  0x52   : > { %3190 = vmatprep.mubr.msk.f32.mxu0 %vm289_vm2, %v3795_v27  ;;  %3246 = vmatprep.mubr.msk.f32.mxu1 %vm289_vm2, %v3809_v31 }
  0x55   : > { %3191 = vmatmul.mubr.msk.f32.vlgmr.msra.gmra.mrb[0].mxu0 %vm289_vm2, %v3822_v37  ;;  %3247 = vmatmul.mubr.msk.f32.vlgmr.msra.gmra.mrb[0].mxu1 %vm289_vm2, %v3831_v41 }
  0x56   : > { %3259 = vmatpush3.msk.msra.mxu0 %vm306_vm0, %v2896_v13  ;;  %3315 = vmatpush3.msk.msra.mxu1 %vm306_vm0, %v2944_v14 }
  0x57   : > { %3193 = vmatprep.mubr.msk.f32.mxu0 %vm289_vm2, %v3834_v42  ;;  %3249 = vmatprep.mubr.msk.f32.mxu1 %vm289_vm2, %v3839_v46 }
  0x58   : > { %3272 = vmatprep.subr.msk.mxu0 %vm306_vm0, %v2895_v21  ;;  %3328 = vmatprep.subr.msk.mxu1 %vm306_vm0, %v2943_v24 }
  0x59   : > { %3194 = vmatmul.mubr.msk.f32.gmra.mrb[2].mxu0 %vm289_vm2, %v3856_v50  ;;  %3250 = vmatmul.mubr.msk.f32.gmra.mrb[2].mxu1 %vm289_vm2, %v3859_v51 }
  0x5a   : > { %3196 = vmatprep.mubr.msk.f32.mxu0 %vm289_vm2, %v3869_v57  ;;  %3252 = vmatprep.mubr.msk.f32.mxu1 %vm289_vm2, %v3872_v58 }
  0x5d   : > { %3197 = vmatmul.mubr.msk.f32.gmra.mrb[4].mxu0 %vm289_vm2, %v3886_v63  ;;  %3253 = vmatmul.mubr.msk.f32.gmra.mrb[4].mxu1 %vm289_vm2, %v3889_v0 }
  0x5e   : > { %3199 = vmatprep.mubr.msk.f32.mxu0 %vm289_vm2, %v3991_v19  ;;  %3255 = vmatprep.mubr.msk.f32.mxu1 %vm289_vm2, %v4041_v30 }
  0x61   : > { %3200 = vmatmul.mubr.msk.f32.gmra.mrb[6].mxu0 %vm289_vm2, %v4002_v20  ;;  %3256 = vmatmul.mubr.msk.f32.gmra.mrb[6].mxu1 %vm289_vm2, %v4052_v32 }
  0x62   : > { %3260 = vmatprep.mubr.msk.f32.mxu0 %vm289_vm2, %v3795_v27  ;;  %3316 = vmatprep.mubr.msk.f32.mxu1 %vm289_vm2, %v3809_v31  ;;  %v2925_v31 = vld [vmem:[%s4481_s1 + $0x2c] sm:$0xf] }
  0x65   : > { %3261 = vmatmul.mubr.msk.f32.vlgmr.msra.gmra.mrb[8].mxu0 %vm289_vm2, %v3822_v37  ;;  %3317 = vmatmul.mubr.msk.f32.vlgmr.msra.gmra.mrb[8].mxu1 %vm289_vm2, %v3831_v41 }
  0x66   : > { %3273 = vmatpush3.msk.msra.mxu0 %vm306_vm0, %v2895_v21  ;;  %3329 = vmatpush3.msk.msra.mxu1 %vm306_vm0, %v2943_v24 }
  0x67   : > { %3263 = vmatprep.mubr.msk.f32.mxu0 %vm289_vm2, %v3834_v42  ;;  %3319 = vmatprep.mubr.msk.f32.mxu1 %vm289_vm2, %v3839_v46 }
  0x68   : > { %3286 = vmatprep.subr.msk.mxu0 %vm306_vm0, %v2915_v33  ;;  %3342 = vmatprep.subr.msk.mxu1 %vm306_vm0, %v2963_v34 }
  0x69   : > { %3264 = vmatmul.mubr.msk.f32.gmra.mrb[10].mxu0 %vm289_vm2, %v3856_v50  ;;  %3320 = vmatmul.mubr.msk.f32.gmra.mrb[10].mxu1 %vm289_vm2, %v3859_v51 }
  0x6a   : > { %3266 = vmatprep.mubr.msk.f32.mxu0 %vm289_vm2, %v3869_v57  ;;  %3322 = vmatprep.mubr.msk.f32.mxu1 %vm289_vm2, %v3872_v58 }
  0x6d   : > { %3267 = vmatmul.mubr.msk.f32.gmra.mrb[12].mxu0 %vm289_vm2, %v3886_v63  ;;  %3323 = vmatmul.mubr.msk.f32.gmra.mrb[12].mxu1 %vm289_vm2, %v3889_v0 }
  0x6e   : > { %3269 = vmatprep.mubr.msk.f32.mxu0 %vm289_vm2, %v3991_v19  ;;  %3325 = vmatprep.mubr.msk.f32.mxu1 %vm289_vm2, %v4041_v30 }
  0x71   : > { %3270 = vmatmul.mubr.msk.f32.gmra.mrb[14].mxu0 %vm289_vm2, %v4002_v20  ;;  %3326 = vmatmul.mubr.msk.f32.gmra.mrb[14].mxu1 %vm289_vm2, %v4052_v32 }
  0x72   : > { %3274 = vmatprep.mubr.msk.f32.mxu0 %vm289_vm2, %v3766_v11  ;;  %3330 = vmatprep.mubr.msk.f32.mxu1 %vm289_vm2, %v3795_v27 }
  0x75   : > { %3275 = vmatmul.mubr.msk.f32.vlgmr.msra.gmra.mrb[8].mxu0 %vm289_vm2, %v3769_v12  ;;  %3331 = vmatmul.mubr.msk.f32.vlgmr.msra.gmra.mrb[8].mxu1 %vm289_vm2, %v3822_v37 }
  0x76   : > { %3287 = vmatpush3.msk.msra.mxu0 %vm306_vm0, %v2915_v33  ;;  %3343 = vmatpush3.msk.msra.mxu1 %vm306_vm0, %v2963_v34 }
  0x77   : > { %3277 = vmatprep.mubr.msk.f32.mxu0 %vm289_vm2, %v3781_v22  ;;  %3333 = vmatprep.mubr.msk.f32.mxu1 %vm289_vm2, %v3834_v42 }
  0x78   : > { %3300 = vmatprep.subr.msk.mxu0 %vm306_vm0, %v2925_v31  ;;  %3356 = vmatprep.subr.msk.mxu1 %vm306_vm0, %v2973_v36 }
  0x79   : > { %3278 = vmatmul.mubr.msk.f32.gmra.mrb[10].mxu0 %vm289_vm2, %v3784_v23  ;;  %3334 = vmatmul.mubr.msk.f32.gmra.mrb[10].mxu1 %vm289_vm2, %v3856_v50 }
  0x7a   : > { %3280 = vmatprep.mubr.msk.f32.mxu0 %vm289_vm2, %v3798_v29  ;;  %3336 = vmatprep.mubr.msk.f32.mxu1 %vm289_vm2, %v3869_v57 }
  0x7d   : > { %3281 = vmatmul.mubr.msk.f32.gmra.mrb[12].mxu0 %vm289_vm2, %v3814_v35  ;;  %3337 = vmatmul.mubr.msk.f32.gmra.mrb[12].mxu1 %vm289_vm2, %v3886_v63 }
  0x7e   : > { %3283 = vmatprep.mubr.msk.f32.mxu0 %vm289_vm2, %v3956_v4  ;;  %3339 = vmatprep.mubr.msk.f32.mxu1 %vm289_vm2, %v3991_v19 }
  0x81   : > { %3284 = vmatmul.mubr.msk.f32.gmra.mrb[14].mxu0 %vm289_vm2, %v3959_v5  ;;  %3340 = vmatmul.mubr.msk.f32.gmra.mrb[14].mxu1 %vm289_vm2, %v4002_v20 }
  0x82   : > { %3288 = vmatprep.mubr.msk.f32.mxu0 %vm289_vm2, %v3781_v22  ;;  %3344 = vmatprep.mubr.msk.f32.mxu1 %vm289_vm2, %v3834_v42 }
  0x85   : > { %3289 = vmatmul.mubr.msk.f32.vlgmr.msra.gmra.mrb[8].mxu0 %vm289_vm2, %v3784_v23  ;;  %3345 = vmatmul.mubr.msk.f32.vlgmr.msra.gmra.mrb[8].mxu1 %vm289_vm2, %v3856_v50 }
  0x86   : > { %3301 = vmatpush3.msk.msra.mxu0 %vm306_vm0, %v2925_v31  ;;  %3357 = vmatpush3.msk.msra.mxu1 %vm306_vm0, %v2973_v36 }
  0x87   : > { %3291 = vmatprep.mubr.msk.f32.mxu0 %vm289_vm2, %v3798_v29  ;;  %3347 = vmatprep.mubr.msk.f32.mxu1 %vm289_vm2, %v3869_v57 }
  0x89   : > { %3292 = vmatmul.mubr.msk.f32.gmra.mrb[10].mxu0 %vm289_vm2, %v3814_v35  ;;  %3348 = vmatmul.mubr.msk.f32.gmra.mrb[10].mxu1 %vm289_vm2, %v3886_v63 }
  0x8a   : > { %3294 = vmatprep.mubr.msk.f32.mxu0 %vm289_vm2, %v3956_v4  ;;  %3350 = vmatprep.mubr.msk.f32.mxu1 %vm289_vm2, %v3991_v19 }
  0x8d   : > { %3295 = vmatmul.mubr.msk.f32.gmra.mrb[12].mxu0 %vm289_vm2, %v3959_v5  ;;  %3351 = vmatmul.mubr.msk.f32.gmra.mrb[12].mxu1 %vm289_vm2, %v4002_v20 }
  0x8e   : > { %3297 = vmatprep.mubr.msk.f32.mxu0 %vm289_vm2, %v3862_v54  ;;  %3353 = vmatprep.mubr.msk.f32.mxu1 %vm289_vm2, %v3893_v3 }
  0x91   : > { %3298 = vmatmul.mubr.msk.f32.gmra.mrb[14].mxu0 %vm289_vm2, %v3865_v55  ;;  %3354 = vmatmul.mubr.msk.f32.gmra.mrb[14].mxu1 %vm289_vm2, %v3896_v6 }
  0x92   : > { %3302 = vmatprep.mubr.msk.f32.mxu0 %vm289_vm2, %v3834_v42  ;;  %3358 = vmatprep.mubr.msk.f32.mxu1 %vm289_vm2, %v3839_v46 }
  0x95   : > { %3303 = vmatmul.mubr.msk.f32.vlgmr.msra.gmra.mrb[8].mxu0 %vm289_vm2, %v3856_v50  ;;  %3359 = vmatmul.mubr.msk.f32.vlgmr.msra.gmra.mrb[8].mxu1 %vm289_vm2, %v3859_v51 }
  0x96   : > { %3305 = vmatprep.mubr.msk.f32.mxu0 %vm289_vm2, %v3869_v57  ;;  %3361 = vmatprep.mubr.msk.f32.mxu1 %vm289_vm2, %v3872_v58 }
  0x99   : > { %3306 = vmatmul.mubr.msk.f32.gmra.mrb[10].mxu0 %vm289_vm2, %v3886_v63  ;;  %3362 = vmatmul.mubr.msk.f32.gmra.mrb[10].mxu1 %vm289_vm2, %v3889_v0 }
  0x9a   : > { %3308 = vmatprep.mubr.msk.f32.mxu0 %vm289_vm2, %v3991_v19  ;;  %3364 = vmatprep.mubr.msk.f32.mxu1 %vm289_vm2, %v4041_v30 }
  0x9d   : > { %3309 = vmatmul.mubr.msk.f32.gmra.mrb[12].mxu0 %vm289_vm2, %v4002_v20  ;;  %3365 = vmatmul.mubr.msk.f32.gmra.mrb[12].mxu1 %vm289_vm2, %v4052_v32 }
  0x9e   : > { %3311 = vmatprep.mubr.msk.f32.mxu0 %vm289_vm2, %v3893_v3  ;;  %3367 = vmatprep.mubr.msk.f32.mxu1 %vm289_vm2, %v3899_v7 }
  0xa1   : > { %3312 = vmatmul.mubr.msk.f32.gmra.mrb[14].mxu0 %vm289_vm2, %v3896_v6  ;;  %3368 = vmatmul.mubr.msk.f32.gmra.mrb[14].mxu1 %vm289_vm2, %v3902_v8 }
 0x128   : > { %v3192_v11 = vpop.f32.mrb[0].mxu0  ;;  %v3248_v12 = vpop.f32.mrb[0].mxu1 }
 0x129   : > { %793 = vst.msk [vmem:[%s4212_s5 + $0x8] sm:$0xff] %vm791_vm4, %v3192_v11  ;;  %v801_v22 = vsel %vm791_vm4, %v3192_v11, 0.0  ;;  %v823_v23 = vmul.f32 %v3192_v11, %v3192_v11  ;;  %2888 = vst.msk [vmem:[%s4212_s5 + $0x48] sm:$0xff] %vm791_vm4, %v3248_v12  ;;  %v1364_v27 = vsel %vm791_vm4, %v3248_v12, 0.0  ;;  %v1386_v29 = vmul.f32 %v3248_v12, %v3248_v12  ;;  %v744_v35 = vpop.f32.mrb[1].mxu0  ;;  %v1307_v37 = vpop.f32.mrb[1].mxu1 }
 0x12a   : > { %792 = vst.msk [vmem:[%s4212_s5] sm:$0xff] %vm791_vm4, %v744_v35  ;;  %v800_v38 = vsel %vm791_vm4, %v744_v35, 0.0  ;;  %v822_v39 = vmul.f32 %v744_v35, %v744_v35  ;;  %2887 = vst.msk [vmem:[%s4212_s5 + $0x40] sm:$0xff] %vm791_vm4, %v1307_v37  ;;  %v1363_v40 = vsel %vm791_vm4, %v1307_v37, 0.0  ;;  %v1385_v41 = vmul.f32 %v1307_v37, %v1307_v37 }
 0x12b   : > { %v831_v42 = vsel %vm791_vm4, %v823_v23, 0.0  ;;  %v1394_v43 = vsel %vm791_vm4, %v1386_v29, 0.0  ;;  %v802_v44 = vadd.f32 %v801_v22, %v800_v38  ;;  %v1365_v45 = vadd.f32 %v1364_v27, %v1363_v40 }
 0x12c   : > { %v830_v46 = vsel %vm791_vm4, %v822_v39, 0.0  ;;  %v1393_v47 = vsel %vm791_vm4, %v1385_v41, 0.0  ;;  %v3195_v48 = vpop.f32.mrb[2].mxu0  ;;  %v3251_v49 = vpop.f32.mrb[2].mxu1 }
 0x12d   : > { %v832_v50 = vadd.f32 %v831_v42, %v830_v46  ;;  %v1395_v51 = vadd.f32 %v1394_v43, %v1393_v47  ;;  %795 = vst.msk [vmem:[%s4212_s5 + $0x18] sm:$0xff] %vm791_vm4, %v3195_v48  ;;  %2890 = vst.msk [vmem:[%s4212_s5 + $0x58] sm:$0xff] %vm791_vm4, %v3251_v49  ;;  %v754_v52 = vpop.f32.mrb[3].mxu0  ;;  %v1317_v53 = vpop.f32.mrb[3].mxu1  ;;  %v825_v54 = vmul.f32 %v3195_v48, %v3195_v48  ;;  %v805_v1 = vsel %vm791_vm4, %v3195_v48, 0.0 }
 0x12e   : > { %794 = vst.msk [vmem:[%s4212_s5 + $0x10] sm:$0xff] %vm791_vm4, %v754_v52  ;;  %v803_v55 = vsel %vm791_vm4, %v754_v52, 0.0  ;;  %v824_v56 = vmul.f32 %v754_v52, %v754_v52  ;;  %2889 = vst.msk [vmem:[%s4212_s5 + $0x50] sm:$0xff] %vm791_vm4, %v1317_v53  ;;  %v1366_v58 = vsel %vm791_vm4, %v1317_v53, 0.0  ;;  %v1387_v59 = vmul.f32 %v1317_v53, %v1317_v53 }
 0x12f   : > { %v804_v57 = vadd.f32 %v803_v55, %v802_v44  ;;  %v1388_v60 = vmul.f32 %v3251_v49, %v3251_v49  ;;  %v1367_v62 = vadd.f32 %v1366_v58, %v1365_v45  ;;  %v1368_v2 = vsel %vm791_vm4, %v3251_v49, 0.0 }
 0x130   : > { %v833_v61 = vsel %vm791_vm4, %v824_v56, 0.0  ;;  %v3198_v63 = vpop.f32.mrb[4].mxu0  ;;  %v3254_v0 = vpop.f32.mrb[4].mxu1  ;;  %v1396_v6 = vsel %vm791_vm4, %v1387_v59, 0.0  ;;  %v835_v9 = vsel %vm791_vm4, %v825_v54, 0.0 }
 0x131   : > { %v834_v3 = vadd.f32 %v833_v61, %v832_v50  ;;  %797 = vst.msk [vmem:[%s4212_s5 + $0x28] sm:$0xff] %vm791_vm4, %v3198_v63  ;;  %2892 = vst.msk [vmem:[%s4212_s5 + $0x68] sm:$0xff] %vm791_vm4, %v3254_v0  ;;  %v764_v7 = vpop.f32.mrb[5].mxu0  ;;  %v1327_v8 = vpop.f32.mrb[5].mxu1  ;;  %v1397_v10 = vadd.f32 %v1396_v6, %v1395_v51  ;;  %v827_v4 = vmul.f32 %v3198_v63, %v3198_v63  ;;  %v1398_v17 = vsel %vm791_vm4, %v1388_v60, 0.0 }
 0x132   : > { %796 = vst.msk [vmem:[%s4212_s5 + $0x20] sm:$0xff] %vm791_vm4, %v764_v7  ;;  %v806_v5 = vadd.f32 %v805_v1, %v804_v57  ;;  %2891 = vst.msk [vmem:[%s4212_s5 + $0x60] sm:$0xff] %vm791_vm4, %v1327_v8  ;;  %v1390_v13 = vmul.f32 %v3254_v0, %v3254_v0  ;;  %v807_v14 = vsel %vm791_vm4, %v764_v7, 0.0  ;;  %v826_v15 = vmul.f32 %v764_v7, %v764_v7 }
 0x133   : > { %v836_v16 = vadd.f32 %v835_v9, %v834_v3  ;;  %v1369_v19 = vadd.f32 %v1368_v2, %v1367_v62  ;;  %v1370_v20 = vsel %vm791_vm4, %v1327_v8, 0.0  ;;  %v809_v25 = vsel %vm791_vm4, %v3198_v63, 0.0 }
 0x134   : > { %v808_v18 = vadd.f32 %v807_v14, %v806_v5  ;;  %v3201_v21 = vpop.f32.mrb[6].mxu0  ;;  %v3257_v24 = vpop.f32.mrb[6].mxu1  ;;  %v837_v26 = vsel %vm791_vm4, %v826_v15, 0.0  ;;  %v1389_v28 = vmul.f32 %v1327_v8, %v1327_v8  ;;  %v1399_v30 = vadd.f32 %v1398_v17, %v1397_v10 }
 0x135   : > { %799 = vst.msk [vmem:[%s4212_s5 + $0x38] sm:$0xff] %vm791_vm4, %v3201_v21  ;;  %2894 = vst.msk [vmem:[%s4212_s5 + $0x78] sm:$0xff] %vm791_vm4, %v3257_v24  ;;  %v774_v32 = vpop.f32.mrb[7].mxu0  ;;  %v1337_v33 = vpop.f32.mrb[7].mxu1  ;;  %v839_v34 = vsel %vm791_vm4, %v827_v4, 0.0  ;;  %v1372_v31 = vsel %vm791_vm4, %v3254_v0, 0.0  ;;  %v838_v36 = vadd.f32 %v837_v26, %v836_v16  ;;  %v1371_v11 = vadd.f32 %v1370_v20, %v1369_v19 }
 0x136   : > { %798 = vst.msk [vmem:[%s4212_s5 + $0x30] sm:$0xff] %vm791_vm4, %v774_v32  ;;  %2893 = vst.msk [vmem:[%s4212_s5 + $0x70] sm:$0xff] %vm791_vm4, %v1337_v33  ;;  %v1402_v12 = vsel %vm791_vm4, %v1390_v13, 0.0  ;;  %v1400_v22 = vsel %vm791_vm4, %v1389_v28, 0.0  ;;  %v810_v23 = vadd.f32 %v809_v25, %v808_v18  ;;  %v811_v27 = vsel %vm791_vm4, %v774_v32, 0.0 }
 0x137   : > { %v1401_v29 = vadd.f32 %v1400_v22, %v1399_v30  ;;  %v829_v35 = vmul.f32 %v3201_v21, %v3201_v21  ;;  %v828_v37 = vmul.f32 %v774_v32, %v774_v32  ;;  %v840_v38 = vadd.f32 %v839_v34, %v838_v36 }
 0x138   : > { %v813_v39 = vsel %vm791_vm4, %v3201_v21, 0.0  ;;  %v812_v40 = vadd.f32 %v811_v27, %v810_v23  ;;  %v1373_v41 = vadd.f32 %v1372_v31, %v1371_v11  ;;  %v1374_v42 = vsel %vm791_vm4, %v1337_v33, 0.0 }
 0x139   : > { %v1392_v43 = vmul.f32 %v3257_v24, %v3257_v24  ;;  %v841_v44 = vsel %vm791_vm4, %v828_v37, 0.0  ;;  %v1391_v45 = vmul.f32 %v1337_v33, %v1337_v33  ;;  %v1403_v46 = vadd.f32 %v1402_v12, %v1401_v29 }
 0x13a   : > { %v814_v47 = vadd.f32 %v813_v39, %v812_v40  ;;  %v842_v48 = vadd.f32 %v841_v44, %v840_v38  ;;  %v1375_v49 = vadd.f32 %v1374_v42, %v1373_v41  ;;  %v843_v50 = vsel %vm791_vm4, %v829_v35, 0.0 }
 0x13b   : > { %v1376_v51 = vsel %vm791_vm4, %v3257_v24, 0.0  ;;  %v1404_v52 = vsel %vm791_vm4, %v1391_v45, 0.0  ;;  %v1406_v57 = vsel %vm791_vm4, %v1392_v43, 0.0 }
 0x13c   : > { %v815_v53 = vrot.slane %v814_v47, 4  ;;  %v844_v54 = vadd.f32 %v843_v50, %v842_v48  ;;  %v1377_v55 = vadd.f32 %v1376_v51, %v1375_v49  ;;  %v1405_v56 = vadd.f32 %v1404_v52, %v1403_v46 }
 0x13e   : > { %v816_v58 = vadd.f32 %v815_v53, %v814_v47  ;;  %v845_v59 = vrot.slane %v844_v54, 4  ;;  %v1378_v60 = vrot.slane %v1377_v55, 4  ;;  %v1407_v61 = vadd.f32 %v1406_v57, %v1405_v56 }
 0x140   : > { %v817_v62 = vrot.slane %v816_v58, 2  ;;  %v846_v63 = vadd.f32 %v845_v59, %v844_v54  ;;  %v1379_v0 = vadd.f32 %v1378_v60, %v1377_v55  ;;  %v1408_v1 = vrot.slane %v1407_v61, 4 }
 0x142   : > { %v818_v2 = vadd.f32 %v817_v62, %v816_v58  ;;  %v847_v3 = vrot.slane %v846_v63, 2  ;;  %v1380_v6 = vrot.slane %v1379_v0, 2  ;;  %v1409_v7 = vadd.f32 %v1408_v1, %v1407_v61 }
 0x144   : > { %v819_v8 = vrot.slane %v818_v2, 1  ;;  %v848_v9 = vadd.f32 %v847_v3, %v846_v63  ;;  %v1381_v10 = vadd.f32 %v1380_v6, %v1379_v0  ;;  %v1410_v4 = vrot.slane %v1409_v7, 2 }
 0x146   : > { %v820_v5 = vadd.f32 %v819_v8, %v818_v2  ;;  %v849_v13 = vrot.slane %v848_v9, 1  ;;  %v1382_v14 = vrot.slane %v1381_v10, 1  ;;  %v1411_v15 = vadd.f32 %v1410_v4, %v1409_v7 }
 0x148   : > { %v850_v16 = vadd.f32 %v849_v13, %v848_v9  ;;  %v1383_v17 = vadd.f32 %v1382_v14, %v1381_v10  ;;  %v1412_v18 = vrot.slane %v1411_v15, 1 }
 0x14a   : > { %v4278_v19 = vadd.f32 %v1383_v17, %v820_v5  ;;  %v1413_v20 = vadd.f32 %v1412_v18, %v1411_v15 }
 0x14c   : > { %v4280_v21 = vadd.f32 %v1413_v20, %v850_v16 }
 0x168   : > { %v3304_v24 = vpop.f32.mrb[8].mxu0  ;;  %v3360_v25 = vpop.f32.mrb[8].mxu1 }
 0x169   : > { %2936 = vst.msk [vmem:[%s4212_s5 + $0x88] sm:$0xff] %vm791_vm4, %v3304_v24  ;;  %v1897_v26 = vsel %vm791_vm4, %v3304_v24, 0.0  ;;  %v1919_v28 = vmul.f32 %v3304_v24, %v3304_v24  ;;  %2984 = vst.msk [vmem:[%s4212_s5 + $0xc8] sm:$0xff] %vm791_vm4, %v3360_v25  ;;  %v2423_v30 = vsel %vm791_vm4, %v3360_v25, 0.0  ;;  %v2445_v32 = vmul.f32 %v3360_v25, %v3360_v25  ;;  %v1840_v33 = vpop.f32.mrb[9].mxu0  ;;  %v2366_v34 = vpop.f32.mrb[9].mxu1 }
 0x16a   : > { %2935 = vst.msk [vmem:[%s4212_s5 + $0x80] sm:$0xff] %vm791_vm4, %v1840_v33  ;;  %v1896_v31 = vsel %vm791_vm4, %v1840_v33, 0.0  ;;  %v1918_v36 = vmul.f32 %v1840_v33, %v1840_v33  ;;  %2983 = vst.msk [vmem:[%s4212_s5 + $0xc0] sm:$0xff] %vm791_vm4, %v2366_v34  ;;  %v2422_v11 = vsel %vm791_vm4, %v2366_v34, 0.0  ;;  %v2444_v12 = vmul.f32 %v2366_v34, %v2366_v34 }
 0x16b   : > { %v1927_v22 = vsel %vm791_vm4, %v1919_v28, 0.0  ;;  %v2453_v23 = vsel %vm791_vm4, %v2445_v32, 0.0  ;;  %v1898_v27 = vadd.f32 %v1897_v26, %v1896_v31  ;;  %v2424_v29 = vadd.f32 %v2423_v30, %v2422_v11 }
 0x16c   : > { %v1926_v35 = vsel %vm791_vm4, %v1918_v36, 0.0  ;;  %v2452_v37 = vsel %vm791_vm4, %v2444_v12, 0.0  ;;  %v3307_v38 = vpop.f32.mrb[10].mxu0  ;;  %v3363_v39 = vpop.f32.mrb[10].mxu1 }
 0x16d   : > { %v1928_v40 = vadd.f32 %v1927_v22, %v1926_v35  ;;  %v2454_v41 = vadd.f32 %v2453_v23, %v2452_v37  ;;  %2938 = vst.msk [vmem:[%s4212_s5 + $0x98] sm:$0xff] %vm791_vm4, %v3307_v38  ;;  %2986 = vst.msk [vmem:[%s4212_s5 + $0xd8] sm:$0xff] %vm791_vm4, %v3363_v39  ;;  %v1850_v42 = vpop.f32.mrb[11].mxu0  ;;  %v2376_v43 = vpop.f32.mrb[11].mxu1  ;;  %v1921_v44 = vmul.f32 %v3307_v38, %v3307_v38  ;;  %v1901_v55 = vsel %vm791_vm4, %v3307_v38, 0.0 }
 0x16e   : > { %2937 = vst.msk [vmem:[%s4212_s5 + $0x90] sm:$0xff] %vm791_vm4, %v1850_v42  ;;  %v1899_v45 = vsel %vm791_vm4, %v1850_v42, 0.0  ;;  %v1920_v46 = vmul.f32 %v1850_v42, %v1850_v42  ;;  %2985 = vst.msk [vmem:[%s4212_s5 + $0xd0] sm:$0xff] %vm791_vm4, %v2376_v43  ;;  %v2425_v48 = vsel %vm791_vm4, %v2376_v43, 0.0  ;;  %v2446_v49 = vmul.f32 %v2376_v43, %v2376_v43 }
 0x16f   : > { %v1900_v47 = vadd.f32 %v1899_v45, %v1898_v27  ;;  %v2447_v50 = vmul.f32 %v3363_v39, %v3363_v39  ;;  %v2426_v52 = vadd.f32 %v2425_v48, %v2424_v29  ;;  %v2427_v56 = vsel %vm791_vm4, %v3363_v39, 0.0 }
 0x170   : > { %v1929_v51 = vsel %vm791_vm4, %v1920_v46, 0.0  ;;  %v3310_v53 = vpop.f32.mrb[12].mxu0  ;;  %v3366_v54 = vpop.f32.mrb[12].mxu1  ;;  %v2455_v58 = vsel %vm791_vm4, %v2446_v49, 0.0  ;;  %v1931_v61 = vsel %vm791_vm4, %v1921_v44, 0.0 }
 0x171   : > { %v1930_v57 = vadd.f32 %v1929_v51, %v1928_v40  ;;  %2940 = vst.msk [vmem:[%s4212_s5 + $0xa8] sm:$0xff] %vm791_vm4, %v3310_v53  ;;  %2988 = vst.msk [vmem:[%s4212_s5 + $0xe8] sm:$0xff] %vm791_vm4, %v3366_v54  ;;  %v1860_v59 = vpop.f32.mrb[13].mxu0  ;;  %v2386_v60 = vpop.f32.mrb[13].mxu1  ;;  %v2456_v62 = vadd.f32 %v2455_v58, %v2454_v41  ;;  %v1923_v63 = vmul.f32 %v3310_v53, %v3310_v53  ;;  %v2457_v7 = vsel %vm791_vm4, %v2447_v50, 0.0 }
 0x172   : > { %2939 = vst.msk [vmem:[%s4212_s5 + $0xa0] sm:$0xff] %vm791_vm4, %v1860_v59  ;;  %v1902_v0 = vadd.f32 %v1901_v55, %v1900_v47  ;;  %2987 = vst.msk [vmem:[%s4212_s5 + $0xe0] sm:$0xff] %vm791_vm4, %v2386_v60  ;;  %v2449_v1 = vmul.f32 %v3366_v54, %v3366_v54  ;;  %v1903_v2 = vsel %vm791_vm4, %v1860_v59, 0.0  ;;  %v1922_v3 = vmul.f32 %v1860_v59, %v1860_v59 }
 0x173   : > { %v1932_v6 = vadd.f32 %v1931_v61, %v1930_v57  ;;  %v2428_v9 = vadd.f32 %v2427_v56, %v2426_v52  ;;  %v2429_v10 = vsel %vm791_vm4, %v2386_v60, 0.0  ;;  %v1905_v13 = vsel %vm791_vm4, %v3310_v53, 0.0 }
 0x174   : > { %v1904_v8 = vadd.f32 %v1903_v2, %v1902_v0  ;;  %v3313_v4 = vpop.f32.mrb[14].mxu0  ;;  %v3369_v5 = vpop.f32.mrb[14].mxu1  ;;  %v1933_v14 = vsel %vm791_vm4, %v1922_v3, 0.0  ;;  %v2448_v15 = vmul.f32 %v2386_v60, %v2386_v60  ;;  %v2458_v16 = vadd.f32 %v2457_v7, %v2456_v62 }
 0x175   : > { %2942 = vst.msk [vmem:[%s4212_s5 + $0xb8] sm:$0xff] %vm791_vm4, %v3313_v4  ;;  %2990 = vst.msk [vmem:[%s4212_s5 + $0xf8] sm:$0xff] %vm791_vm4, %v3369_v5  ;;  %v1870_v17 = vpop.f32.mrb[15].mxu0  ;;  %v2396_v18 = vpop.f32.mrb[15].mxu1  ;;  %v1935_v20 = vsel %vm791_vm4, %v1923_v63, 0.0  ;;  %v2431_v24 = vsel %vm791_vm4, %v3366_v54, 0.0  ;;  %v1934_v25 = vadd.f32 %v1933_v14, %v1932_v6  ;;  %v2430_v26 = vadd.f32 %v2429_v10, %v2428_v9 }
 0x176   : > { %2941 = vst.msk [vmem:[%s4212_s5 + $0xb0] sm:$0xff] %vm791_vm4, %v1870_v17  ;;  %2989 = vst.msk [vmem:[%s4212_s5 + $0xf0] sm:$0xff] %vm791_vm4, %v2396_v18  ;;  %v2461_v28 = vsel %vm791_vm4, %v2449_v1, 0.0  ;;  %v2459_v30 = vsel %vm791_vm4, %v2448_v15, 0.0  ;;  %v1906_v32 = vadd.f32 %v1905_v13, %v1904_v8  ;;  %v1907_v33 = vsel %vm791_vm4, %v1870_v17, 0.0 }
 0x177   : > { %v2460_v34 = vadd.f32 %v2459_v30, %v2458_v16  ;;  %v1925_v31 = vmul.f32 %v3313_v4, %v3313_v4  ;;  %v1924_v36 = vmul.f32 %v1870_v17, %v1870_v17  ;;  %v1936_v11 = vadd.f32 %v1935_v20, %v1934_v25  ;;  %v2590_v17 = vld [vmem:[%s4212_s5 + $0x10] sm:$0xff] (%p3707_p3)  ;;  %v2594_v20 = vld [vmem:[%s4212_s5 + $0x20] sm:$0xff] (%p3707_p3)  ;;  %v2604_v30 = vld [vmem:[%s4212_s5 + $0x48] sm:$0xff] (%p3707_p3) }
 0x178   : > { %v1909_v12 = vsel %vm791_vm4, %v3313_v4, 0.0  ;;  %v1908_v22 = vadd.f32 %v1907_v33, %v1906_v32  ;;  %v2432_v23 = vadd.f32 %v2431_v24, %v2430_v26  ;;  %v2433_v27 = vsel %vm791_vm4, %v2396_v18, 0.0  ;;  %v2596_v24 = vld [vmem:[%s4212_s5 + $0x28] sm:$0xff] (%p3707_p3)  ;;  %v2598_v25 = vld [vmem:[%s4212_s5 + $0x30] sm:$0xff] (%p3707_p3)  ;;  %v2600_v26 = vld [vmem:[%s4212_s5 + $0x38] sm:$0xff] (%p3707_p3)  ;;  %2591 = vst [vmem:[%s4369_s27 + $0x10] sm:$0xff] (%p3707_p3), %v2590_v17 }
 0x179   : > { %v2451_v29 = vmul.f32 %v3369_v5, %v3369_v5  ;;  %v1937_v35 = vsel %vm791_vm4, %v1924_v36, 0.0  ;;  %v2450_v37 = vmul.f32 %v2396_v18, %v2396_v18  ;;  %v2462_v38 = vadd.f32 %v2461_v28, %v2460_v34  ;;  %v2592_v18 = vld [vmem:[%s4212_s5 + $0x18] sm:$0xff] (%p3707_p3)  ;;  %v2602_v28 = vld [vmem:[%s4212_s5 + $0x40] sm:$0xff] (%p3707_p3)  ;;  %v2606_v32 = vld [vmem:[%s4212_s5 + $0x50] sm:$0xff] (%p3707_p3)  ;;  %2595 = vst [vmem:[%s4369_s27 + $0x20] sm:$0xff] (%p3707_p3), %v2594_v20 }
 0x17a   : > { %v1910_v39 = vadd.f32 %v1909_v12, %v1908_v22  ;;  %v1938_v40 = vadd.f32 %v1937_v35, %v1936_v11  ;;  %v2434_v41 = vadd.f32 %v2433_v27, %v2432_v23  ;;  %v1939_v42 = vsel %vm791_vm4, %v1925_v31, 0.0  ;;  %v2608_v33 = vld [vmem:[%s4212_s5 + $0x58] sm:$0xff] (%p3707_p3)  ;;  %2593 = vst [vmem:[%s4369_s27 + $0x18] sm:$0xff] (%p3707_p3), %v2592_v18  ;;  %2597 = vst [vmem:[%s4369_s27 + $0x28] sm:$0xff] (%p3707_p3), %v2596_v24  ;;  %v2610_v34 = vld [vmem:[%s4212_s5 + $0x60] sm:$0xff] (%p3707_p3) }
 0x17b   : > { %v2435_v43 = vsel %vm791_vm4, %v3369_v5, 0.0  ;;  %v2463_v44 = vsel %vm791_vm4, %v2450_v37, 0.0  ;;  %v2465_v49 = vsel %vm791_vm4, %v2451_v29, 0.0  ;;  %2599 = vst [vmem:[%s4369_s27 + $0x30] sm:$0xff] (%p3707_p3), %v2598_v25  ;;  %2601 = vst [vmem:[%s4369_s27 + $0x38] sm:$0xff] (%p3707_p3), %v2600_v26  ;;  %v2612_v31 = vld [vmem:[%s4212_s5 + $0x68] sm:$0xff] (%p3707_p3) }
 0x17c   : > { %v1911_v45 = vrot.slane %v1910_v39, 4  ;;  %v1940_v46 = vadd.f32 %v1939_v42, %v1938_v40  ;;  %v2436_v47 = vadd.f32 %v2435_v43, %v2434_v41  ;;  %v2464_v48 = vadd.f32 %v2463_v44, %v2462_v38  ;;  %2603 = vst [vmem:[%s4369_s27 + $0x100] sm:$0xff] (%p3707_p3), %v2602_v28  ;;  %2605 = vst [vmem:[%s4369_s27 + $0x108] sm:$0xff] (%p3707_p3), %v2604_v30  ;;  %v2614_v36 = vld [vmem:[%s4212_s5 + $0x70] sm:$0xff] (%p3707_p3)  ;;  %v2616_v11 = vld [vmem:[%s4212_s5 + $0x78] sm:$0xff] (%p3707_p3) }
 0x17d   : > { %2607 = vst [vmem:[%s4369_s27 + $0x110] sm:$0xff] (%p3707_p3), %v2606_v32  ;;  %2609 = vst [vmem:[%s4369_s27 + $0x118] sm:$0xff] (%p3707_p3), %v2608_v33  ;;  %v2618_v12 = vld [vmem:[%s4212_s5 + $0x80] sm:$0xff] (%p3707_p3)  ;;  %v2620_v22 = vld [vmem:[%s4212_s5 + $0x88] sm:$0xff] (%p3707_p3) }
 0x17e   : > { %v1912_v50 = vadd.f32 %v1911_v45, %v1910_v39  ;;  %v1941_v51 = vrot.slane %v1940_v46, 4  ;;  %v2437_v52 = vrot.slane %v2436_v47, 4  ;;  %v2466_v53 = vadd.f32 %v2465_v49, %v2464_v48  ;;  %2611 = vst [vmem:[%s4369_s27 + $0x120] sm:$0xff] (%p3707_p3), %v2610_v34  ;;  %2613 = vst [vmem:[%s4369_s27 + $0x128] sm:$0xff] (%p3707_p3), %v2612_v31  ;;  %v2622_v23 = vld [vmem:[%s4212_s5 + $0x90] sm:$0xff] (%p3707_p3)  ;;  %v2624_v27 = vld [vmem:[%s4212_s5 + $0x98] sm:$0xff] (%p3707_p3) }
 0x17f   : > { %2615 = vst [vmem:[%s4369_s27 + $0x130] sm:$0xff] (%p3707_p3), %v2614_v36  ;;  %2617 = vst [vmem:[%s4369_s27 + $0x138] sm:$0xff] (%p3707_p3), %v2616_v11  ;;  %v2626_v29 = vld [vmem:[%s4212_s5 + $0xa0] sm:$0xff] (%p3707_p3)  ;;  %v2628_v35 = vld [vmem:[%s4212_s5 + $0xa8] sm:$0xff] (%p3707_p3) }
 0x180   : > { %v1913_v54 = vrot.slane %v1912_v50, 2  ;;  %v1942_v55 = vadd.f32 %v1941_v51, %v1940_v46  ;;  %v2438_v56 = vadd.f32 %v2437_v52, %v2436_v47  ;;  %v2467_v57 = vrot.slane %v2466_v53, 4  ;;  %2619 = vst [vmem:[%s4369_s27 + $0x200] sm:$0xff] (%p3707_p3), %v2618_v12  ;;  %2621 = vst [vmem:[%s4369_s27 + $0x208] sm:$0xff] (%p3707_p3), %v2620_v22  ;;  %v2630_v37 = vld [vmem:[%s4212_s5 + $0xb0] sm:$0xff] (%p3707_p3)  ;;  %v2632_v38 = vld [vmem:[%s4212_s5 + $0xb8] sm:$0xff] (%p3707_p3) }
 0x181   : > { %2623 = vst [vmem:[%s4369_s27 + $0x210] sm:$0xff] (%p3707_p3), %v2622_v23  ;;  %2625 = vst [vmem:[%s4369_s27 + $0x218] sm:$0xff] (%p3707_p3), %v2624_v27  ;;  %v2634_v39 = vld [vmem:[%s4212_s5 + $0xc0] sm:$0xff] (%p3707_p3)  ;;  %v2636_v40 = vld [vmem:[%s4212_s5 + $0xc8] sm:$0xff] (%p3707_p3) }
 0x182   : > { %v1914_v58 = vadd.f32 %v1913_v54, %v1912_v50  ;;  %v1943_v59 = vrot.slane %v1942_v55, 2  ;;  %v2439_v60 = vrot.slane %v2438_v56, 2  ;;  %v2468_v61 = vadd.f32 %v2467_v57, %v2466_v53  ;;  %2627 = vst [vmem:[%s4369_s27 + $0x220] sm:$0xff] (%p3707_p3), %v2626_v29  ;;  %2629 = vst [vmem:[%s4369_s27 + $0x228] sm:$0xff] (%p3707_p3), %v2628_v35  ;;  %v2638_v41 = vld [vmem:[%s4212_s5 + $0xd0] sm:$0xff] (%p3707_p3)  ;;  %v2640_v42 = vld [vmem:[%s4212_s5 + $0xd8] sm:$0xff] (%p3707_p3) }
 0x183   : > { %2631 = vst [vmem:[%s4369_s27 + $0x230] sm:$0xff] (%p3707_p3), %v2630_v37  ;;  %2633 = vst [vmem:[%s4369_s27 + $0x238] sm:$0xff] (%p3707_p3), %v2632_v38  ;;  %v2642_v43 = vld [vmem:[%s4212_s5 + $0xe0] sm:$0xff] (%p3707_p3)  ;;  %v2644_v44 = vld [vmem:[%s4212_s5 + $0xe8] sm:$0xff] (%p3707_p3) }
 0x184   : > { %v1915_v62 = vrot.slane %v1914_v58, 1  ;;  %v1944_v63 = vadd.f32 %v1943_v59, %v1942_v55  ;;  %v2440_v0 = vadd.f32 %v2439_v60, %v2438_v56  ;;  %v2469_v1 = vrot.slane %v2468_v61, 2  ;;  %2635 = vst [vmem:[%s4369_s27 + $0x300] sm:$0xff] (%p3707_p3), %v2634_v39  ;;  %2637 = vst [vmem:[%s4369_s27 + $0x308] sm:$0xff] (%p3707_p3), %v2636_v40  ;;  %v2646_v45 = vld [vmem:[%s4212_s5 + $0xf0] sm:$0xff] (%p3707_p3)  ;;  %v2648_v46 = vld [vmem:[%s4212_s5 + $0xf8] sm:$0xff] (%p3707_p3) }
 0x185   : > { %2639 = vst [vmem:[%s4369_s27 + $0x310] sm:$0xff] (%p3707_p3), %v2638_v41  ;;  %2641 = vst [vmem:[%s4369_s27 + $0x318] sm:$0xff] (%p3707_p3), %v2640_v42 }
 0x186   : > { %v1916_v2 = vadd.f32 %v1915_v62, %v1914_v58  ;;  %v1945_v3 = vrot.slane %v1944_v63, 1  ;;  %v2441_v6 = vrot.slane %v2440_v0, 1  ;;  %v2470_v7 = vadd.f32 %v2469_v1, %v2468_v61  ;;  %2643 = vst [vmem:[%s4369_s27 + $0x320] sm:$0xff] (%p3707_p3), %v2642_v43  ;;  %2645 = vst [vmem:[%s4369_s27 + $0x328] sm:$0xff] (%p3707_p3), %v2644_v44 }
 0x187   : > { %2647 = vst [vmem:[%s4369_s27 + $0x330] sm:$0xff] (%p3707_p3), %v2646_v45  ;;  %2649 = vst [vmem:[%s4369_s27 + $0x338] sm:$0xff] (%p3707_p3), %v2648_v46 }
 0x188   : > { %v1917_v8 = vadd.f32 %v1916_v2, %v4278_v19  ;;  %v1946_v9 = vadd.f32 %v1945_v3, %v1944_v63  ;;  %v2442_v10 = vadd.f32 %v2441_v6, %v2440_v0  ;;  %v2471_v4 = vrot.slane %v2470_v7, 1  ;;  %v2586_v19 = vld [vmem:[%s4212_s5] sm:$0xff] (%p3707_p3) }
 0x189   : > { %2489 = sbr.rel (!%p3707_p3) target bundleno = 400 (0x190), region = 32  ;;  %2587 = vst [vmem:[%s4369_s27] sm:$0xff] (%p3707_p3), %v2586_v19 }
 0x18a   : > { %v1947_v5 = vadd.f32 %v1946_v9, %v4280_v21  ;;  %v2443_v13 = vadd.f32 %v2442_v10, %v1917_v8  ;;  %v2472_v14 = vadd.f32 %v2471_v4, %v2470_v7  ;;  %v2588_v21 = vld [vmem:[%s4212_s5 + $0x8] sm:$0xff] (%p3707_p3) }
 0x18b   : > { %2589 = vst [vmem:[%s4369_s27 + $0x8] sm:$0xff] (%p3707_p3), %v2588_v21 }
 0x18c   : > { %v2473_v15 = vadd.f32 %v2472_v14, %v1947_v5 }
 0x18e   : > { %v2475_v16 = vsel %vm2474_vm5, %v2443_v13, %v2473_v15 }
 0x18f   : > { %2477 = vst.msk [vmem:[%s4349_s7] sm:$0x3] %vm2476_vm6, %v2475_v16 }
 0x190 PF: > { %s2997_s28 = sshll.u32 %s3621_s16, 2  ;;  %s2666_s4 = sshll.u32 %s4349_s7, 4  ;;  %s4429_s4 = int_to_ptr.vmem [resolvable:$true] %s2666_s4 }
 0x191   : > { %s2662_s6 = sadd.s32 %s3617_s15, %s2997_s28  ;;  %s3539_s20 = scalar_lea.vmem %s4429_s4, 32 }
 0x192   : > { %s2998_s9 = sshll.u32 %s2662_s6, 5  ;;  %p3540_p0 = scmp.ne.s32.totalorder %s4429_s4, %s3539_s20 }
 0x193   : > { %s2664_s5 = scalar_lea.hbm %s4483_s3, %s2998_s9  ;;  %s3635_s21 = smov [#allocation3]  }
 0x194   : > { %p3541_p1 = pnand %p3540_p0, %p3707_p3  ;;  %s3543_s24 = sshll.u32 %s3635_s21, 4  ;;  %s3544_s24 = int_to_ptr.vmem [resolvable:$false] %s3543_s24 }
 0x195   : > { %s3545_s16 = scalar_lea.vmem %s3544_s24, 64  ;;  %p3546_p4 = scmp.lt.s32.totalorder %s4429_s4, %s3544_s24 }
 0x196   : > { %p3542_p2 = pneg %p3541_p1  ;;  %p3547_p5 = scmp.lt.s32.totalorder %s3545_s16, %s3539_s20 }
 0x198   : > { %p3548_p6 = por %p3547_p5, %p3546_p4 }
 0x19a   : > { %p3549_p7 = pnand %p3548_p6, %p3542_p2 }
 0x19c   : > { %3552 = shalt.err (!%p3549_p7)
}
 0x19d   : > { %s3553_s15 = scalar_lea.hbm %s2664_s5, 32  ;;  %s3557_s28 = scalar_lea.hbm %s4483_s3, 256 }
 0x19e   : > { %p3554_p9 = scmp.ne.s32.totalorder %s2664_s5, %s3553_s15  ;;  %p3558_p12 = scmp.lt.u32.totalorder %s2664_s5, %s4483_s3 }
 0x19f   : > { %p3559_p13 = scmp.lt.u32.totalorder %s3557_s28, %s3553_s15  ;;  %p3561_p1 = scmp.lt.u32.totalorder %s3553_s15, %s2664_s5 }
 0x1a0   : > { %p3555_p10 = pnand %p3554_p9, %p3707_p3 }
 0x1a1   : > { %p3560_p0 = por %p3559_p13, %p3558_p12 }
 0x1a2   : > { %p3556_p11 = pneg %p3555_p10 }
 0x1a3   : > { %p3562_p4 = por %p3561_p1, %p3560_p0 }
 0x1a5   : > { %p3563_p2 = pnand %p3562_p4, %p3556_p11 }
 0x1a7   : > { %3566 = shalt.err (!%p3563_p2)
}
 0x1a8   : > { %3468 = dma.vmem_to_hbm [thread:$0]  (%p3707_p3), %s4429_s4, 32, %s2664_s5, %s2483_s8  }
 0x1a9 PF: > { %p3474_p5 = scmp.ge.s32.totalorder %s3633_s19, 2  ;;  %s2685_s10 = sand.u32 1, %s3605_s12  }
 0x1aa   : > { %s2686_s11 = scalar_lea.sflag [#allocation4], %s2685_s10 }
 0x1ab   : > { %p3471_p6 = pnand %p3474_p5, %p3716_p8 }
 0x1ad   : > { %3600 = dma.done.wait (!%p3471_p6), %s2686_s11, 32  }
 0x1ae   : > { %3602 = vsyncadd (!%p3471_p6), %s2686_s11, 4294967264  ;;  %s17_s19 = sadd.s32 1, %s3633_s19   ;;  %s4486_s12 = smov %s3609_s13 }
 0x1af   : > { %p14_p7 = scmp.ge.s32.totalorder %s17_s19, 10   ;;  %s4487_s13 = smov %s3613_s14 }
 0x1b0   : > { %s4488_s14 = smov %s3725_s30  ;;  %s4489_s15 = smov %s3625_s17 }
 0x1b1   : > { %s4490_s16 = smov %s3629_s18  ;;  %s4491_s17 = smov %s4494_s22 }
 0x1b2   : > { %s4492_s18 = smov %s4498_s23  ;;  %16 = sbr.rel (!%p14_p7) target bundleno = 5 (0x5), region = 134 }
 0x1b9   :  { %2691 = vsyncpa [#allocation4], 1 }
 0x1ba   :  { %2693 = vsyncpa [#allocation4 + $0x1], 1 }

</bundles_post_ra>
